<compile_context>
chip_gen: v5e
topology: v5e:2x2
jax: 0.10.0
libtpu: 0.0.40
codegen_flags: <defaults>
</compile_context>

<pallas_src>
import functools

import numpy as np
import jax
import jax.numpy as jnp
from jax.experimental import pallas as pl
from jax.experimental.pallas import tpu as pltpu


def _outproj_kernel(x_ref, xscale_ref, wq_ref, ws_ref, res_ref, bias_ref, o_ref,
                    acc_ref, *, group_size, kp_tiles, kp_cols, fold_scales):
    """One (m, n, kp) grid step.

    x_ref     : [tile_m, K]         activations (fp8 or bf16), resident per m tile
    xscale_ref: [tile_m, 1]         per-token activation scale (bf16)
    wq_ref    : [tile_kp, tile_n]   int32, K-major planar int4 (nibble j = K row j*KP + i)
    ws_ref    : [K//gs, tile_n]     f32 per-group weight scales, group-major, resident per n
    res_ref   : [tile_m, tile_n]    bf16 residual
    bias_ref  : [1, tile_n]         bf16 bias
    o_ref     : [tile_m, tile_n]    bf16 output
    acc_ref   : [tile_m, tile_n]    f32 accumulator (only used when kp_tiles > 1)

    NOTE: kp must stay the innermost ("arbitrary") grid axis -- the accumulator is
    (re)initialised at kp == 0 and flushed at kp == kp_tiles - 1 for each (m, n).
    """
    gs = group_size
    ngt = kp_cols // gs                    # scale groups per nibble slab per step
    KP = kp_tiles * kp_cols                # packed columns per nibble (== K // 8)
    g_slab = KP // gs                      # scale groups per nibble slab (whole K)
    kp = pl.program_id(2)

    wq_i = wq_ref[...]                                         # [TKP, TN] int32
    wq_u = pltpu.bitcast(wq_i, jnp.uint32)

    def dequant(j):
        # Sign-extended int4 from nibble j (bits [4j, 4j+4)); j == 7 needs no left shift.
        if j == 7:
            nib = wq_i >> 28
        else:
            nib = pltpu.bitcast(wq_u << (28 - 4 * j), jnp.int32) >> 28
        return nib.astype(jnp.bfloat16)                        # exact int4 in bf16

    def x_slab(j):
        # Activation columns matching nibble j of this kp tile: a lane-contiguous,
        # 128-aligned slice of the VMEM-resident activations (no relayout).
        if kp_tiles == 1:
            start = j * KP                                     # static
        else:
            start = pl.multiple_of(j * KP + kp * kp_cols, 128)
        return x_ref[:, pl.ds(start, kp_cols)].astype(jnp.bfloat16)

    def scale_row(j, g):                                       # [1, tile_n] f32
        if kp_tiles == 1:
            r = j * g_slab + g                                 # static row
            return ws_ref[r:r + 1, :]
        return ws_ref[pl.ds(j * g_slab + kp * ngt + g, 1), :]

    if fold_scales:
        # Prefill: fold the per-group scale into the dequantized bf16 weights (exact:
        # int4 x e4m3 needs <= 8 significand bits) and issue one deep-K dot per step.
        w_parts = []
        x_parts = []
        for j in range(8):
            w_j = dequant(j)                                   # [TKP, TN]
            for g in range(ngt):
                s = scale_row(j, g).astype(jnp.bfloat16)       # [1, TN] lane vector
                w_parts.append(w_j[g * gs:(g + 1) * gs, :] * s)
            if kp_tiles > 1:
                x_parts.append(x_slab(j))
        w_cat = jnp.concatenate(w_parts, axis=0) if len(w_parts) > 1 else w_parts[0]
        if kp_tiles == 1:
            # The 8 nibble slabs tile all of K contiguously -> whole resident row block.
            x_cat = x_ref[...].astype(jnp.bfloat16)
        else:
            x_cat = jnp.concatenate(x_parts, axis=1) if len(x_parts) > 1 else x_parts[0]
        local = jax.lax.dot_general(x_cat, w_cat, (((1,), (0,)), ((), ())),
                                    preferred_element_type=jnp.float32)
    else:
        # Decode (M << group_size): scaling the [M, tile_n] f32 partial is cheaper
        # than scaling the [group_size, tile_n] weight slab.  Accumulate locally.
        local = None
        for j in range(8):
            w_j = dequant(j)
            x_j = x_slab(j)
            for g in range(ngt):
                p = jax.lax.dot_general(
                    x_j[:, g * gs:(g + 1) * gs], w_j[g * gs:(g + 1) * gs, :],
                    (((1,), (0,)), ((), ())), preferred_element_type=jnp.float32)
                p = p * scale_row(j, g)
                local = p if local is None else local + p

    def epilogue(acc):
        y = acc * xscale_ref[...].astype(jnp.float32)          # per-token act scale
        y = y + res_ref[...].astype(jnp.float32)
        y = y + bias_ref[...].astype(jnp.float32)
        o_ref[...] = y.astype(jnp.bfloat16)

    if kp_tiles == 1:
        epilogue(local)                    # no accumulator traffic at all
    else:
        @pl.when(kp == 0)
        def _():
            acc_ref[...] = local           # write (not +=): skips one RMW pass

        @pl.when(kp > 0)
        def _():
            acc_ref[...] += local          # single RMW per grid step

        @pl.when(kp == kp_tiles - 1)
        def _():
            epilogue(acc_ref[...])


def _mosaic_handles_fp8():
    """Static (trace-time) dispatch: keep fp8 activations in-kernel on v6e / v7x,
    widen to bf16 in the wrapper on older generations (v5e and earlier)."""
    try:
        kind = jax.devices()[0].device_kind.lower()
    except Exception:
        return False
    return any(tag in kind for tag in ("v6", "v7", "tpu7"))


def out_proj(x_fp8, x_scale, weight_i4, weight_scale, residual, bias, group_size,
             *, tile_m=None, tile_n=None, tile_kp=None):
    M, K = x_fp8.shape
    N, KP = weight_i4.shape
    assert K == 8 * KP, "planar int4 packing expects K == 8 * packed_K"
    assert K % group_size == 0
    g_total = K // group_size
    assert weight_scale.shape == (N, g_total)
    assert KP % group_size == 0, "scale groups must align with nibble slabs"

    if bias is None:
        bias = jnp.zeros((N,), residual.dtype)

    # ---- static tile selection ---------------------------------------------
    if tile_n is None:
        # Keep >= 2 n-tiles so the parallel axis splits across v7x's 2 TensorCores.
        tile_n = 256 if (N % 256 == 0 and N >= 512) else 128
    assert N % tile_n == 0 and tile_n % 128 == 0

    if tile_m is None:
        if M <= 256:
            tile_m = M
        elif M % 256 == 0:
            tile_m = 256
        elif M % 128 == 0:
            tile_m = 128
        else:
            tile_m = M  # TODO(synk): pad ragged M instead of one huge m tile.
    assert M % tile_m == 0

    if tile_kp is None:
        unit = int(np.lcm(128, int(group_size)))
        assert KP % unit == 0, "packed K must be a multiple of lcm(128, group_size)"
        tile_kp = unit
        # Grow the packed-K tile: deep-K dots, fewer grid steps.  1024 packed cols
        # (8192 effective K) keeps the int32 weight tile at ~1 MiB per buffer.
        while tile_kp * 2 <= min(KP, 1024) and KP % (tile_kp * 2) == 0:
            tile_kp *= 2
    assert KP % tile_kp == 0 and tile_kp % group_size == 0 and tile_kp % 128 == 0

    kp_tiles = KP // tile_kp
    ngt = tile_kp // group_size
    # Prefill (tile_m >= group_size): fold scales into bf16 weights; decode: scale partials.
    fold_scales = tile_m >= group_size

    use_fp8 = _mosaic_handles_fp8() and x_fp8.dtype != jnp.bfloat16
    x_in = x_fp8 if use_fp8 else x_fp8.astype(jnp.bfloat16)

    # One-time operand repacks (in production these belong with the weight loader):
    #   * packed int4 weights go K-major ([KP, N]) -> dequantized slab is an MXU-native
    #     RHS (no per-tile transpose; per-N scale is a lane broadcast),
    #   * per-group weight scales widened to f32 (tiny) and stored group-major.
    wq_t = weight_i4.T                                    # [KP, N] int32
    ws_t = weight_scale.astype(jnp.float32).T             # [g_total, N] f32
    bias2d = bias.reshape(1, N)

    grid = (M // tile_m, N // tile_n, kp_tiles)

    # ---- explicit VMEM budget (<= 48 MiB so it also fits v7x's 64 MiB) ------
    x_bytes = 1 if use_fp8 else 2
    est = (2 * tile_m * K * x_bytes            # resident activations (double buffered)
           + tile_m * K * 2                    # in-kernel bf16 widening of x
           + 2 * tile_kp * tile_n * 4          # packed int4 weights
           + 2 * g_total * tile_n * 4          # weight scales
           + 8 * tile_kp * tile_n * 2          # dequantized / scale-folded slabs
           + 4 * tile_m * tile_n * 2           # residual + output (double buffered)
           + 2 * tile_m * tile_n * 4           # f32 accumulator + partial
           + (1 << 20))
    vmem_limit = int(min(48 << 20, max(32 << 20, est + (8 << 20))))

    kernel = functools.partial(_outproj_kernel, group_size=group_size,
                               kp_tiles=kp_tiles, kp_cols=tile_kp,
                               fold_scales=fold_scales)

    return pl.pallas_call(
        kernel,
        out_shape=jax.ShapeDtypeStruct((M, N), jnp.bfloat16),
        grid=grid,
        in_specs=[
            pl.BlockSpec((tile_m, K), lambda m, n, kp: (m, 0)),         # x: resident per m
            pl.BlockSpec((tile_m, 1), lambda m, n, kp: (m, 0)),         # per-token act scale
            pl.BlockSpec((tile_kp, tile_n), lambda m, n, kp: (kp, n)),  # packed int4 (K-major)
            pl.BlockSpec((g_total, tile_n), lambda m, n, kp: (0, n)),   # w scales (per n, resident)
            pl.BlockSpec((tile_m, tile_n), lambda m, n, kp: (m, n)),    # residual
            pl.BlockSpec((1, tile_n), lambda m, n, kp: (0, n)),         # bias
        ],
        out_specs=pl.BlockSpec((tile_m, tile_n), lambda m, n, kp: (m, n)),
        scratch_shapes=[pltpu.VMEM((tile_m, tile_n), jnp.float32)],
        compiler_params=pltpu.CompilerParams(
            dimension_semantics=("parallel", "parallel", "arbitrary"),
            vmem_limit_bytes=vmem_limit),
    )(x_in, x_scale, wq_t, ws_t, residual, bias2d)


# ----------------------------- test harness ---------------------------------

def _pack_int4_planar(w_int4_np):
    """[N, K] ints in [-8, 7] -> [N, K//8] int32, nibble j holds column j*(K//8)+i."""
    N, K = w_int4_np.shape
    KP = K // 8
    nib = (w_int4_np & 0xF).astype(np.uint32).reshape(N, 8, KP)
    packed = np.zeros((N, KP), dtype=np.uint32)
    for j in range(8):
        packed |= nib[:, j, :] << np.uint32(4 * j)
    return jnp.asarray(packed.view(np.int32))


def _reference(x_fp8, x_scale, w_int4, w_scale_fp8, residual, bias, gs):
    w_scale = jnp.repeat(w_scale_fp8.astype(jnp.float32), gs, axis=1)
    deq_w = (w_int4.astype(jnp.float32) * w_scale).astype(jnp.bfloat16)
    y = jnp.dot(x_fp8.astype(jnp.bfloat16), deq_w.T,
                preferred_element_type=jnp.float32)
    y = (y * x_scale.astype(jnp.float32)
         + residual.astype(jnp.float32) + bias.astype(jnp.float32))
    return y.astype(jnp.bfloat16)


def _run_case(key, M, K, N, gs):
    kx, ks, kw, kws, kr, kb = jax.random.split(key, 6)
    x_fp8 = jax.random.normal(kx, (M, K), dtype=jnp.float32).astype(jnp.float8_e4m3fn)
    x_scale = jax.random.uniform(ks, (M, 1), minval=0.5, maxval=1.5).astype(jnp.bfloat16)
    w_int4 = jax.random.randint(kw, (N, K), -8, 8, dtype=jnp.int32)
    weight_i4 = _pack_int4_planar(np.asarray(w_int4))
    w_scale = jax.random.uniform(kws, (N, K // gs), minval=0.01,
                                 maxval=0.05).astype(jnp.float8_e4m3fn)
    residual = jax.random.normal(kr, (M, N), dtype=jnp.float32).astype(jnp.bfloat16)
    bias = jax.random.normal(kb, (N,), dtype=jnp.float32).astype(jnp.bfloat16)

    y = out_proj(x_fp8, x_scale, weight_i4, w_scale, residual, bias, gs)
    y = jax.block_until_ready(y)
    y_ref = _reference(x_fp8, x_scale, w_int4, w_scale, residual, bias, gs)
    np.testing.assert_allclose(np.asarray(y, dtype=np.float32),
                               np.asarray(y_ref, dtype=np.float32),
                               rtol=0.1, atol=0.2)


if __name__ == "__main__":
    key = jax.random.PRNGKey(0)
    k1, k2 = jax.random.split(key)
    # decode-shaped: small M -> partial scaling path, 2 n-tiles of 128
    _run_case(k1, M=16, K=2048, N=256, gs=128)
    # prefill-shaped: larger M -> scale-folded weights, one deep-K dot per step
    _run_case(k2, M=256, K=2048, N=512, gs=128)
    print("KERNEL_OK")
</pallas_src>

<mosaic_0001>
module attributes {stable_mosaic.version = 11 : i64} {
  func.func @_outproj_kernel(%arg0: i32, %arg1: i32, %arg2: i32, %arg3: memref<16x2048xbf16, #tpu.memory_space<vmem>>, %arg4: memref<16x1xbf16, #tpu.memory_space<vmem>>, %arg5: memref<256x128xi32, #tpu.memory_space<vmem>>, %arg6: memref<16x128xf32, #tpu.memory_space<vmem>>, %arg7: memref<16x128xbf16, #tpu.memory_space<vmem>>, %arg8: memref<1x128xbf16, #tpu.memory_space<vmem>>, %arg9: memref<16x128xbf16, #tpu.memory_space<vmem>>, %arg10: memref<16x128xf32, #tpu.memory_space<vmem>>) attributes {dimension_semantics = [#tpu.dimension_semantics<parallel>, #tpu.dimension_semantics<parallel>, #tpu.dimension_semantics<arbitrary>], iteration_bounds = array<i64: 1, 2, 1>, scalar_prefetch = 0 : i64, scratch_operands = 1 : i64, tpu.core_type = #tpu.core_type<tc>, window_params = [{transform_indices = @transform_0, window_bounds = array<i64: 16, 2048>}, {transform_indices = @transform_1, window_bounds = array<i64: 16, 1>}, {transform_indices = @transform_2, window_bounds = array<i64: 256, 128>}, {transform_indices = @transform_3, window_bounds = array<i64: 16, 128>}, {transform_indices = @transform_4, window_bounds = array<i64: 16, 128>}, {transform_indices = @transform_5, window_bounds = array<i64: 1, 128>}, {transform_indices = @transform_6, window_bounds = array<i64: 16, 128>}]} {
    %c0 = arith.constant 0 : index
    %c0_0 = arith.constant 0 : index
    %0 = vector.load %arg5[%c0, %c0_0] : memref<256x128xi32, #tpu.memory_space<vmem>>, vector<256x128xi32>
    %1 = tpu.bitcast %0 : vector<256x128xi32> -> vector<256x128xi32>
    %c28_i32 = arith.constant 28 : i32
    %2 = vector.broadcast %c28_i32 : i32 to vector<256x128xi32>
    %3 = arith.shli %1, %2 : vector<256x128xi32>
    %4 = tpu.bitcast %3 : vector<256x128xi32> -> vector<256x128xi32>
    %c28_i32_1 = arith.constant 28 : i32
    %5 = vector.broadcast %c28_i32_1 : i32 to vector<256x128xi32>
    %6 = arith.shrsi %4, %5 : vector<256x128xi32>
    %7 = arith.sitofp %6 : vector<256x128xi32> to vector<256x128xbf16>
    %c0_2 = arith.constant 0 : index
    %c0_3 = arith.constant 0 : index
    %8 = vector.load %arg3[%c0_2, %c0_3] : memref<16x2048xbf16, #tpu.memory_space<vmem>>, vector<16x256xbf16>
    %9 = vector.extract_strided_slice %8 {offsets = [0, 0], sizes = [16, 128], strides = [1, 1]} : vector<16x256xbf16> to vector<16x128xbf16>
    %10 = vector.extract_strided_slice %7 {offsets = [0, 0], sizes = [128, 128], strides = [1, 1]} : vector<256x128xbf16> to vector<128x128xbf16>
    %cst = arith.constant dense<0.000000e+00> : vector<16x128xf32>
    %11 = tpu.matmul %9, %10, %cst {dimension_numbers = #tpu.dot_dimension_numbers<[1], [0], [0], [1], [0, 0, 1, 1], [], []>} : vector<16x128xbf16>, vector<128x128xbf16>, vector<16x128xf32> -> vector<16x128xf32>
    %c0_4 = arith.constant 0 : index
    %c0_5 = arith.constant 0 : index
    %12 = vector.load %arg6[%c0_4, %c0_5] : memref<16x128xf32, #tpu.memory_space<vmem>>, vector<1x128xf32>
    %13 = vector.broadcast %12 : vector<1x128xf32> to vector<16x128xf32>
    %14 = arith.mulf %11, %13 : vector<16x128xf32>
    %15 = vector.extract_strided_slice %8 {offsets = [0, 128], sizes = [16, 128], strides = [1, 1]} : vector<16x256xbf16> to vector<16x128xbf16>
    %16 = vector.extract_strided_slice %7 {offsets = [128, 0], sizes = [128, 128], strides = [1, 1]} : vector<256x128xbf16> to vector<128x128xbf16>
    %cst_6 = arith.constant dense<0.000000e+00> : vector<16x128xf32>
    %17 = tpu.matmul %15, %16, %cst_6 {dimension_numbers = #tpu.dot_dimension_numbers<[1], [0], [0], [1], [0, 0, 1, 1], [], []>} : vector<16x128xbf16>, vector<128x128xbf16>, vector<16x128xf32> -> vector<16x128xf32>
    %c1 = arith.constant 1 : index
    %c0_7 = arith.constant 0 : index
    %18 = vector.load %arg6[%c1, %c0_7] : memref<16x128xf32, #tpu.memory_space<vmem>>, vector<1x128xf32>
    %19 = vector.broadcast %18 : vector<1x128xf32> to vector<16x128xf32>
    %20 = arith.mulf %17, %19 : vector<16x128xf32>
    %21 = arith.addf %14, %20 : vector<16x128xf32>
    %c24_i32 = arith.constant 24 : i32
    %22 = vector.broadcast %c24_i32 : i32 to vector<256x128xi32>
    %23 = arith.shli %1, %22 : vector<256x128xi32>
    %24 = tpu.bitcast %23 : vector<256x128xi32> -> vector<256x128xi32>
    %c28_i32_8 = arith.constant 28 : i32
    %25 = vector.broadcast %c28_i32_8 : i32 to vector<256x128xi32>
    %26 = arith.shrsi %24, %25 : vector<256x128xi32>
    %27 = arith.sitofp %26 : vector<256x128xi32> to vector<256x128xbf16>
    %c0_9 = arith.constant 0 : index
    %c256 = arith.constant 256 : index
    %28 = vector.load %arg3[%c0_9, %c256] : memref<16x2048xbf16, #tpu.memory_space<vmem>>, vector<16x256xbf16>
    %29 = vector.extract_strided_slice %28 {offsets = [0, 0], sizes = [16, 128], strides = [1, 1]} : vector<16x256xbf16> to vector<16x128xbf16>
    %30 = vector.extract_strided_slice %27 {offsets = [0, 0], sizes = [128, 128], strides = [1, 1]} : vector<256x128xbf16> to vector<128x128xbf16>
    %cst_10 = arith.constant dense<0.000000e+00> : vector<16x128xf32>
    %31 = tpu.matmul %29, %30, %cst_10 {dimension_numbers = #tpu.dot_dimension_numbers<[1], [0], [0], [1], [0, 0, 1, 1], [], []>} : vector<16x128xbf16>, vector<128x128xbf16>, vector<16x128xf32> -> vector<16x128xf32>
    %c2 = arith.constant 2 : index
    %c0_11 = arith.constant 0 : index
    %32 = vector.load %arg6[%c2, %c0_11] : memref<16x128xf32, #tpu.memory_space<vmem>>, vector<1x128xf32>
    %33 = vector.broadcast %32 : vector<1x128xf32> to vector<16x128xf32>
    %34 = arith.mulf %31, %33 : vector<16x128xf32>
    %35 = arith.addf %21, %34 : vector<16x128xf32>
    %36 = vector.extract_strided_slice %28 {offsets = [0, 128], sizes = [16, 128], strides = [1, 1]} : vector<16x256xbf16> to vector<16x128xbf16>
    %37 = vector.extract_strided_slice %27 {offsets = [128, 0], sizes = [128, 128], strides = [1, 1]} : vector<256x128xbf16> to vector<128x128xbf16>
    %cst_12 = arith.constant dense<0.000000e+00> : vector<16x128xf32>
    %38 = tpu.matmul %36, %37, %cst_12 {dimension_numbers = #tpu.dot_dimension_numbers<[1], [0], [0], [1], [0, 0, 1, 1], [], []>} : vector<16x128xbf16>, vector<128x128xbf16>, vector<16x128xf32> -> vector<16x128xf32>
    %c3 = arith.constant 3 : index
    %c0_13 = arith.constant 0 : index
    %39 = vector.load %arg6[%c3, %c0_13] : memref<16x128xf32, #tpu.memory_space<vmem>>, vector<1x128xf32>
    %40 = vector.broadcast %39 : vector<1x128xf32> to vector<16x128xf32>
    %41 = arith.mulf %38, %40 : vector<16x128xf32>
    %42 = arith.addf %35, %41 : vector<16x128xf32>
    %c20_i32 = arith.constant 20 : i32
    %43 = vector.broadcast %c20_i32 : i32 to vector<256x128xi32>
    %44 = arith.shli %1, %43 : vector<256x128xi32>
    %45 = tpu.bitcast %44 : vector<256x128xi32> -> vector<256x128xi32>
    %c28_i32_14 = arith.constant 28 : i32
    %46 = vector.broadcast %c28_i32_14 : i32 to vector<256x128xi32>
    %47 = arith.shrsi %45, %46 : vector<256x128xi32>
    %48 = arith.sitofp %47 : vector<256x128xi32> to vector<256x128xbf16>
    %c0_15 = arith.constant 0 : index
    %c512 = arith.constant 512 : index
    %49 = vector.load %arg3[%c0_15, %c512] : memref<16x2048xbf16, #tpu.memory_space<vmem>>, vector<16x256xbf16>
    %50 = vector.extract_strided_slice %49 {offsets = [0, 0], sizes = [16, 128], strides = [1, 1]} : vector<16x256xbf16> to vector<16x128xbf16>
    %51 = vector.extract_strided_slice %48 {offsets = [0, 0], sizes = [128, 128], strides = [1, 1]} : vector<256x128xbf16> to vector<128x128xbf16>
    %cst_16 = arith.constant dense<0.000000e+00> : vector<16x128xf32>
    %52 = tpu.matmul %50, %51, %cst_16 {dimension_numbers = #tpu.dot_dimension_numbers<[1], [0], [0], [1], [0, 0, 1, 1], [], []>} : vector<16x128xbf16>, vector<128x128xbf16>, vector<16x128xf32> -> vector<16x128xf32>
    %c4 = arith.constant 4 : index
    %c0_17 = arith.constant 0 : index
    %53 = vector.load %arg6[%c4, %c0_17] : memref<16x128xf32, #tpu.memory_space<vmem>>, vector<1x128xf32>
    %54 = vector.broadcast %53 : vector<1x128xf32> to vector<16x128xf32>
    %55 = arith.mulf %52, %54 : vector<16x128xf32>
    %56 = arith.addf %42, %55 : vector<16x128xf32>
    %57 = vector.extract_strided_slice %49 {offsets = [0, 128], sizes = [16, 128], strides = [1, 1]} : vector<16x256xbf16> to vector<16x128xbf16>
    %58 = vector.extract_strided_slice %48 {offsets = [128, 0], sizes = [128, 128], strides = [1, 1]} : vector<256x128xbf16> to vector<128x128xbf16>
    %cst_18 = arith.constant dense<0.000000e+00> : vector<16x128xf32>
    %59 = tpu.matmul %57, %58, %cst_18 {dimension_numbers = #tpu.dot_dimension_numbers<[1], [0], [0], [1], [0, 0, 1, 1], [], []>} : vector<16x128xbf16>, vector<128x128xbf16>, vector<16x128xf32> -> vector<16x128xf32>
    %c5 = arith.constant 5 : index
    %c0_19 = arith.constant 0 : index
    %60 = vector.load %arg6[%c5, %c0_19] : memref<16x128xf32, #tpu.memory_space<vmem>>, vector<1x128xf32>
    %61 = vector.broadcast %60 : vector<1x128xf32> to vector<16x128xf32>
    %62 = arith.mulf %59, %61 : vector<16x128xf32>
    %63 = arith.addf %56, %62 : vector<16x128xf32>
    %c16_i32 = arith.constant 16 : i32
    %64 = vector.broadcast %c16_i32 : i32 to vector<256x128xi32>
    %65 = arith.shli %1, %64 : vector<256x128xi32>
    %66 = tpu.bitcast %65 : vector<256x128xi32> -> vector<256x128xi32>
    %c28_i32_20 = arith.constant 28 : i32
    %67 = vector.broadcast %c28_i32_20 : i32 to vector<256x128xi32>
    %68 = arith.shrsi %66, %67 : vector<256x128xi32>
    %69 = arith.sitofp %68 : vector<256x128xi32> to vector<256x128xbf16>
    %c0_21 = arith.constant 0 : index
    %c768 = arith.constant 768 : index
    %70 = vector.load %arg3[%c0_21, %c768] : memref<16x2048xbf16, #tpu.memory_space<vmem>>, vector<16x256xbf16>
    %71 = vector.extract_strided_slice %70 {offsets = [0, 0], sizes = [16, 128], strides = [1, 1]} : vector<16x256xbf16> to vector<16x128xbf16>
    %72 = vector.extract_strided_slice %69 {offsets = [0, 0], sizes = [128, 128], strides = [1, 1]} : vector<256x128xbf16> to vector<128x128xbf16>
    %cst_22 = arith.constant dense<0.000000e+00> : vector<16x128xf32>
    %73 = tpu.matmul %71, %72, %cst_22 {dimension_numbers = #tpu.dot_dimension_numbers<[1], [0], [0], [1], [0, 0, 1, 1], [], []>} : vector<16x128xbf16>, vector<128x128xbf16>, vector<16x128xf32> -> vector<16x128xf32>
    %c6 = arith.constant 6 : index
    %c0_23 = arith.constant 0 : index
    %74 = vector.load %arg6[%c6, %c0_23] : memref<16x128xf32, #tpu.memory_space<vmem>>, vector<1x128xf32>
    %75 = vector.broadcast %74 : vector<1x128xf32> to vector<16x128xf32>
    %76 = arith.mulf %73, %75 : vector<16x128xf32>
    %77 = arith.addf %63, %76 : vector<16x128xf32>
    %78 = vector.extract_strided_slice %70 {offsets = [0, 128], sizes = [16, 128], strides = [1, 1]} : vector<16x256xbf16> to vector<16x128xbf16>
    %79 = vector.extract_strided_slice %69 {offsets = [128, 0], sizes = [128, 128], strides = [1, 1]} : vector<256x128xbf16> to vector<128x128xbf16>
    %cst_24 = arith.constant dense<0.000000e+00> : vector<16x128xf32>
    %80 = tpu.matmul %78, %79, %cst_24 {dimension_numbers = #tpu.dot_dimension_numbers<[1], [0], [0], [1], [0, 0, 1, 1], [], []>} : vector<16x128xbf16>, vector<128x128xbf16>, vector<16x128xf32> -> vector<16x128xf32>
    %c7 = arith.constant 7 : index
    %c0_25 = arith.constant 0 : index
    %81 = vector.load %arg6[%c7, %c0_25] : memref<16x128xf32, #tpu.memory_space<vmem>>, vector<1x128xf32>
    %82 = vector.broadcast %81 : vector<1x128xf32> to vector<16x128xf32>
    %83 = arith.mulf %80, %82 : vector<16x128xf32>
    %84 = arith.addf %77, %83 : vector<16x128xf32>
    %c12_i32 = arith.constant 12 : i32
    %85 = vector.broadcast %c12_i32 : i32 to vector<256x128xi32>
    %86 = arith.shli %1, %85 : vector<256x128xi32>
    %87 = tpu.bitcast %86 : vector<256x128xi32> -> vector<256x128xi32>
    %c28_i32_26 = arith.constant 28 : i32
    %88 = vector.broadcast %c28_i32_26 : i32 to vector<256x128xi32>
    %89 = arith.shrsi %87, %88 : vector<256x128xi32>
    %90 = arith.sitofp %89 : vector<256x128xi32> to vector<256x128xbf16>
    %c0_27 = arith.constant 0 : index
    %c1024 = arith.constant 1024 : index
    %91 = vector.load %arg3[%c0_27, %c1024] : memref<16x2048xbf16, #tpu.memory_space<vmem>>, vector<16x256xbf16>
    %92 = vector.extract_strided_slice %91 {offsets = [0, 0], sizes = [16, 128], strides = [1, 1]} : vector<16x256xbf16> to vector<16x128xbf16>
    %93 = vector.extract_strided_slice %90 {offsets = [0, 0], sizes = [128, 128], strides = [1, 1]} : vector<256x128xbf16> to vector<128x128xbf16>
    %cst_28 = arith.constant dense<0.000000e+00> : vector<16x128xf32>
    %94 = tpu.matmul %92, %93, %cst_28 {dimension_numbers = #tpu.dot_dimension_numbers<[1], [0], [0], [1], [0, 0, 1, 1], [], []>} : vector<16x128xbf16>, vector<128x128xbf16>, vector<16x128xf32> -> vector<16x128xf32>
    %c8 = arith.constant 8 : index
    %c0_29 = arith.constant 0 : index
    %95 = vector.load %arg6[%c8, %c0_29] : memref<16x128xf32, #tpu.memory_space<vmem>>, vector<1x128xf32>
    %96 = vector.broadcast %95 : vector<1x128xf32> to vector<16x128xf32>
    %97 = arith.mulf %94, %96 : vector<16x128xf32>
    %98 = arith.addf %84, %97 : vector<16x128xf32>
    %99 = vector.extract_strided_slice %91 {offsets = [0, 128], sizes = [16, 128], strides = [1, 1]} : vector<16x256xbf16> to vector<16x128xbf16>
    %100 = vector.extract_strided_slice %90 {offsets = [128, 0], sizes = [128, 128], strides = [1, 1]} : vector<256x128xbf16> to vector<128x128xbf16>
    %cst_30 = arith.constant dense<0.000000e+00> : vector<16x128xf32>
    %101 = tpu.matmul %99, %100, %cst_30 {dimension_numbers = #tpu.dot_dimension_numbers<[1], [0], [0], [1], [0, 0, 1, 1], [], []>} : vector<16x128xbf16>, vector<128x128xbf16>, vector<16x128xf32> -> vector<16x128xf32>
    %c9 = arith.constant 9 : index
    %c0_31 = arith.constant 0 : index
    %102 = vector.load %arg6[%c9, %c0_31] : memref<16x128xf32, #tpu.memory_space<vmem>>, vector<1x128xf32>
    %103 = vector.broadcast %102 : vector<1x128xf32> to vector<16x128xf32>
    %104 = arith.mulf %101, %103 : vector<16x128xf32>
    %105 = arith.addf %98, %104 : vector<16x128xf32>
    %c8_i32 = arith.constant 8 : i32
    %106 = vector.broadcast %c8_i32 : i32 to vector<256x128xi32>
    %107 = arith.shli %1, %106 : vector<256x128xi32>
    %108 = tpu.bitcast %107 : vector<256x128xi32> -> vector<256x128xi32>
    %c28_i32_32 = arith.constant 28 : i32
    %109 = vector.broadcast %c28_i32_32 : i32 to vector<256x128xi32>
    %110 = arith.shrsi %108, %109 : vector<256x128xi32>
    %111 = arith.sitofp %110 : vector<256x128xi32> to vector<256x128xbf16>
    %c0_33 = arith.constant 0 : index
    %c1280 = arith.constant 1280 : index
    %112 = vector.load %arg3[%c0_33, %c1280] : memref<16x2048xbf16, #tpu.memory_space<vmem>>, vector<16x256xbf16>
    %113 = vector.extract_strided_slice %112 {offsets = [0, 0], sizes = [16, 128], strides = [1, 1]} : vector<16x256xbf16> to vector<16x128xbf16>
    %114 = vector.extract_strided_slice %111 {offsets = [0, 0], sizes = [128, 128], strides = [1, 1]} : vector<256x128xbf16> to vector<128x128xbf16>
    %cst_34 = arith.constant dense<0.000000e+00> : vector<16x128xf32>
    %115 = tpu.matmul %113, %114, %cst_34 {dimension_numbers = #tpu.dot_dimension_numbers<[1], [0], [0], [1], [0, 0, 1, 1], [], []>} : vector<16x128xbf16>, vector<128x128xbf16>, vector<16x128xf32> -> vector<16x128xf32>
    %c10 = arith.constant 10 : index
    %c0_35 = arith.constant 0 : index
    %116 = vector.load %arg6[%c10, %c0_35] : memref<16x128xf32, #tpu.memory_space<vmem>>, vector<1x128xf32>
    %117 = vector.broadcast %116 : vector<1x128xf32> to vector<16x128xf32>
    %118 = arith.mulf %115, %117 : vector<16x128xf32>
    %119 = arith.addf %105, %118 : vector<16x128xf32>
    %120 = vector.extract_strided_slice %112 {offsets = [0, 128], sizes = [16, 128], strides = [1, 1]} : vector<16x256xbf16> to vector<16x128xbf16>
    %121 = vector.extract_strided_slice %111 {offsets = [128, 0], sizes = [128, 128], strides = [1, 1]} : vector<256x128xbf16> to vector<128x128xbf16>
    %cst_36 = arith.constant dense<0.000000e+00> : vector<16x128xf32>
    %122 = tpu.matmul %120, %121, %cst_36 {dimension_numbers = #tpu.dot_dimension_numbers<[1], [0], [0], [1], [0, 0, 1, 1], [], []>} : vector<16x128xbf16>, vector<128x128xbf16>, vector<16x128xf32> -> vector<16x128xf32>
    %c11 = arith.constant 11 : index
    %c0_37 = arith.constant 0 : index
    %123 = vector.load %arg6[%c11, %c0_37] : memref<16x128xf32, #tpu.memory_space<vmem>>, vector<1x128xf32>
    %124 = vector.broadcast %123 : vector<1x128xf32> to vector<16x128xf32>
    %125 = arith.mulf %122, %124 : vector<16x128xf32>
    %126 = arith.addf %119, %125 : vector<16x128xf32>
    %c4_i32 = arith.constant 4 : i32
    %127 = vector.broadcast %c4_i32 : i32 to vector<256x128xi32>
    %128 = arith.shli %1, %127 : vector<256x128xi32>
    %129 = tpu.bitcast %128 : vector<256x128xi32> -> vector<256x128xi32>
    %c28_i32_38 = arith.constant 28 : i32
    %130 = vector.broadcast %c28_i32_38 : i32 to vector<256x128xi32>
    %131 = arith.shrsi %129, %130 : vector<256x128xi32>
    %132 = arith.sitofp %131 : vector<256x128xi32> to vector<256x128xbf16>
    %c0_39 = arith.constant 0 : index
    %c1536 = arith.constant 1536 : index
    %133 = vector.load %arg3[%c0_39, %c1536] : memref<16x2048xbf16, #tpu.memory_space<vmem>>, vector<16x256xbf16>
    %134 = vector.extract_strided_slice %133 {offsets = [0, 0], sizes = [16, 128], strides = [1, 1]} : vector<16x256xbf16> to vector<16x128xbf16>
    %135 = vector.extract_strided_slice %132 {offsets = [0, 0], sizes = [128, 128], strides = [1, 1]} : vector<256x128xbf16> to vector<128x128xbf16>
    %cst_40 = arith.constant dense<0.000000e+00> : vector<16x128xf32>
    %136 = tpu.matmul %134, %135, %cst_40 {dimension_numbers = #tpu.dot_dimension_numbers<[1], [0], [0], [1], [0, 0, 1, 1], [], []>} : vector<16x128xbf16>, vector<128x128xbf16>, vector<16x128xf32> -> vector<16x128xf32>
    %c12 = arith.constant 12 : index
    %c0_41 = arith.constant 0 : index
    %137 = vector.load %arg6[%c12, %c0_41] : memref<16x128xf32, #tpu.memory_space<vmem>>, vector<1x128xf32>
    %138 = vector.broadcast %137 : vector<1x128xf32> to vector<16x128xf32>
    %139 = arith.mulf %136, %138 : vector<16x128xf32>
    %140 = arith.addf %126, %139 : vector<16x128xf32>
    %141 = vector.extract_strided_slice %133 {offsets = [0, 128], sizes = [16, 128], strides = [1, 1]} : vector<16x256xbf16> to vector<16x128xbf16>
    %142 = vector.extract_strided_slice %132 {offsets = [128, 0], sizes = [128, 128], strides = [1, 1]} : vector<256x128xbf16> to vector<128x128xbf16>
    %cst_42 = arith.constant dense<0.000000e+00> : vector<16x128xf32>
    %143 = tpu.matmul %141, %142, %cst_42 {dimension_numbers = #tpu.dot_dimension_numbers<[1], [0], [0], [1], [0, 0, 1, 1], [], []>} : vector<16x128xbf16>, vector<128x128xbf16>, vector<16x128xf32> -> vector<16x128xf32>
    %c13 = arith.constant 13 : index
    %c0_43 = arith.constant 0 : index
    %144 = vector.load %arg6[%c13, %c0_43] : memref<16x128xf32, #tpu.memory_space<vmem>>, vector<1x128xf32>
    %145 = vector.broadcast %144 : vector<1x128xf32> to vector<16x128xf32>
    %146 = arith.mulf %143, %145 : vector<16x128xf32>
    %147 = arith.addf %140, %146 : vector<16x128xf32>
    %c28_i32_44 = arith.constant 28 : i32
    %148 = vector.broadcast %c28_i32_44 : i32 to vector<256x128xi32>
    %149 = arith.shrsi %0, %148 : vector<256x128xi32>
    %150 = arith.sitofp %149 : vector<256x128xi32> to vector<256x128xbf16>
    %c0_45 = arith.constant 0 : index
    %c1792 = arith.constant 1792 : index
    %151 = vector.load %arg3[%c0_45, %c1792] : memref<16x2048xbf16, #tpu.memory_space<vmem>>, vector<16x256xbf16>
    %152 = vector.extract_strided_slice %151 {offsets = [0, 0], sizes = [16, 128], strides = [1, 1]} : vector<16x256xbf16> to vector<16x128xbf16>
    %153 = vector.extract_strided_slice %150 {offsets = [0, 0], sizes = [128, 128], strides = [1, 1]} : vector<256x128xbf16> to vector<128x128xbf16>
    %cst_46 = arith.constant dense<0.000000e+00> : vector<16x128xf32>
    %154 = tpu.matmul %152, %153, %cst_46 {dimension_numbers = #tpu.dot_dimension_numbers<[1], [0], [0], [1], [0, 0, 1, 1], [], []>} : vector<16x128xbf16>, vector<128x128xbf16>, vector<16x128xf32> -> vector<16x128xf32>
    %c14 = arith.constant 14 : index
    %c0_47 = arith.constant 0 : index
    %155 = vector.load %arg6[%c14, %c0_47] : memref<16x128xf32, #tpu.memory_space<vmem>>, vector<1x128xf32>
    %156 = vector.broadcast %155 : vector<1x128xf32> to vector<16x128xf32>
    %157 = arith.mulf %154, %156 : vector<16x128xf32>
    %158 = arith.addf %147, %157 : vector<16x128xf32>
    %159 = vector.extract_strided_slice %151 {offsets = [0, 128], sizes = [16, 128], strides = [1, 1]} : vector<16x256xbf16> to vector<16x128xbf16>
    %160 = vector.extract_strided_slice %150 {offsets = [128, 0], sizes = [128, 128], strides = [1, 1]} : vector<256x128xbf16> to vector<128x128xbf16>
    %cst_48 = arith.constant dense<0.000000e+00> : vector<16x128xf32>
    %161 = tpu.matmul %159, %160, %cst_48 {dimension_numbers = #tpu.dot_dimension_numbers<[1], [0], [0], [1], [0, 0, 1, 1], [], []>} : vector<16x128xbf16>, vector<128x128xbf16>, vector<16x128xf32> -> vector<16x128xf32>
    %c15 = arith.constant 15 : index
    %c0_49 = arith.constant 0 : index
    %162 = vector.load %arg6[%c15, %c0_49] : memref<16x128xf32, #tpu.memory_space<vmem>>, vector<1x128xf32>
    %163 = vector.broadcast %162 : vector<1x128xf32> to vector<16x128xf32>
    %164 = arith.mulf %161, %163 : vector<16x128xf32>
    %165 = arith.addf %158, %164 : vector<16x128xf32>
    %c0_50 = arith.constant 0 : index
    %c0_51 = arith.constant 0 : index
    %166 = vector.load %arg4[%c0_50, %c0_51] : memref<16x1xbf16, #tpu.memory_space<vmem>>, vector<16x1xbf16>
    %167 = arith.extf %166 : vector<16x1xbf16> to vector<16x1xf32>
    %168 = vector.broadcast %167 : vector<16x1xf32> to vector<16x128xf32>
    %169 = arith.mulf %165, %168 : vector<16x128xf32>
    %c0_52 = arith.constant 0 : index
    %c0_53 = arith.constant 0 : index
    %170 = vector.load %arg7[%c0_52, %c0_53] : memref<16x128xbf16, #tpu.memory_space<vmem>>, vector<16x128xbf16>
    %171 = arith.extf %170 : vector<16x128xbf16> to vector<16x128xf32>
    %172 = arith.addf %169, %171 : vector<16x128xf32>
    %c0_54 = arith.constant 0 : index
    %c0_55 = arith.constant 0 : index
    %173 = vector.load %arg8[%c0_54, %c0_55] : memref<1x128xbf16, #tpu.memory_space<vmem>>, vector<1x128xbf16>
    %174 = arith.extf %173 : vector<1x128xbf16> to vector<1x128xf32>
    %175 = vector.broadcast %174 : vector<1x128xf32> to vector<16x128xf32>
    %176 = arith.addf %172, %175 : vector<16x128xf32>
    %177 = arith.truncf %176 : vector<16x128xf32> to vector<16x128xbf16>
    %c0_56 = arith.constant 0 : index
    %c0_57 = arith.constant 0 : index
    %178 = vector.load %arg9[%c0_56, %c0_57] : memref<16x128xbf16, #tpu.memory_space<vmem>>, vector<16x128xbf16>
    tpu.vector_store %arg9[%c0_56, %c0_57], %177 {strides = array<i32>} : memref<16x128xbf16, #tpu.memory_space<vmem>>, vector<16x128xbf16>,
    return
  }
  func.func @transform_0(%arg0: i32, %arg1: i32, %arg2: i32) -> (i32, i32) {
    %c0_i32 = arith.constant 0 : i32
    %c0_i32_0 = arith.constant 0 : i32
    return %arg0, %c0_i32 : i32, i32
  }
  func.func @transform_1(%arg0: i32, %arg1: i32, %arg2: i32) -> (i32, i32) {
    %c0_i32 = arith.constant 0 : i32
    %c0_i32_0 = arith.constant 0 : i32
    return %arg0, %c0_i32 : i32, i32
  }
  func.func @transform_2(%arg0: i32, %arg1: i32, %arg2: i32) -> (i32, i32) {
    %c0_i32 = arith.constant 0 : i32
    return %arg2, %arg1 : i32, i32
  }
  func.func @transform_3(%arg0: i32, %arg1: i32, %arg2: i32) -> (i32, i32) {
    %c0_i32 = arith.constant 0 : i32
    %c0_i32_0 = arith.constant 0 : i32
    return %c0_i32, %arg1 : i32, i32
  }
  func.func @transform_4(%arg0: i32, %arg1: i32, %arg2: i32) -> (i32, i32) {
    %c0_i32 = arith.constant 0 : i32
    return %arg0, %arg1 : i32, i32
  }
  func.func @transform_5(%arg0: i32, %arg1: i32, %arg2: i32) -> (i32, i32) {
    %c0_i32 = arith.constant 0 : i32
    %c0_i32_0 = arith.constant 0 : i32
    return %c0_i32, %arg1 : i32, i32
  }
  func.func @transform_6(%arg0: i32, %arg1: i32, %arg2: i32) -> (i32, i32) {
    %c0_i32 = arith.constant 0 : i32
    return %arg0, %arg1 : i32, i32
  }
}

</mosaic_0001>

<bundles_post_ra>
// kernel: tpu_custom_call.1
= control target key start
LH: loop header
LB: loop body
LE: loop exit
PB: predicated region body
PF: predicated region fallthrough
CT: control target
= control target key end

     0   :  { %s4069_s0 = inlined_call_operand.hbm [shape: bf16[16,2048], index: 0, kind: input, shape index: {}]   ;;  %s4070_s1 = inlined_call_operand.vmem [shape: bf16[16,1], index: 1, kind: input, shape index: {}]   ;;  %s4071_s2 = inlined_call_operand.hbm [shape: s32[256,256], index: 2, kind: input, shape index: {}]   ;;  %s4072_s3 = inlined_call_operand.hbm [shape: f32[16,256], index: 3, kind: input, shape index: {}]   ;;  %s4073_s4 = inlined_call_operand.hbm [shape: bf16[16,256], index: 4, kind: input, shape index: {}]   ;;  %s4074_s5 = inlined_call_operand.vmem [shape: bf16[1,256], index: 5, kind: input, shape index: {}]   ;;  %s4075_s6 = inlined_call_operand.hbm [shape: bf16[16,256], index: 6, kind: output, shape index: {}]  }
   0x1   :  { %4089 = sst [smem:[#allocation23_spill]] %s4069_s0 }
   0x2   :  { %4090 = sst [smem:[#allocation24_spill]] %s4071_s2 }
   0x3   :  { %4091 = sst [smem:[#allocation25_spill]] %s4072_s3 }
   0x4   :  { %4092 = sst [smem:[#allocation26_spill]] %s4075_s6 }
   0x5   :  { %11 = vsyncpa [#allocation4], 0 }
   0x6   :  { %12 = vsyncpa [#allocation7], 0 }
   0x7   :  { %14 = vsyncpa [#allocation7 + $0x1], 0 }
   0x8   :  { %15 = vsyncpa [#allocation10], 0 }
   0x9   :  { %17 = vsyncpa [#allocation10 + $0x1], 0 }
   0xa   :  { %18 = vsyncpa [#allocation5], 0 }
   0xb   :  { %20 = vsyncpa [#allocation5 + $0x1], 0  ;;  %s3390_s21 = smov 0   ;;  %s3392_s22 = smov 0  }
   0xc   :  { %s3394_s23 = smov 0   ;;  %s3396_s24 = smov 0  }
   0xd   :  { %s3398_s25 = smov 0   ;;  %s3400_s26 = smov 0  }
   0xe LB: > { %4093 = sst [smem:[#allocation16_spill]] %s3322_s21  ;;  %s41_s27 = sadd.s32 1, %s3338_s25  ;;  %s3342_s26 = sphi %s3400_s26, %s26_s26   ;;  %s3338_s25 = sphi %s3398_s25, %s4123_s25   ;;  %s3334_s24 = sphi %s3396_s24, %s4122_s24   ;;  %s3330_s23 = sphi %s3394_s23, %s4118_s23   ;;  %s3326_s22 = sphi %s3392_s22, %s4121_s22   ;;  %s3322_s21 = sphi %s3390_s21, %s4120_s21  }
   0xf   : > { %4094 = sst [smem:[#allocation17_spill]] %s3330_s23  ;;  %s106_s28 = sadd.s32 1, %s3330_s23 }
  0x10   : > { %4095 = sst [smem:[#allocation18_spill]] %s3342_s26  ;;  %p43_p0 = scmp.ge.s32.totalorder %s41_s27, 2 }
  0x11   : > { %p113_p1 = scmp.ne.s32.totalorder %s3330_s23, %s3326_s22  ;;  %p114_p2 = scmp.eq.s32.totalorder %s3342_s26, 0 }
  0x12   : > { %p2875_p3 = scmp.ge.s32.totalorder %s3342_s26, 2  ;;  %s4125_s27 = smov (%p43_p0, %s41_s27), 0 }
  0x13   : > { %4096 = sst [smem:[#allocation19_spill]] %s4125_s27  ;;  %p3431_p4 = por %p114_p2, %p113_p1 }
  0x14   : > { %p3016_p5 = scmp.lt.s32.totalorder %s3342_s26, 2  ;;  %s102_s30 = ssub.s32 %s3338_s25, %s4125_s27 }
  0x15   : > { %s278_s7 = sand.u32 1, %s3342_s26   ;;  %p104_p6 = scmp.eq.s32.totalorder %s102_s30, 0 }
  0x16   : > { %s3440_s8 = sand.u32 1, %s3330_s23   ;;  %s2877_s9 = sshll.u32 %s3338_s25, 3 }
  0x17   : > { %s3444_s10 = scalar_select %p104_p6, %s3330_s23, %s106_s28  }
  0x18   : > { %s2876_s11 = sshll.u32 %s3440_s8, 8  ;;  %s4099_s2 = sld [smem:[#allocation24_spill]] }
  0x19   : > { %4098 = sst [smem:[#allocation20_spill]] %s3444_s10  ;;  %s282_s16 = scalar_lea.vmem [#allocation6], %s2876_s11 }
  0x1a   : > { %s292_s17 = sshll.u32 %s282_s16, 4  ;;  %p3454_p7 = pnand %p3016_p5, %p3431_p4  ;;  %s293_s17 = int_to_ptr.vmem [resolvable:$true] %s292_s17 }
  0x1b   : > { %s3458_s19 = scalar_lea.sflag [#allocation7], %s278_s7  ;;  %s4076_s20 = smov 256  }
  0x1c   : > { %s4077_s28 = smov 128   ;;  %s4079_s30 = smov 8  }
  0x1d   : > { %s4101_s3 = sld [smem:[#allocation25_spill]]  ;;  %s3472_s7 = sadd.s32 4294967295, %s3342_s26  }
  0x1e   : > { %s289_s14 = scalar_lea.hbm %s4099_s2, %s2877_s9  ;;  %p119_p8 = scmp.ne.s32.totalorder %s3326_s22, %s3322_s21 }
  0x1f   : > { %s290_s15 = sshll.u32 %s289_s14, 4  ;;  %s2871_s14 = sadd.s32 4294967294, %s3342_s26   ;;  %s291_s15 = int_to_ptr.hbm [resolvable:$true] %s290_s15 }
  0x20   : > { %3004 = dma.hbm_to_vmem [thread:$0]  (!%p3454_p7), %s291_s15, 4096, %s293_s17, %s3458_s19, %s4076_s20, %s4077_s28, %s4079_s30  }
  0x21   : > { %p120_p9 = scmp.eq.s32.totalorder %s3472_s7, 0  ;;  %p225_p10 = scmp.eq.s32.totalorder %s3472_s7, 1 }
  0x22   : > { %p231_p11 = scmp.eq.s32.totalorder %s2871_s14, 1  ;;  %p2872_p12 = scmp.ge.s32.totalorder %s3342_s26, 1 }
  0x23   : > { %s310_s12 = scalar_lea.hbm %s4101_s3, %s2877_s9  ;;  %p3482_p13 = por %p120_p9, %p119_p8 }
  0x24   : > { %s311_s13 = sshll.u32 %s310_s12, 4  ;;  %p3489_p0 = por %p225_p10, %p113_p1  ;;  %s3469_s13 = int_to_ptr.hbm [resolvable:$true] %s311_s13 }
  0x25   : > { %p3493_p2 = por %p231_p11, %p119_p8  ;;  %p238_p4 = scmp.lt.s32.totalorder %s3342_s26, 3 }
  0x26   : > { %s4103_s9 = scalar_select %p3489_p0, 1, 0 }
  0x27   : > { %s4105_s16 = scalar_select %p3493_p2, 1, 0 }
  0x28   : > { %4104 = sst [smem:[#allocation21_spill]] %s4103_s9  ;;  %p3501_p5 = pnand %p2872_p12, %p238_p4 }
  0x29   : > { %4106 = sst [smem:[#allocation22_spill]] %s4105_s16  ;;  %s3347_s14 = smov [#allocation3]  }
  0x2a   : > { %s4107_s0 = sld [smem:[#allocation23_spill]]  ;;  %p2997_p1 = pneg %p3501_p5 }
  0x2b   : > { %s255_s20 = sshll.u32 %s3347_s14, 4  ;;  %s2878_s17 = sshll.u32 %s3440_s8, 4  ;;  %s256_s20 = int_to_ptr.vmem [resolvable:$true] %s255_s20 }
  0x2c   : > { %p2998_p6 = pnand %p2997_p1, %p120_p9  ;;  %s306_s29 = scalar_lea.vmem [#allocation8], %s2878_s17 }
  0x2d   : > { %s313_s28 = sshll.u32 %s306_s29, 4  ;;  %s3348_s30 = smov 1024   ;;  %s314_s28 = int_to_ptr.vmem [resolvable:$true] %s313_s28 }
  0x2e   : > { %s2880_s2 = sshll.u32 %s3440_s8, 3  ;;  %s4109_s3 = smov 8  }
  0x2f   : > { %s4110_s27 = smov 128   ;;  %s4111_s10 = smov 256  }
  0x30   : > { %s253_s11 = sshll.u32 %s4107_s0, 4  ;;  %s3349_s0 = smov 64   ;;  %s254_s11 = int_to_ptr.hbm [resolvable:$true] %s253_s11 }
  0x31   : > { %3000 = dma.hbm_to_vmem [thread:$0]  (!%p2998_p6), %s254_s11, 2048, %s256_s20, [#allocation4], %s3348_s30, %s3348_s30, %s3349_s0  }
  0x32   : > { %3007 = dma.hbm_to_vmem [thread:$0]  (!%p3454_p7), %s3469_s13, 256, %s314_s28, %s3458_s19, %s4111_s10, %s4110_s27, %s4109_s3  }
  0x33   : > { %s2881_s23 = sshll.u32 %s3338_s25, 2  ;;  %s327_s21 = scalar_lea.vmem [#allocation9], %s2880_s2 }
  0x34   : > { %s334_s16 = scalar_lea.hbm %s4073_s4, %s2881_s23  ;;  %s337_s9 = sshll.u32 %s327_s21, 4  ;;  %s338_s9 = int_to_ptr.vmem [resolvable:$true] %s337_s9 }
  0x35   : > { %s335_s17 = sshll.u32 %s334_s16, 4  ;;  %s324_s29 = scalar_lea.sflag [#allocation10], %s3440_s8  ;;  %s336_s17 = int_to_ptr.hbm [resolvable:$true] %s335_s17 }
  0x36   : > { %s3350_s6 = smov 4   ;;  %355 = sbr.rel (%p3501_p5) target bundleno = 580 (0x244), region = 44 }
  0x37   : > { %3010 = dma.hbm_to_vmem [thread:$0]  (!%p3454_p7), %s336_s17, 128, %s338_s9, %s324_s29, %s4110_s27, %s3349_s0, %s3350_s6  }
  0x3b   : > { %3305 = dma.done.wait (%p120_p9), [#allocation4], 2048  }
  0x3c   : > { %3307 = vsyncadd (%p120_p9), [#allocation4], 4294965248  ;;  %s362_s2 = sand.u32 1, %s3472_s7   ;;  %s3534_s3 = sand.u32 1, %s3326_s22  }
  0x3d   : > { %s2884_s21 = sshll.u32 %s3534_s3, 8  ;;  %s363_s23 = scalar_lea.sflag [#allocation7], %s362_s2 }
  0x3e   : > { %s3537_s26 = scalar_lea.vmem [#allocation6], %s2884_s21 }
  0x3f   : > { %3309 = dma.done.wait (%p3482_p13), %s363_s23, 4352  }
  0x40   : > { %3311 = vsyncadd (%p3482_p13), %s363_s23, 4294962944  ;;  %s2885_s0 = sshll.u32 %s3534_s3, 4  ;;  %s2886_s6 = sshll.u32 %s3534_s3, 3 }
  0x41   : > { %s3545_s27 = scalar_lea.vmem [#allocation8], %s2885_s0  ;;  %s383_s8 = scalar_lea.sflag [#allocation10], %s3534_s3 }
  0x42   : > { %s3550_s10 = scalar_lea.vmem [#allocation9], %s2886_s6 }
  0x43   : > { %3313 = dma.done.wait (%p3482_p13), %s383_s8, 128  }
  0x44   : > { %3315 = vsyncadd (%p3482_p13), %s383_s8, 4294967168  ;;  %v3557_v0 = vld [vmem:[%s3537_s26 + $0x70] sm:$0xff]  ;;  %v3560_v1 = vld [vmem:[%s3537_s26 + $0x78] sm:$0xff]  ;;  %p443_p7 = scmp.lt.s32.totalorder %s3334_s24, 1  ;;  %s2953_s7 = sshll.u32 %s3334_s24, 2 }
  0x45   : > { %v3563_v2 = vld [vmem:[%s3537_s26 + $0xf0] sm:$0xff]  ;;  %v493_v3 = vshll.u32 %v3557_v0, 28  ;;  %v494_v4 = vshll.u32 %v3560_v1, 28  ;;  %v3568_v5 = vld [vmem:[%s3537_s26 + $0xf8] sm:$0xff]  ;;  %v767_v7 = vshll.u32 %v3557_v0, 24  ;;  %v768_v9 = vshll.u32 %v3560_v1, 24 }
  0x46   : > { %v509_v6 = vshll.u32 %v3563_v2, 28  ;;  %v510_v8 = vshll.u32 %v3568_v5, 28  ;;  %v783_v10 = vshll.u32 %v3563_v2, 24  ;;  %v784_v11 = vshll.u32 %v3568_v5, 24  ;;  %v3577_v28 = vld [vmem:[%s3537_s26 + $0x60] sm:$0xff]  ;;  %v3580_v29 = vld [vmem:[%s3537_s26 + $0x68] sm:$0xff] }
  0x47   : > { %v525_v12 = vshra.s32 %v493_v3, 28  ;;  %v526_v13 = vshra.s32 %v494_v4, 28  ;;  %v799_v15 = vshra.s32 %v767_v7, 28  ;;  %v800_v17 = vshra.s32 %v768_v9, 28  ;;  %v3583_v30 = vld [vmem:[%s3537_s26 + $0xe0] sm:$0xff]  ;;  %v3586_v43 = vld [vmem:[%s3537_s26 + $0xe8] sm:$0xff] }
  0x48   : > { %v541_v14 = vshra.s32 %v509_v6, 28  ;;  %v542_v16 = vshra.s32 %v510_v8, 28  ;;  %v815_v18 = vshra.s32 %v783_v10, 28  ;;  %v816_v19 = vshra.s32 %v784_v11, 28  ;;  %s444_s20 = scalar_select %p443_p7, %s3334_s24, 1 }
  0x49   : > { %v557_v20 = vcvt.s32.f32 %v525_v12  ;;  %v558_v21 = vcvt.s32.f32 %v526_v13  ;;  %v831_v23 = vcvt.s32.f32 %v799_v15  ;;  %v832_v25 = vcvt.s32.f32 %v800_v17  ;;  %s4112_s16 = sld [smem:[#allocation26_spill]]  ;;  %s433_s14 = scalar_lea.vmem [#allocation11], %s2886_s6 }
  0x4a   : > { %v573_v22 = vcvt.s32.f32 %v541_v14  ;;  %v574_v24 = vcvt.s32.f32 %v542_v16  ;;  %v847_v26 = vcvt.s32.f32 %v815_v18  ;;  %v848_v27 = vcvt.s32.f32 %v816_v19  ;;  %s445_s13 = scalar_lea.vmem %s4074_s5, %s444_s20  ;;  %s2699_s17 = sshll.u32 %s433_s14, 4  ;;  %s2700_s17 = int_to_ptr.vmem [resolvable:$true] %s2699_s17 }
  0x4b   : > { %v589_v31 = vpack.c.bf16 %v557_v20, %v557_v20  ;;  %v590_v32 = vpack.c.bf16 %v558_v21, %v558_v21  ;;  %v863_v34 = vpack.c.bf16 %v831_v23, %v831_v23  ;;  %v864_v36 = vpack.c.bf16 %v832_v25, %v832_v25  ;;  %v3597_v20 = vld [vmem:[%s3537_s26 + $0x50] sm:$0xff]  ;;  %v3600_v21 = vld [vmem:[%s3537_s26 + $0x58] sm:$0xff]  ;;  %s2685_s24 = scalar_lea.sflag [#allocation5], %s3534_s3 }
  0x4c   : > { %v605_v33 = vpack.c.bf16 %v573_v22, %v573_v22  ;;  %v606_v35 = vpack.c.bf16 %v574_v24, %v574_v24  ;;  %v879_v37 = vpack.c.bf16 %v847_v26, %v847_v26  ;;  %v880_v38 = vpack.c.bf16 %v848_v27, %v848_v27 }
  0x4d   : > { %v645_v39 = vunpack.c.l.b16 %v589_v31  ;;  %v646_v40 = vunpack.c.l.b16 %v590_v32  ;;  %v919_v42 = vunpack.c.l.b16 %v863_v34  ;;  %v920_v45 = vunpack.c.l.b16 %v864_v36  ;;  %v3606_v34 = vld [vmem:[%s3537_s26 + $0xd8] sm:$0xff] }
  0x4e   : > { %v715_v41 = vunpack.c.l.b16 %v605_v33  ;;  %v716_v44 = vunpack.c.l.b16 %v606_v35  ;;  %v991_v46 = vunpack.c.l.b16 %v879_v37  ;;  %v992_v47 = vunpack.c.l.b16 %v880_v38  ;;  %v3603_v33 = vld [vmem:[%s3537_s26 + $0xd0] sm:$0xff] }
  0x4f   : > { %v654_v48 = vpack.c.b16 %v646_v40, %v645_v39  ;;  %v491_v49 = vshll.u32 %v3577_v28, 28  ;;  %v492_v50 = vshll.u32 %v3580_v29, 28  ;;  %v507_v51 = vshll.u32 %v3583_v30, 28  ;;  %s2698_s11 = scalar_lea.hbm %s4112_s16, %s2953_s7  ;;  %s3272_s0 = scalar_lea.hbm %s4112_s16, 16 }
  0x50   : > { %v724_v52 = vpack.c.b16 %v716_v44, %v715_v41  ;;  %v928_v53 = vpack.c.b16 %v920_v45, %v919_v42  ;;  %v1000_v54 = vpack.c.b16 %v992_v47, %v991_v46  ;;  %v508_v55 = vshll.u32 %v3586_v43, 28  ;;  %s2701_s29 = sshll.u32 %s2698_s11, 4  ;;  %s2702_s29 = int_to_ptr.hbm [resolvable:$true] %s2701_s29 }
  0x51   : > { %663 = vmatpush.bf16.msra.mxu0 %v654_v48  ;;  %v523_v56 = vshra.s32 %v491_v49, 28  ;;  %v524_v57 = vshra.s32 %v492_v50, 28  ;;  %v539_v58 = vshra.s32 %v507_v51, 28  ;;  %v765_v59 = vshll.u32 %v3577_v28, 24  ;;  %s3266_s2 = sshra.s32 %s2702_s29, 4  ;;  %s3267_s2 = int_to_ptr.hbm [resolvable:$true] %s3266_s2 }
  0x52   : > { %733 = vmatpush.bf16.msra.mxu1 %v724_v52  ;;  %937 = vmatpush.bf16.msra.mxu2 %v928_v53  ;;  %v540_v60 = vshra.s32 %v508_v55, 28  ;;  %v766_v61 = vshll.u32 %v3580_v29, 24  ;;  %v781_v62 = vshll.u32 %v3583_v30, 24  ;;  %v782_v63 = vshll.u32 %v3586_v43, 24  ;;  %s3268_s21 = scalar_lea.hbm %s3267_s2, 8  ;;  %p3273_p11 = scmp.lt.s32.totalorder %s3267_s2, %s4112_s16 }
  0x53   : > { %1009 = vmatpush.bf16.msra.mxu3 %v1000_v54  ;;  %v555_v3 = vcvt.s32.f32 %v523_v56  ;;  %v556_v4 = vcvt.s32.f32 %v524_v57  ;;  %v571_v6 = vcvt.s32.f32 %v539_v58  ;;  %v797_v7 = vshra.s32 %v765_v59, 28  ;;  %p3269_p8 = scmp.ne.s32.totalorder %s3267_s2, %s3268_s21  ;;  %p3274_p12 = scmp.lt.s32.totalorder %s3272_s0, %s3268_s21 }
  0x54   : > { %v572_v8 = vcvt.s32.f32 %v540_v60  ;;  %v798_v9 = vshra.s32 %v766_v61, 28  ;;  %v813_v10 = vshra.s32 %v781_v62, 28  ;;  %v814_v11 = vshra.s32 %v782_v63, 28 }
  0x55   : > { %v587_v12 = vpack.c.bf16 %v555_v3, %v555_v3  ;;  %v588_v13 = vpack.c.bf16 %v556_v4, %v556_v4  ;;  %v603_v14 = vpack.c.bf16 %v571_v6, %v571_v6  ;;  %v829_v15 = vcvt.s32.f32 %v797_v7  ;;  %p3270_p9 = pnand %p3269_p8, %p3489_p0  ;;  %p3275_p13 = por %p3274_p12, %p3273_p11 }
  0x56   : > { %v604_v16 = vpack.c.bf16 %v572_v8, %v572_v8  ;;  %v830_v17 = vcvt.s32.f32 %v798_v9  ;;  %v845_v18 = vcvt.s32.f32 %v813_v10  ;;  %v846_v19 = vcvt.s32.f32 %v814_v11  ;;  %v3617_v8 = vld [vmem:[%s3537_s26 + $0x40] sm:$0xff] }
  0x57   : > { %v643_v22 = vunpack.c.l.b16 %v587_v12  ;;  %v644_v23 = vunpack.c.l.b16 %v588_v13  ;;  %v713_v24 = vunpack.c.l.b16 %v603_v14  ;;  %v861_v25 = vpack.c.bf16 %v829_v15, %v829_v15  ;;  %p3271_p10 = pneg %p3270_p9 }
  0x58   : > { %v714_v26 = vunpack.c.l.b16 %v604_v16  ;;  %v862_v27 = vpack.c.bf16 %v830_v17, %v830_v17  ;;  %v877_v31 = vpack.c.bf16 %v845_v18, %v845_v18  ;;  %v878_v32 = vpack.c.bf16 %v846_v19, %v846_v19  ;;  %v3620_v17 = vld [vmem:[%s3537_s26 + $0x48] sm:$0xff]  ;;  %v3623_v18 = vld [vmem:[%s3537_s26 + $0xc0] sm:$0xff] }
  0x59   : > { %v653_v35 = vpack.c.b16 %v644_v23, %v643_v22  ;;  %v917_v36 = vunpack.c.l.b16 %v861_v25  ;;  %v489_v37 = vshll.u32 %v3597_v20, 28  ;;  %v490_v38 = vshll.u32 %v3600_v21, 28  ;;  %v3627_v25 = vld [vmem:[%s3537_s26 + $0xc8] sm:$0xff]  ;;  %p3276_p4 = pnand %p3275_p13, %p3271_p10 }
  0x5a   : > { %v723_v39 = vpack.c.b16 %v714_v26, %v713_v24  ;;  %v918_v40 = vunpack.c.l.b16 %v862_v27  ;;  %v989_v41 = vunpack.c.l.b16 %v877_v31  ;;  %v990_v42 = vunpack.c.l.b16 %v878_v32 }
  0x5b   : > { %664 = vmatpush.bf16.msra.mxu0 %v653_v35  ;;  %v521_v44 = vshra.s32 %v489_v37, 28  ;;  %v522_v45 = vshra.s32 %v490_v38, 28  ;;  %v505_v46 = vshll.u32 %v3603_v33, 28  ;;  %v506_v47 = vshll.u32 %v3606_v34, 28 }
  0x5c   : > { %734 = vmatpush.bf16.msra.mxu1 %v723_v39  ;;  %v927_v48 = vpack.c.b16 %v918_v40, %v917_v36  ;;  %v999_v49 = vpack.c.b16 %v990_v42, %v989_v41  ;;  %v763_v50 = vshll.u32 %v3597_v20, 24  ;;  %v764_v51 = vshll.u32 %v3600_v21, 24 }
  0x5d   : > { %v553_v52 = vcvt.s32.f32 %v521_v44  ;;  %v554_v53 = vcvt.s32.f32 %v522_v45  ;;  %v537_v54 = vshra.s32 %v505_v46, 28  ;;  %v538_v55 = vshra.s32 %v506_v47, 28 }
  0x5e   : > { %938 = vmatpush.bf16.msra.mxu2 %v927_v48  ;;  %1010 = vmatpush.bf16.msra.mxu3 %v999_v49  ;;  %v795_v56 = vshra.s32 %v763_v50, 28  ;;  %v796_v57 = vshra.s32 %v764_v51, 28  ;;  %v779_v58 = vshll.u32 %v3603_v33, 24  ;;  %v780_v59 = vshll.u32 %v3606_v34, 24 }
  0x5f   : > { %v585_v60 = vpack.c.bf16 %v553_v52, %v553_v52  ;;  %v586_v61 = vpack.c.bf16 %v554_v53, %v554_v53  ;;  %v569_v62 = vcvt.s32.f32 %v537_v54  ;;  %v570_v63 = vcvt.s32.f32 %v538_v55 }
  0x60   : > { %v827_v3 = vcvt.s32.f32 %v795_v56  ;;  %v828_v4 = vcvt.s32.f32 %v796_v57  ;;  %v811_v6 = vshra.s32 %v779_v58, 28  ;;  %v812_v7 = vshra.s32 %v780_v59, 28 }
  0x61   : > { %v641_v9 = vunpack.c.l.b16 %v585_v60  ;;  %v642_v10 = vunpack.c.l.b16 %v586_v61  ;;  %v601_v11 = vpack.c.bf16 %v569_v62, %v569_v62  ;;  %v602_v12 = vpack.c.bf16 %v570_v63, %v570_v63  ;;  %v3637_v60 = vld [vmem:[%s3537_s26 + $0x30] sm:$0xff] }
  0x62   : > { %v859_v13 = vpack.c.bf16 %v827_v3, %v827_v3  ;;  %v860_v14 = vpack.c.bf16 %v828_v4, %v828_v4  ;;  %v843_v15 = vcvt.s32.f32 %v811_v6  ;;  %v844_v16 = vcvt.s32.f32 %v812_v7 }
  0x63   : > { %v652_v19 = vpack.c.b16 %v642_v10, %v641_v9  ;;  %v711_v22 = vunpack.c.l.b16 %v601_v11  ;;  %v712_v23 = vunpack.c.l.b16 %v602_v12  ;;  %v487_v24 = vshll.u32 %v3617_v8, 28  ;;  %v3640_v10 = vld [vmem:[%s3537_s26 + $0x38] sm:$0xff] }
  0x64   : > { %v915_v26 = vunpack.c.l.b16 %v859_v13  ;;  %v916_v27 = vunpack.c.l.b16 %v860_v14  ;;  %v875_v31 = vpack.c.bf16 %v843_v15, %v843_v15  ;;  %v876_v32 = vpack.c.bf16 %v844_v16, %v844_v16 }
  0x65   : > { %665 = vmatpush.bf16.msra.mxu0 %v652_v19  ;;  %v722_v35 = vpack.c.b16 %v712_v23, %v711_v22  ;;  %v488_v36 = vshll.u32 %v3620_v17, 28  ;;  %v519_v37 = vshra.s32 %v487_v24, 28  ;;  %v503_v38 = vshll.u32 %v3623_v18, 28  ;;  %v3644_v23 = vld [vmem:[%s3537_s26 + $0xb0] sm:$0xff]  ;;  %v3647_v24 = vld [vmem:[%s3537_s26 + $0xb8] sm:$0xff] }
  0x66   : > { %v926_v39 = vpack.c.b16 %v916_v27, %v915_v26  ;;  %v987_v40 = vunpack.c.l.b16 %v875_v31  ;;  %v988_v41 = vunpack.c.l.b16 %v876_v32  ;;  %v504_v42 = vshll.u32 %v3627_v25, 28 }
  0x67   : > { %735 = vmatpush.bf16.msra.mxu1 %v722_v35  ;;  %v520_v44 = vshra.s32 %v488_v36, 28  ;;  %v551_v45 = vcvt.s32.f32 %v519_v37  ;;  %v535_v46 = vshra.s32 %v503_v38, 28  ;;  %v761_v47 = vshll.u32 %v3617_v8, 24 }
  0x68   : > { %939 = vmatpush.bf16.msra.mxu2 %v926_v39  ;;  %v998_v48 = vpack.c.b16 %v988_v41, %v987_v40  ;;  %v536_v49 = vshra.s32 %v504_v42, 28  ;;  %v762_v50 = vshll.u32 %v3620_v17, 24  ;;  %v777_v51 = vshll.u32 %v3623_v18, 24 }
  0x69   : > { %v552_v52 = vcvt.s32.f32 %v520_v44  ;;  %v583_v53 = vpack.c.bf16 %v551_v45, %v551_v45  ;;  %v567_v54 = vcvt.s32.f32 %v535_v46  ;;  %v793_v55 = vshra.s32 %v761_v47, 28 }
  0x6a   : > { %1011 = vmatpush.bf16.msra.mxu3 %v998_v48  ;;  %v568_v56 = vcvt.s32.f32 %v536_v49  ;;  %v794_v57 = vshra.s32 %v762_v50, 28  ;;  %v778_v58 = vshll.u32 %v3627_v25, 24  ;;  %v809_v59 = vshra.s32 %v777_v51, 28 }
  0x6b   : > { %v584_v61 = vpack.c.bf16 %v552_v52, %v552_v52  ;;  %v639_v62 = vunpack.c.l.b16 %v583_v53  ;;  %v599_v63 = vpack.c.bf16 %v567_v54, %v567_v54  ;;  %v825_v3 = vcvt.s32.f32 %v793_v55 }
  0x6c   : > { %v600_v4 = vpack.c.bf16 %v568_v56, %v568_v56  ;;  %v826_v6 = vcvt.s32.f32 %v794_v57  ;;  %v810_v7 = vshra.s32 %v778_v58, 28  ;;  %v841_v9 = vcvt.s32.f32 %v809_v59  ;;  %v3656_v56 = vld [vmem:[%s3537_s26 + $0x20] sm:$0xff] }
  0x6d   : > { %v640_v11 = vunpack.c.l.b16 %v584_v61  ;;  %v709_v12 = vunpack.c.l.b16 %v599_v63  ;;  %v857_v13 = vpack.c.bf16 %v825_v3, %v825_v3  ;;  %v485_v14 = vshll.u32 %v3637_v60, 28 }
  0x6e   : > { %v710_v15 = vunpack.c.l.b16 %v600_v4  ;;  %v858_v16 = vpack.c.bf16 %v826_v6, %v826_v6  ;;  %v842_v19 = vcvt.s32.f32 %v810_v7  ;;  %v873_v22 = vpack.c.bf16 %v841_v9, %v841_v9  ;;  %v3660_v6 = vld [vmem:[%s3537_s26 + $0x28] sm:$0xff] }
  0x6f   : > { %v651_v26 = vpack.c.b16 %v640_v11, %v639_v62  ;;  %v913_v27 = vunpack.c.l.b16 %v857_v13  ;;  %v486_v31 = vshll.u32 %v3640_v10, 28  ;;  %v517_v32 = vshra.s32 %v485_v14, 28 }
  0x70   : > { %v721_v35 = vpack.c.b16 %v710_v15, %v709_v12  ;;  %v914_v36 = vunpack.c.l.b16 %v858_v16  ;;  %v874_v37 = vpack.c.bf16 %v842_v19, %v842_v19  ;;  %v985_v38 = vunpack.c.l.b16 %v873_v22  ;;  %v3664_v19 = vld [vmem:[%s3537_s26 + $0xa0] sm:$0xff] }
  0x71   : > { %666 = vmatpush.bf16.msra.mxu0 %v651_v26  ;;  %v518_v39 = vshra.s32 %v486_v31, 28  ;;  %v549_v40 = vcvt.s32.f32 %v517_v32  ;;  %v501_v41 = vshll.u32 %v3644_v23, 28  ;;  %v502_v42 = vshll.u32 %v3647_v24, 28  ;;  %v3668_v32 = vld [vmem:[%s3537_s26 + $0xa8] sm:$0xff] }
  0x72   : > { %736 = vmatpush.bf16.msra.mxu1 %v721_v35  ;;  %v925_v44 = vpack.c.b16 %v914_v36, %v913_v27  ;;  %v986_v45 = vunpack.c.l.b16 %v874_v37  ;;  %v759_v46 = vshll.u32 %v3637_v60, 24  ;;  %v760_v47 = vshll.u32 %v3640_v10, 24 }
  0x73   : > { %v550_v48 = vcvt.s32.f32 %v518_v39  ;;  %v581_v49 = vpack.c.bf16 %v549_v40, %v549_v40  ;;  %v533_v50 = vshra.s32 %v501_v41, 28  ;;  %v534_v51 = vshra.s32 %v502_v42, 28 }
  0x74   : > { %940 = vmatpush.bf16.msra.mxu2 %v925_v44  ;;  %v997_v52 = vpack.c.b16 %v986_v45, %v985_v38  ;;  %v791_v53 = vshra.s32 %v759_v46, 28  ;;  %v792_v54 = vshra.s32 %v760_v47, 28  ;;  %v775_v55 = vshll.u32 %v3644_v23, 24 }
  0x75   : > { %v582_v57 = vpack.c.bf16 %v550_v48, %v550_v48  ;;  %v637_v58 = vunpack.c.l.b16 %v581_v49  ;;  %v565_v59 = vcvt.s32.f32 %v533_v50  ;;  %v566_v61 = vcvt.s32.f32 %v534_v51 }
  0x76   : > { %1012 = vmatpush.bf16.msra.mxu3 %v997_v52  ;;  %v823_v62 = vcvt.s32.f32 %v791_v53  ;;  %v824_v63 = vcvt.s32.f32 %v792_v54  ;;  %v776_v3 = vshll.u32 %v3647_v24, 24  ;;  %v807_v4 = vshra.s32 %v775_v55, 28 }
  0x77   : > { %v638_v7 = vunpack.c.l.b16 %v582_v57  ;;  %v597_v9 = vpack.c.bf16 %v565_v59, %v565_v59  ;;  %v598_v11 = vpack.c.bf16 %v566_v61, %v566_v61  ;;  %v483_v12 = vshll.u32 %v3656_v56, 28 }
  0x78   : > { %v855_v13 = vpack.c.bf16 %v823_v62, %v823_v62  ;;  %v856_v14 = vpack.c.bf16 %v824_v63, %v824_v63  ;;  %v808_v15 = vshra.s32 %v776_v3, 28  ;;  %v839_v16 = vcvt.s32.f32 %v807_v4 }
  0x79   : > { %v650_v22 = vpack.c.b16 %v638_v7, %v637_v58  ;;  %v707_v26 = vunpack.c.l.b16 %v597_v9  ;;  %v708_v27 = vunpack.c.l.b16 %v598_v11  ;;  %v484_v31 = vshll.u32 %v3660_v6, 28  ;;  %v3677_v7 = vld [vmem:[%s3537_s26 + $0x10] sm:$0xff] }
  0x7a   : > { %v911_v35 = vunpack.c.l.b16 %v855_v13  ;;  %v912_v36 = vunpack.c.l.b16 %v856_v14  ;;  %v840_v37 = vcvt.s32.f32 %v808_v15  ;;  %v871_v38 = vpack.c.bf16 %v839_v16, %v839_v16 }
  0x7b   : > { %667 = vmatpush.bf16.msra.mxu0 %v650_v22  ;;  %v720_v39 = vpack.c.b16 %v708_v27, %v707_v26  ;;  %v515_v40 = vshra.s32 %v483_v12, 28  ;;  %v516_v41 = vshra.s32 %v484_v31, 28  ;;  %v499_v42 = vshll.u32 %v3664_v19, 28  ;;  %v3680_v26 = vld [vmem:[%s3537_s26 + $0x18] sm:$0xff]  ;;  %v3683_v27 = vld [vmem:[%s3537_s26 + $0x90] sm:$0xff] }
  0x7c   : > { %v924_v44 = vpack.c.b16 %v912_v36, %v911_v35  ;;  %v872_v45 = vpack.c.bf16 %v840_v37, %v840_v37  ;;  %v983_v46 = vunpack.c.l.b16 %v871_v38  ;;  %v500_v47 = vshll.u32 %v3668_v32, 28 }
  0x7d   : > { %737 = vmatpush.bf16.msra.mxu1 %v720_v39  ;;  %v547_v48 = vcvt.s32.f32 %v515_v40  ;;  %v548_v49 = vcvt.s32.f32 %v516_v41  ;;  %v531_v50 = vshra.s32 %v499_v42, 28  ;;  %v757_v51 = vshll.u32 %v3656_v56, 24  ;;  %v3687_v42 = vld [vmem:[%s3537_s26 + $0x98] sm:$0xff] }
  0x7e   : > { %941 = vmatpush.bf16.msra.mxu2 %v924_v44  ;;  %v984_v52 = vunpack.c.l.b16 %v872_v45  ;;  %v532_v53 = vshra.s32 %v500_v47, 28  ;;  %v758_v54 = vshll.u32 %v3660_v6, 24  ;;  %v773_v55 = vshll.u32 %v3664_v19, 24 }
  0x7f   : > { %v579_v57 = vpack.c.bf16 %v547_v48, %v547_v48  ;;  %v580_v58 = vpack.c.bf16 %v548_v49, %v548_v49  ;;  %v563_v59 = vcvt.s32.f32 %v531_v50  ;;  %v789_v61 = vshra.s32 %v757_v51, 28 }
  0x80   : > { %v996_v62 = vpack.c.b16 %v984_v52, %v983_v46  ;;  %v564_v63 = vcvt.s32.f32 %v532_v53  ;;  %v790_v3 = vshra.s32 %v758_v54, 28  ;;  %v774_v4 = vshll.u32 %v3668_v32, 24 }
  0x81   : > { %v635_v9 = vunpack.c.l.b16 %v579_v57  ;;  %v636_v11 = vunpack.c.l.b16 %v580_v58  ;;  %v595_v12 = vpack.c.bf16 %v563_v59, %v563_v59  ;;  %v821_v13 = vcvt.s32.f32 %v789_v61 }
  0x82   : > { %1013 = vmatpush.bf16.msra.mxu3 %v996_v62  ;;  %v596_v14 = vpack.c.bf16 %v564_v63, %v564_v63  ;;  %v822_v15 = vcvt.s32.f32 %v790_v3  ;;  %v805_v16 = vshra.s32 %v773_v55, 28  ;;  %v806_v22 = vshra.s32 %v774_v4, 28 }
  0x83   : > { %v649_v31 = vpack.c.b16 %v636_v11, %v635_v9  ;;  %v705_v35 = vunpack.c.l.b16 %v595_v12  ;;  %v853_v36 = vpack.c.bf16 %v821_v13, %v821_v13  ;;  %v481_v37 = vshll.u32 %v3677_v7, 28 }
  0x84   : > { %v706_v38 = vunpack.c.l.b16 %v596_v14  ;;  %v854_v39 = vpack.c.bf16 %v822_v15, %v822_v15  ;;  %v837_v40 = vcvt.s32.f32 %v805_v16  ;;  %v838_v41 = vcvt.s32.f32 %v806_v22  ;;  %v3696_v14 = vld [vmem:[%s3537_s26] sm:$0xff] }
  0x85   : > { %668 = vmatpush.bf16.msra.mxu0 %v649_v31  ;;  %v909_v44 = vunpack.c.l.b16 %v853_v36  ;;  %v482_v45 = vshll.u32 %v3680_v26, 28  ;;  %v513_v46 = vshra.s32 %v481_v37, 28  ;;  %v497_v47 = vshll.u32 %v3683_v27, 28 }
  0x86   : > { %v719_v48 = vpack.c.b16 %v706_v38, %v705_v35  ;;  %v910_v49 = vunpack.c.l.b16 %v854_v39  ;;  %v869_v50 = vpack.c.bf16 %v837_v40, %v837_v40  ;;  %v870_v51 = vpack.c.bf16 %v838_v41, %v838_v41  ;;  %v3700_v39 = vld [vmem:[%s3537_s26 + $0x8] sm:$0xff] }
  0x87   : > { %v514_v52 = vshra.s32 %v482_v45, 28  ;;  %v545_v53 = vcvt.s32.f32 %v513_v46  ;;  %v498_v54 = vshll.u32 %v3687_v42, 28  ;;  %v529_v55 = vshra.s32 %v497_v47, 28 }
  0x88   : > { %738 = vmatpush.bf16.msra.mxu1 %v719_v48  ;;  %v923_v57 = vpack.c.b16 %v910_v49, %v909_v44  ;;  %v981_v58 = vunpack.c.l.b16 %v869_v50  ;;  %v982_v59 = vunpack.c.l.b16 %v870_v51  ;;  %v755_v61 = vshll.u32 %v3677_v7, 24  ;;  %v3704_v50 = vld [vmem:[%s3537_s26 + $0x80] sm:$0xff] }
  0x89   : > { %v546_v62 = vcvt.s32.f32 %v514_v52  ;;  %v577_v63 = vpack.c.bf16 %v545_v53, %v545_v53  ;;  %v530_v3 = vshra.s32 %v498_v54, 28  ;;  %v561_v4 = vcvt.s32.f32 %v529_v55  ;;  %v3708_v55 = vld [vmem:[%s3537_s26 + $0x88] sm:$0xff] }
  0x8a   : > { %942 = vmatpush.bf16.msra.mxu2 %v923_v57  ;;  %v995_v9 = vpack.c.b16 %v982_v59, %v981_v58  ;;  %v756_v11 = vshll.u32 %v3680_v26, 24  ;;  %v787_v12 = vshra.s32 %v755_v61, 28  ;;  %v771_v13 = vshll.u32 %v3683_v27, 24 }
  0x8b   : > { %v578_v15 = vpack.c.bf16 %v546_v62, %v546_v62  ;;  %v633_v16 = vunpack.c.l.b16 %v577_v63  ;;  %v562_v22 = vcvt.s32.f32 %v530_v3  ;;  %v593_v31 = vpack.c.bf16 %v561_v4, %v561_v4 }
  0x8c   : > { %1014 = vmatpush.bf16.msra.mxu3 %v995_v9  ;;  %v788_v35 = vshra.s32 %v756_v11, 28  ;;  %v819_v36 = vcvt.s32.f32 %v787_v12  ;;  %v772_v37 = vshll.u32 %v3687_v42, 24  ;;  %v803_v38 = vshra.s32 %v771_v13, 28 }
  0x8d   : > { %v634_v40 = vunpack.c.l.b16 %v578_v15  ;;  %v594_v41 = vpack.c.bf16 %v562_v22, %v562_v22  ;;  %v703_v44 = vunpack.c.l.b16 %v593_v31  ;;  %v479_v45 = vshll.u32 %v3696_v14, 28 }
  0x8e   : > { %v820_v46 = vcvt.s32.f32 %v788_v35  ;;  %v851_v47 = vpack.c.bf16 %v819_v36, %v819_v36  ;;  %v804_v48 = vshra.s32 %v772_v37, 28  ;;  %v835_v49 = vcvt.s32.f32 %v803_v38 }
  0x8f   : > { %v648_v51 = vpack.c.b16 %v634_v40, %v633_v16  ;;  %v704_v52 = vunpack.c.l.b16 %v594_v41  ;;  %v480_v53 = vshll.u32 %v3700_v39, 28  ;;  %v511_v54 = vshra.s32 %v479_v45, 28 }
  0x90   : > { %v852_v57 = vpack.c.bf16 %v820_v46, %v820_v46  ;;  %v907_v58 = vunpack.c.l.b16 %v851_v47  ;;  %v836_v59 = vcvt.s32.f32 %v804_v48  ;;  %v867_v61 = vpack.c.bf16 %v835_v49, %v835_v49 }
  0x91   : > { %669 = vmatpush.bf16.msra.mxu0 %v648_v51  ;;  %v718_v62 = vpack.c.b16 %v704_v52, %v703_v44  ;;  %v512_v63 = vshra.s32 %v480_v53, 28  ;;  %v543_v3 = vcvt.s32.f32 %v511_v54  ;;  %v495_v4 = vshll.u32 %v3704_v50, 28 }
  0x92   : > { %v908_v9 = vunpack.c.l.b16 %v852_v57  ;;  %v868_v11 = vpack.c.bf16 %v836_v59, %v836_v59  ;;  %v979_v12 = vunpack.c.l.b16 %v867_v61  ;;  %v496_v13 = vshll.u32 %v3708_v55, 28 }
  0x93   : > { %739 = vmatpush.bf16.msra.mxu1 %v718_v62  ;;  %v544_v15 = vcvt.s32.f32 %v512_v63  ;;  %v575_v16 = vpack.c.bf16 %v543_v3, %v543_v3  ;;  %v527_v22 = vshra.s32 %v495_v4, 28  ;;  %v753_v31 = vshll.u32 %v3696_v14, 24 }
  0x94   : > { %v922_v35 = vpack.c.b16 %v908_v9, %v907_v58  ;;  %v980_v36 = vunpack.c.l.b16 %v868_v11  ;;  %v528_v37 = vshra.s32 %v496_v13, 28  ;;  %v754_v38 = vshll.u32 %v3700_v39, 24 }
  0x95   : > { %v576_v40 = vpack.c.bf16 %v544_v15, %v544_v15  ;;  %v631_v41 = vunpack.c.l.b16 %v575_v16  ;;  %v559_v44 = vcvt.s32.f32 %v527_v22  ;;  %v785_v45 = vshra.s32 %v753_v31, 28 }
  0x96   : > { %943 = vmatpush.bf16.msra.mxu2 %v922_v35  ;;  %v994_v46 = vpack.c.b16 %v980_v36, %v979_v12  ;;  %v560_v47 = vcvt.s32.f32 %v528_v37  ;;  %v786_v48 = vshra.s32 %v754_v38, 28  ;;  %v769_v49 = vshll.u32 %v3704_v50, 24 }
  0x97   : > { %v632_v51 = vunpack.c.l.b16 %v576_v40  ;;  %v591_v52 = vpack.c.bf16 %v559_v44, %v559_v44  ;;  %v817_v53 = vcvt.s32.f32 %v785_v45  ;;  %v770_v54 = vshll.u32 %v3708_v55, 24 }
  0x98   : > { %1015 = vmatpush.bf16.msra.mxu3 %v994_v46  ;;  %v592_v57 = vpack.c.bf16 %v560_v47, %v560_v47  ;;  %v818_v58 = vcvt.s32.f32 %v786_v48  ;;  %v801_v59 = vshra.s32 %v769_v49, 28  ;;  %v1043_v61 = vshll.u32 %v3557_v0, 20 }
  0x99   : > { %v647_v62 = vpack.c.b16 %v632_v51, %v631_v41  ;;  %v701_v63 = vunpack.c.l.b16 %v591_v52  ;;  %v849_v3 = vpack.c.bf16 %v817_v53, %v817_v53  ;;  %v802_v4 = vshra.s32 %v770_v54, 28 }
  0x9a   : > { %v702_v9 = vunpack.c.l.b16 %v592_v57  ;;  %v850_v11 = vpack.c.bf16 %v818_v58, %v818_v58  ;;  %v833_v12 = vcvt.s32.f32 %v801_v59  ;;  %v1044_v13 = vshll.u32 %v3560_v1, 20 }
  0x9b   : > { %670 = vmatpush.bf16.msra.mxu0 %v647_v62  ;;  %v905_v15 = vunpack.c.l.b16 %v849_v3  ;;  %v834_v16 = vcvt.s32.f32 %v802_v4  ;;  %v1075_v22 = vshra.s32 %v1043_v61, 28  ;;  %v1059_v31 = vshll.u32 %v3563_v2, 20 }
  0x9c   : > { %v717_v35 = vpack.c.b16 %v702_v9, %v701_v63  ;;  %v906_v36 = vunpack.c.l.b16 %v850_v11  ;;  %v865_v37 = vpack.c.bf16 %v833_v12, %v833_v12  ;;  %v1076_v38 = vshra.s32 %v1044_v13, 28 }
  0x9d   : > { %v866_v40 = vpack.c.bf16 %v834_v16, %v834_v16  ;;  %v1107_v41 = vcvt.s32.f32 %v1075_v22  ;;  %v1060_v44 = vshll.u32 %v3568_v5, 20  ;;  %v1091_v45 = vshra.s32 %v1059_v31, 28 }
  0x9e   : > { %740 = vmatpush.bf16.msra.mxu1 %v717_v35  ;;  %v921_v46 = vpack.c.b16 %v906_v36, %v905_v15  ;;  %v977_v47 = vunpack.c.l.b16 %v865_v37  ;;  %v1108_v48 = vcvt.s32.f32 %v1076_v38  ;;  %v1319_v49 = vshll.u32 %v3557_v0, 16 }
  0x9f   : > { %v978_v51 = vunpack.c.l.b16 %v866_v40  ;;  %v1139_v52 = vpack.c.bf16 %v1107_v41, %v1107_v41  ;;  %v1092_v53 = vshra.s32 %v1060_v44, 28  ;;  %v1123_v54 = vcvt.s32.f32 %v1091_v45 }
  0xa0   : > { %944 = vmatpush.bf16.msra.mxu2 %v921_v46  ;;  %v1140_v57 = vpack.c.bf16 %v1108_v48, %v1108_v48  ;;  %v1320_v58 = vshll.u32 %v3560_v1, 16  ;;  %v1351_v59 = vshra.s32 %v1319_v49, 28  ;;  %v1335_v61 = vshll.u32 %v3563_v2, 16 }
  0xa1   : > { %v993_v62 = vpack.c.b16 %v978_v51, %v977_v47  ;;  %v1195_v63 = vunpack.c.l.b16 %v1139_v52  ;;  %v1124_v3 = vcvt.s32.f32 %v1092_v53  ;;  %v1155_v4 = vpack.c.bf16 %v1123_v54, %v1123_v54 }
  0xa2   : > { %v1196_v9 = vunpack.c.l.b16 %v1140_v57  ;;  %v1352_v11 = vshra.s32 %v1320_v58, 28  ;;  %v1383_v12 = vcvt.s32.f32 %v1351_v59  ;;  %v1336_v0 = vshll.u32 %v3568_v5, 16 }
  0xa3   : > { %1016 = vmatpush.bf16.msra.mxu3 %v993_v62  ;;  %v1156_v13 = vpack.c.bf16 %v1124_v3, %v1124_v3  ;;  %v1267_v15 = vunpack.c.l.b16 %v1155_v4  ;;  %v1367_v16 = vshra.s32 %v1335_v61, 28  ;;  %v1041_v22 = vshll.u32 %v3577_v28, 20 }
  0xa4   : > { %v1204_v31 = vpack.c.b16 %v1196_v9, %v1195_v63  ;;  %v1384_v1 = vcvt.s32.f32 %v1352_v11  ;;  %v1415_v35 = vpack.c.bf16 %v1383_v12, %v1383_v12  ;;  %v1368_v36 = vshra.s32 %v1336_v0, 28 }
  0xa5   : > { %v1268_v2 = vunpack.c.l.b16 %v1156_v13  ;;  %v1399_v37 = vcvt.s32.f32 %v1367_v16  ;;  %v1042_v38 = vshll.u32 %v3580_v29, 20  ;;  %v1073_v40 = vshra.s32 %v1041_v22, 28 }
  0xa6   : > { %1213 = vmatpush.bf16.msrb.mxu0 %v1204_v31  ;;  %v1416_v41 = vpack.c.bf16 %v1384_v1, %v1384_v1  ;;  %v1471_v44 = vunpack.c.l.b16 %v1415_v35  ;;  %v1400_v45 = vcvt.s32.f32 %v1368_v36  ;;  %v1057_v5 = vshll.u32 %v3583_v30, 20 }
  0xa7   : > { %v1276_v46 = vpack.c.b16 %v1268_v2, %v1267_v15  ;;  %v1431_v47 = vpack.c.bf16 %v1399_v37, %v1399_v37  ;;  %v1074_v48 = vshra.s32 %v1042_v38, 28  ;;  %v1105_v49 = vcvt.s32.f32 %v1073_v40 }
  0xa8   : > { %v1472_v51 = vunpack.c.l.b16 %v1416_v41  ;;  %v1432_v52 = vpack.c.bf16 %v1400_v45, %v1400_v45  ;;  %v1058_v53 = vshll.u32 %v3586_v43, 20  ;;  %v1089_v54 = vshra.s32 %v1057_v5, 28 }
  0xa9   : > { %1285 = vmatpush.bf16.msrb.mxu1 %v1276_v46  ;;  %v1543_v57 = vunpack.c.l.b16 %v1431_v47  ;;  %v1106_v58 = vcvt.s32.f32 %v1074_v48  ;;  %v1137_v59 = vpack.c.bf16 %v1105_v49, %v1105_v49  ;;  %v1317_v61 = vshll.u32 %v3577_v28, 16 }
  0xaa   : > { %v1480_v62 = vpack.c.b16 %v1472_v51, %v1471_v44  ;;  %v1544_v63 = vunpack.c.l.b16 %v1432_v52  ;;  %v1090_v3 = vshra.s32 %v1058_v53, 28  ;;  %v1121_v4 = vcvt.s32.f32 %v1089_v54 }
  0xab   : > { %v1138_v9 = vpack.c.bf16 %v1106_v58, %v1106_v58  ;;  %v1193_v11 = vunpack.c.l.b16 %v1137_v59  ;;  %v1318_v12 = vshll.u32 %v3580_v29, 16  ;;  %v1349_v0 = vshra.s32 %v1317_v61, 28 }
  0xac   : > { %1489 = vmatpush.bf16.msrb.mxu2 %v1480_v62  ;;  %v1552_v13 = vpack.c.b16 %v1544_v63, %v1543_v57  ;;  %v1122_v15 = vcvt.s32.f32 %v1090_v3  ;;  %v1153_v16 = vpack.c.bf16 %v1121_v4, %v1121_v4  ;;  %v1333_v22 = vshll.u32 %v3583_v30, 16 }
  0xad   : > { %v1194_v31 = vunpack.c.l.b16 %v1138_v9  ;;  %v1350_v1 = vshra.s32 %v1318_v12, 28  ;;  %v1381_v35 = vcvt.s32.f32 %v1349_v0  ;;  %v1334_v28 = vshll.u32 %v3586_v43, 16 }
  0xae   : > { %1561 = vmatpush.bf16.msrb.mxu3 %v1552_v13  ;;  %v1154_v36 = vpack.c.bf16 %v1122_v15, %v1122_v15  ;;  %v1265_v2 = vunpack.c.l.b16 %v1153_v16  ;;  %v1365_v37 = vshra.s32 %v1333_v22, 28  ;;  %v1039_v38 = vshll.u32 %v3597_v20, 20 }
  0xaf   : > { %v1203_v40 = vpack.c.b16 %v1194_v31, %v1193_v11  ;;  %v1382_v29 = vcvt.s32.f32 %v1350_v1  ;;  %v1413_v41 = vpack.c.bf16 %v1381_v35, %v1381_v35  ;;  %v1366_v44 = vshra.s32 %v1334_v28, 28 }
  0xb0   : > { %v1266_v45 = vunpack.c.l.b16 %v1154_v36  ;;  %v1397_v5 = vcvt.s32.f32 %v1365_v37  ;;  %v1040_v46 = vshll.u32 %v3600_v21, 20  ;;  %v1071_v30 = vshra.s32 %v1039_v38, 28 }
  0xb1   : > { %1214 = vmatpush.bf16.msrb.mxu0 %v1203_v40  ;;  %v1414_v47 = vpack.c.bf16 %v1382_v29, %v1382_v29  ;;  %v1469_v48 = vunpack.c.l.b16 %v1413_v41  ;;  %v1398_v49 = vcvt.s32.f32 %v1366_v44  ;;  %v1055_v43 = vshll.u32 %v3603_v33, 20 }
  0xb2   : > { %v1275_v51 = vpack.c.b16 %v1266_v45, %v1265_v2  ;;  %v1429_v52 = vpack.c.bf16 %v1397_v5, %v1397_v5  ;;  %v1072_v53 = vshra.s32 %v1040_v46, 28  ;;  %v1103_v54 = vcvt.s32.f32 %v1071_v30 }
  0xb3   : > { %v1470_v57 = vunpack.c.l.b16 %v1414_v47  ;;  %v1430_v58 = vpack.c.bf16 %v1398_v49, %v1398_v49  ;;  %v1056_v59 = vshll.u32 %v3606_v34, 20  ;;  %v1087_v61 = vshra.s32 %v1055_v43, 28 }
  0xb4   : > { %1286 = vmatpush.bf16.msrb.mxu1 %v1275_v51  ;;  %v1541_v62 = vunpack.c.l.b16 %v1429_v52  ;;  %v1104_v63 = vcvt.s32.f32 %v1072_v53  ;;  %v1135_v3 = vpack.c.bf16 %v1103_v54, %v1103_v54  ;;  %v1315_v4 = vshll.u32 %v3597_v20, 16 }
  0xb5   : > { %v1479_v9 = vpack.c.b16 %v1470_v57, %v1469_v48  ;;  %v1542_v11 = vunpack.c.l.b16 %v1430_v58  ;;  %v1088_v12 = vshra.s32 %v1056_v59, 28  ;;  %v1119_v0 = vcvt.s32.f32 %v1087_v61 }
  0xb6   : > { %v1136_v13 = vpack.c.bf16 %v1104_v63, %v1104_v63  ;;  %v1191_v15 = vunpack.c.l.b16 %v1135_v3  ;;  %v1316_v16 = vshll.u32 %v3600_v21, 16  ;;  %v1347_v22 = vshra.s32 %v1315_v4, 28 }
  0xb7   : > { %1490 = vmatpush.bf16.msrb.mxu2 %v1479_v9  ;;  %v1551_v31 = vpack.c.b16 %v1542_v11, %v1541_v62  ;;  %v1120_v1 = vcvt.s32.f32 %v1088_v12  ;;  %v1151_v35 = vpack.c.bf16 %v1119_v0, %v1119_v0  ;;  %v1331_v28 = vshll.u32 %v3603_v33, 16 }
  0xb8   : > { %v1192_v36 = vunpack.c.l.b16 %v1136_v13  ;;  %v1348_v2 = vshra.s32 %v1316_v16, 28  ;;  %v1379_v37 = vcvt.s32.f32 %v1347_v22  ;;  %v1332_v20 = vshll.u32 %v3606_v34, 16 }
  0xb9   : > { %1562 = vmatpush.bf16.msrb.mxu3 %v1551_v31  ;;  %v1152_v38 = vpack.c.bf16 %v1120_v1, %v1120_v1  ;;  %v1263_v40 = vunpack.c.l.b16 %v1151_v35  ;;  %v1363_v29 = vshra.s32 %v1331_v28, 28  ;;  %v1037_v41 = vshll.u32 %v3617_v8, 20  ;;  %v2890_v31 = vld [vmem:[#allocation3] sm:$0xf] }
  0xba   : > { %v1202_v44 = vpack.c.b16 %v1192_v36, %v1191_v15  ;;  %v1380_v21 = vcvt.s32.f32 %v1348_v2  ;;  %v1411_v45 = vpack.c.bf16 %v1379_v37, %v1379_v37  ;;  %v1364_v5 = vshra.s32 %v1332_v20, 28  ;;  %v2957_v1 = vld [vmem:[#allocation3 + $0x3c] sm:$0xf0] }
  0xbb   : > { %v1264_v46 = vunpack.c.l.b16 %v1152_v38  ;;  %v1395_v30 = vcvt.s32.f32 %v1363_v29  ;;  %v1038_v47 = vshll.u32 %v3620_v17, 20  ;;  %v1069_v33 = vshra.s32 %v1037_v41, 28  ;;  %v2959_v29 = vld [vmem:[#allocation3 + $0x44] sm:$0xf0] }
  0xbc   : > { %1215 = vmatpush.bf16.msrb.mxu0 %v1202_v44  ;;  %v1412_v48 = vpack.c.bf16 %v1380_v21, %v1380_v21  ;;  %v1467_v49 = vunpack.c.l.b16 %v1411_v45  ;;  %v1396_v43 = vcvt.s32.f32 %v1364_v5  ;;  %v1053_v34 = vshll.u32 %v3623_v18, 20 }
  0xbd   : > { %v1274_v51 = vpack.c.b16 %v1264_v46, %v1263_v40  ;;  %v1427_v52 = vpack.c.bf16 %v1395_v30, %v1395_v30  ;;  %v1070_v53 = vshra.s32 %v1038_v47, 28  ;;  %v1101_v54 = vcvt.s32.f32 %v1069_v33  ;;  %v2898_v40 = vld [vmem:[#allocation3 + $0x8] sm:$0xf] }
  0xbe   : > { %v1468_v57 = vunpack.c.l.b16 %v1412_v48  ;;  %v1428_v58 = vpack.c.bf16 %v1396_v43, %v1396_v43  ;;  %v1054_v59 = vshll.u32 %v3627_v25, 20  ;;  %v1085_v61 = vshra.s32 %v1053_v34, 28 }
  0xbf   : > { %1287 = vmatpush.bf16.msrb.mxu1 %v1274_v51  ;;  %v1539_v62 = vunpack.c.l.b16 %v1427_v52  ;;  %v1102_v63 = vcvt.s32.f32 %v1070_v53  ;;  %v1133_v3 = vpack.c.bf16 %v1101_v54, %v1101_v54  ;;  %v1313_v4 = vshll.u32 %v3617_v8, 16 }
  0xc0   : > { %v1478_v9 = vpack.c.b16 %v1468_v57, %v1467_v49  ;;  %v1540_v11 = vunpack.c.l.b16 %v1428_v58  ;;  %v1086_v12 = vshra.s32 %v1054_v59, 28  ;;  %v1117_v0 = vcvt.s32.f32 %v1085_v61 }
  0xc1   : > { %v1134_v13 = vpack.c.bf16 %v1102_v63, %v1102_v63  ;;  %v1189_v15 = vunpack.c.l.b16 %v1133_v3  ;;  %v1314_v16 = vshll.u32 %v3620_v17, 16  ;;  %v1345_v22 = vshra.s32 %v1313_v4, 28 }
  0xc2   : > { %1491 = vmatpush.bf16.msrb.mxu2 %v1478_v9  ;;  %v1550_v35 = vpack.c.b16 %v1540_v11, %v1539_v62  ;;  %v1118_v28 = vcvt.s32.f32 %v1086_v12  ;;  %v1149_v36 = vpack.c.bf16 %v1117_v0, %v1117_v0  ;;  %v1329_v2 = vshll.u32 %v3623_v18, 16 }
  0xc3   : > { %v1190_v37 = vunpack.c.l.b16 %v1134_v13  ;;  %v1346_v20 = vshra.s32 %v1314_v16, 28  ;;  %v1377_v8 = vcvt.s32.f32 %v1345_v22  ;;  %v1330_v38 = vshll.u32 %v3627_v25, 16 }
  0xc4   : > { %1563 = vmatpush.bf16.msrb.mxu3 %v1550_v35  ;;  %v1150_v41 = vpack.c.bf16 %v1118_v28, %v1118_v28  ;;  %v1261_v44 = vunpack.c.l.b16 %v1149_v36  ;;  %v1361_v17 = vshra.s32 %v1329_v2, 28  ;;  %v2891_v21 = vor.u32 %v2957_v1, %v2890_v31  ;;  %v2956_v36 = vld [vmem:[#allocation3 + $0x4] sm:$0xf] }
  0xc5   : > { %v1201_v45 = vpack.c.b16 %v1190_v37, %v1189_v15  ;;  %v1378_v5 = vcvt.s32.f32 %v1346_v20  ;;  %v1409_v46 = vpack.c.bf16 %v1377_v8, %v1377_v8  ;;  %v1362_v30 = vshra.s32 %v1330_v38, 28  ;;  %v2892_v2 = vld [vmem:[#allocation3 + $0x40] sm:$0xf0] }
  0xc6   : > { %v1262_v47 = vunpack.c.l.b16 %v1150_v41  ;;  %v1393_v33 = vcvt.s32.f32 %v1361_v17  ;;  %671 = vmatmul.bf16.vlgmr.msra.gmra.mxu0 %v2891_v21  ;;  %v2899_v18 = vor.u32 %v2959_v29, %v2898_v40  ;;  %v1035_v48 = vshll.u32 %v3637_v60, 20 }
  0xc7   : > { %1216 = vmatpush.bf16.msrb.mxu0 %v1201_v45  ;;  %v1410_v49 = vpack.c.bf16 %v1378_v5, %v1378_v5  ;;  %v1465_v25 = vunpack.c.l.b16 %v1409_v46  ;;  %v1394_v43 = vcvt.s32.f32 %v1362_v30  ;;  %v1036_v34 = vshll.u32 %v3640_v10, 20 }
  0xc8   : > { %v1273_v51 = vpack.c.b16 %v1262_v47, %v1261_v44  ;;  %v1425_v52 = vpack.c.bf16 %v1393_v33, %v1393_v33  ;;  %945 = vmatmul.bf16.vlgmr.msra.gmra.mxu2 %v2899_v18  ;;  %v1067_v53 = vshra.s32 %v1035_v48, 28  ;;  %v1051_v54 = vshll.u32 %v3644_v23, 20  ;;  %v2900_v44 = vld [vmem:[#allocation3 + $0x48] sm:$0xf0] }
  0xc9   : > { %v1466_v57 = vunpack.c.l.b16 %v1410_v49  ;;  %v1426_v58 = vpack.c.bf16 %v1394_v43, %v1394_v43  ;;  %v1068_v59 = vshra.s32 %v1036_v34, 28  ;;  %v1052_v61 = vshll.u32 %v3647_v24, 20 }
  0xca   : > { %1288 = vmatpush.bf16.msrb.mxu1 %v1273_v51  ;;  %v1537_v62 = vunpack.c.l.b16 %v1425_v52  ;;  %v1099_v63 = vcvt.s32.f32 %v1067_v53  ;;  %v1083_v3 = vshra.s32 %v1051_v54, 28  ;;  %v1311_v4 = vshll.u32 %v3637_v60, 16 }
  0xcb   : > { %v1477_v9 = vpack.c.b16 %v1466_v57, %v1465_v25  ;;  %v1538_v11 = vunpack.c.l.b16 %v1426_v58  ;;  %v1100_v12 = vcvt.s32.f32 %v1068_v59  ;;  %v1084_v0 = vshra.s32 %v1052_v61, 28 }
  0xcc   : > { %v1131_v13 = vpack.c.bf16 %v1099_v63, %v1099_v63  ;;  %v1115_v15 = vcvt.s32.f32 %v1083_v3  ;;  %v1312_v16 = vshll.u32 %v3640_v10, 16  ;;  %v1343_v22 = vshra.s32 %v1311_v4, 28  ;;  %v2958_v10 = vld [vmem:[#allocation3 + $0xc] sm:$0xf] }
  0xcd   : > { %1492 = vmatpush.bf16.msrb.mxu2 %v1477_v9  ;;  %v1549_v31 = vpack.c.b16 %v1538_v11, %v1537_v62  ;;  %v1132_v1 = vpack.c.bf16 %v1100_v12, %v1100_v12  ;;  %v1116_v35 = vcvt.s32.f32 %v1084_v0  ;;  %v1327_v28 = vshll.u32 %v3644_v23, 16 }
  0xce   : > { %v1187_v37 = vunpack.c.l.b16 %v1131_v13  ;;  %v1147_v20 = vpack.c.bf16 %v1115_v15, %v1115_v15  ;;  %v1344_v60 = vshra.s32 %v1312_v16, 28  ;;  %v1375_v8 = vcvt.s32.f32 %v1343_v22 }
  0xcf   : > { %1564 = vmatpush.bf16.msrb.mxu3 %v1549_v31  ;;  %v1188_v38 = vunpack.c.l.b16 %v1132_v1  ;;  %v1148_v40 = vpack.c.bf16 %v1116_v35, %v1116_v35  ;;  %v1328_v29 = vshll.u32 %v3647_v24, 16  ;;  %v1359_v41 = vshra.s32 %v1327_v28, 28 }
  0xd0   : > { %v1259_v17 = vunpack.c.l.b16 %v1147_v20  ;;  %v1376_v21 = vcvt.s32.f32 %v1344_v60  ;;  %v1407_v45 = vpack.c.bf16 %v1375_v8, %v1375_v8  ;;  %v2895_v5 = vor.u32 %v2956_v36, %v2892_v2 }
  0xd1   : > { %v1200_v46 = vpack.c.b16 %v1188_v38, %v1187_v37  ;;  %v1260_v23 = vunpack.c.l.b16 %v1148_v40  ;;  %v1360_v30 = vshra.s32 %v1328_v29, 28  ;;  %v1391_v47 = vcvt.s32.f32 %v1359_v41 }
  0xd2   : > { %v1408_v33 = vpack.c.bf16 %v1376_v21, %v1376_v21  ;;  %v1463_v18 = vunpack.c.l.b16 %v1407_v45  ;;  %741 = vmatmul.bf16.vlgmr.msra.gmra.mxu1 %v2895_v5  ;;  %v2903_v48 = vor.u32 %v2958_v10, %v2900_v44  ;;  %v1033_v49 = vshll.u32 %v3656_v56, 20 }
  0xd3   : > { %1217 = vmatpush.bf16.msrb.mxu0 %v1200_v46  ;;  %v1272_v25 = vpack.c.b16 %v1260_v23, %v1259_v17  ;;  %v1392_v24 = vcvt.s32.f32 %v1360_v30  ;;  %v1423_v43 = vpack.c.bf16 %v1391_v47, %v1391_v47  ;;  %v1034_v34 = vshll.u32 %v3660_v6, 20 }
  0xd4   : > { %v1464_v51 = vunpack.c.l.b16 %v1408_v33  ;;  %1017 = vmatmul.bf16.vlgmr.msra.gmra.mxu3 %v2903_v48  ;;  %v1065_v52 = vshra.s32 %v1033_v49, 28  ;;  %v1049_v53 = vshll.u32 %v3664_v19, 20  ;;  %v1050_v54 = vshll.u32 %v3668_v32, 20 }
  0xd5   : > { %1289 = vmatpush.bf16.msrb.mxu1 %v1272_v25  ;;  %v1424_v57 = vpack.c.bf16 %v1392_v24, %v1392_v24  ;;  %v1535_v58 = vunpack.c.l.b16 %v1423_v43  ;;  %v1066_v59 = vshra.s32 %v1034_v34, 28  ;;  %v1309_v61 = vshll.u32 %v3656_v56, 16 }
  0xd6   : > { %v1476_v62 = vpack.c.b16 %v1464_v51, %v1463_v18  ;;  %v1097_v63 = vcvt.s32.f32 %v1065_v52  ;;  %v1081_v3 = vshra.s32 %v1049_v53, 28  ;;  %v1082_v4 = vshra.s32 %v1050_v54, 28 }
  0xd7   : > { %v1536_v9 = vunpack.c.l.b16 %v1424_v57  ;;  %v1098_v11 = vcvt.s32.f32 %v1066_v59  ;;  %v1310_v12 = vshll.u32 %v3660_v6, 16  ;;  %v1341_v0 = vshra.s32 %v1309_v61, 28 }
  0xd8   : > { %1493 = vmatpush.bf16.msrb.mxu2 %v1476_v62  ;;  %v1129_v13 = vpack.c.bf16 %v1097_v63, %v1097_v63  ;;  %v1113_v15 = vcvt.s32.f32 %v1081_v3  ;;  %v1114_v16 = vcvt.s32.f32 %v1082_v4  ;;  %v1325_v22 = vshll.u32 %v3664_v19, 16 }
  0xd9   : > { %v1548_v31 = vpack.c.b16 %v1536_v9, %v1535_v58  ;;  %v1130_v1 = vpack.c.bf16 %v1098_v11, %v1098_v11  ;;  %v1342_v35 = vshra.s32 %v1310_v12, 28  ;;  %v1373_v28 = vcvt.s32.f32 %v1341_v0 }
  0xda   : > { %v1185_v56 = vunpack.c.l.b16 %v1129_v13  ;;  %v1145_v36 = vpack.c.bf16 %v1113_v15, %v1113_v15  ;;  %v1146_v2 = vpack.c.bf16 %v1114_v16, %v1114_v16  ;;  %v1326_v37 = vshll.u32 %v3668_v32, 16 }
  0xdb   : > { %1565 = vmatpush.bf16.msrb.mxu3 %v1548_v31  ;;  %v1186_v20 = vunpack.c.l.b16 %v1130_v1  ;;  %v1374_v60 = vcvt.s32.f32 %v1342_v35  ;;  %v1405_v6 = vpack.c.bf16 %v1373_v28, %v1373_v28  ;;  %v1357_v8 = vshra.s32 %v1325_v22, 28 }
  0xdc   : > { %v1257_v38 = vunpack.c.l.b16 %v1145_v36  ;;  %v1258_v40 = vunpack.c.l.b16 %v1146_v2  ;;  %v1358_v29 = vshra.s32 %v1326_v37, 28  ;;  %v1031_v41 = vshll.u32 %v3677_v7, 20 }
  0xdd   : > { %v1199_v19 = vpack.c.b16 %v1186_v20, %v1185_v56  ;;  %v1406_v10 = vpack.c.bf16 %v1374_v60, %v1374_v60  ;;  %v1461_v44 = vunpack.c.l.b16 %v1405_v6  ;;  %v1389_v17 = vcvt.s32.f32 %v1357_v8 }
  0xde   : > { %v1271_v21 = vpack.c.b16 %v1258_v40, %v1257_v38  ;;  %v1390_v45 = vcvt.s32.f32 %v1358_v29  ;;  %v1032_v5 = vshll.u32 %v3680_v26, 20  ;;  %v1063_v46 = vshra.s32 %v1031_v41, 28 }
  0xdf   : > { %1218 = vmatpush.bf16.msrb.mxu0 %v1199_v19  ;;  %v1462_v32 = vunpack.c.l.b16 %v1406_v10  ;;  %v1421_v23 = vpack.c.bf16 %v1389_v17, %v1389_v17  ;;  %v1047_v30 = vshll.u32 %v3683_v27, 20  ;;  %v1048_v47 = vshll.u32 %v3687_v42, 20 }
  0xe0   : > { %1290 = vmatpush.bf16.msrb.mxu1 %v1271_v21  ;;  %v1422_v33 = vpack.c.bf16 %v1390_v45, %v1390_v45  ;;  %v1064_v18 = vshra.s32 %v1032_v5, 28  ;;  %v1095_v48 = vcvt.s32.f32 %v1063_v46  ;;  %v1307_v49 = vshll.u32 %v3677_v7, 16 }
  0xe1   : > { %v1475_v25 = vpack.c.b16 %v1462_v32, %v1461_v44  ;;  %v1533_v24 = vunpack.c.l.b16 %v1421_v23  ;;  %v1079_v43 = vshra.s32 %v1047_v30, 28  ;;  %v1080_v34 = vshra.s32 %v1048_v47, 28 }
  0xe2   : > { %v1534_v51 = vunpack.c.l.b16 %v1422_v33  ;;  %v1096_v52 = vcvt.s32.f32 %v1064_v18  ;;  %v1127_v53 = vpack.c.bf16 %v1095_v48, %v1095_v48  ;;  %v1308_v54 = vshll.u32 %v3680_v26, 16 }
  0xe3   : > { %1494 = vmatpush.bf16.msrb.mxu2 %v1475_v25  ;;  %v1111_v57 = vcvt.s32.f32 %v1079_v43  ;;  %v1112_v58 = vcvt.s32.f32 %v1080_v34  ;;  %v1339_v59 = vshra.s32 %v1307_v49, 28  ;;  %v1323_v61 = vshll.u32 %v3683_v27, 16 }
  0xe4   : > { %v1547_v62 = vpack.c.b16 %v1534_v51, %v1533_v24  ;;  %v1128_v63 = vpack.c.bf16 %v1096_v52, %v1096_v52  ;;  %v1183_v3 = vunpack.c.l.b16 %v1127_v53  ;;  %v1340_v4 = vshra.s32 %v1308_v54, 28  ;;  %v3781_v52 = vld [vmem:[%s3537_s26 + $0x70] sm:$0xff] }
  0xe5   : > { %v1143_v7 = vpack.c.bf16 %v1111_v57, %v1111_v57  ;;  %v1144_v9 = vpack.c.bf16 %v1112_v58, %v1112_v58  ;;  %v1371_v11 = vcvt.s32.f32 %v1339_v59  ;;  %v1324_v12 = vshll.u32 %v3687_v42, 16 }
  0xe6   : > { %1566 = vmatpush.bf16.msrb.mxu3 %v1547_v62  ;;  %v1184_v0 = vunpack.c.l.b16 %v1128_v63  ;;  %v1372_v13 = vcvt.s32.f32 %v1340_v4  ;;  %v1355_v15 = vshra.s32 %v1323_v61, 28  ;;  %v1029_v26 = vshll.u32 %v3696_v14, 20  ;;  %v3785_v63 = vld [vmem:[%s3537_s26 + $0x78] sm:$0xff] }
  0xe7   : > { %v1255_v16 = vunpack.c.l.b16 %v1143_v7  ;;  %v1256_v22 = vunpack.c.l.b16 %v1144_v9  ;;  %v1403_v31 = vpack.c.bf16 %v1371_v11, %v1371_v11  ;;  %v1356_v1 = vshra.s32 %v1324_v12, 28  ;;  %v3789_v9 = vld [vmem:[%s3537_s26 + $0xf0] sm:$0xff] }
  0xe8   : > { %v1198_v27 = vpack.c.b16 %v1184_v0, %v1183_v3  ;;  %v1404_v35 = vpack.c.bf16 %v1372_v13, %v1372_v13  ;;  %v1387_v28 = vcvt.s32.f32 %v1355_v15  ;;  %v1030_v56 = vshll.u32 %v3700_v39, 20 }
  0xe9   : > { %v1270_v36 = vpack.c.b16 %v1256_v22, %v1255_v16  ;;  %v1459_v2 = vunpack.c.l.b16 %v1403_v31  ;;  %v1388_v37 = vcvt.s32.f32 %v1356_v1  ;;  %v1061_v20 = vshra.s32 %v1029_v26, 28  ;;  %v3793_v22 = vld [vmem:[%s3537_s26 + $0xf8] sm:$0xff] }
  0xea   : > { %1219 = vmatpush.bf16.msrb.mxu0 %v1198_v27  ;;  %v1460_v42 = vunpack.c.l.b16 %v1404_v35  ;;  %v1419_v60 = vpack.c.bf16 %v1387_v28, %v1387_v28  ;;  %v1062_v6 = vshra.s32 %v1030_v56, 28  ;;  %v1045_v8 = vshll.u32 %v3704_v50, 20 }
  0xeb   : > { %1291 = vmatpush.bf16.msrb.mxu1 %v1270_v36  ;;  %v1420_v38 = vpack.c.bf16 %v1388_v37, %v1388_v37  ;;  %v1093_v40 = vcvt.s32.f32 %v1061_v20  ;;  %v1046_v29 = vshll.u32 %v3708_v55, 20  ;;  %v1305_v41 = vshll.u32 %v3696_v14, 16 }
  0xec   : > { %v1474_v19 = vpack.c.b16 %v1460_v42, %v1459_v2  ;;  %v1531_v10 = vunpack.c.l.b16 %v1419_v60  ;;  %v1094_v44 = vcvt.s32.f32 %v1062_v6  ;;  %v1077_v17 = vshra.s32 %v1045_v8, 28  ;;  %v2906_v42 = vld [vmem:[#allocation3 + $0x10] sm:$0xf] }
  0xed   : > { %v1532_v21 = vunpack.c.l.b16 %v1420_v38  ;;  %v1125_v45 = vpack.c.bf16 %v1093_v40, %v1093_v40  ;;  %v1078_v5 = vshra.s32 %v1046_v29, 28  ;;  %v1306_v46 = vshll.u32 %v3700_v39, 16  ;;  %v2961_v40 = vld [vmem:[#allocation3 + $0x4c] sm:$0xf0] }
  0xee   : > { %1495 = vmatpush.bf16.msrb.mxu2 %v1474_v19  ;;  %v1126_v32 = vpack.c.bf16 %v1094_v44, %v1094_v44  ;;  %v1109_v23 = vcvt.s32.f32 %v1077_v17  ;;  %v1337_v30 = vshra.s32 %v1305_v41, 28  ;;  %v1321_v47 = vshll.u32 %v3704_v50, 16  ;;  %v2914_v44 = vld [vmem:[#allocation3 + $0x18] sm:$0xf] }
  0xef   : > { %v1546_v33 = vpack.c.b16 %v1532_v21, %v1531_v10  ;;  %v1181_v18 = vunpack.c.l.b16 %v1125_v45  ;;  %v1110_v48 = vcvt.s32.f32 %v1078_v5  ;;  %v1338_v14 = vshra.s32 %v1306_v46, 28  ;;  %v2963_v17 = vld [vmem:[#allocation3 + $0x54] sm:$0xf0] }
  0xf0   : > { %v1182_v49 = vunpack.c.l.b16 %v1126_v32  ;;  %v1141_v25 = vpack.c.bf16 %v1109_v23, %v1109_v23  ;;  %v1369_v24 = vcvt.s32.f32 %v1337_v30  ;;  %v1322_v43 = vshll.u32 %v3708_v55, 16  ;;  %v2960_v32 = vld [vmem:[#allocation3 + $0x14] sm:$0xf] }
  0xf1   : > { %1567 = vmatpush.bf16.msrb.mxu3 %v1546_v33  ;;  %v1142_v34 = vpack.c.bf16 %v1110_v48, %v1110_v48  ;;  %v1370_v39 = vcvt.s32.f32 %v1338_v14  ;;  %v1353_v51 = vshra.s32 %v1321_v47, 28  ;;  %v1595_v53 = vshll.u32 %v3781_v52, 12  ;;  %v2908_v23 = vld [vmem:[#allocation3 + $0x50] sm:$0xf0]  ;;  %v2962_v48 = vld [vmem:[#allocation3 + $0x1c] sm:$0xf] }
  0xf2   : > { %v1197_v50 = vpack.c.b16 %v1182_v49, %v1181_v18  ;;  %v1253_v54 = vunpack.c.l.b16 %v1141_v25  ;;  %v1401_v57 = vpack.c.bf16 %v1369_v24, %v1369_v24  ;;  %v1354_v58 = vshra.s32 %v1322_v43, 28  ;;  %v2916_v14 = vld [vmem:[#allocation3 + $0x58] sm:$0xf0] }
  0xf3   : > { %v1254_v59 = vunpack.c.l.b16 %v1142_v34  ;;  %v1402_v61 = vpack.c.bf16 %v1370_v39, %v1370_v39  ;;  %v1385_v62 = vcvt.s32.f32 %v1353_v51  ;;  %v1596_v55 = vshll.u32 %v3785_v63, 12 }
  0xf4   : > { %1220 = vmatpush.bf16.msrb.mxu0 %v1197_v50  ;;  %v1457_v3 = vunpack.c.l.b16 %v1401_v57  ;;  %v1386_v4 = vcvt.s32.f32 %v1354_v58  ;;  %v1627_v7 = vshra.s32 %v1595_v53, 28  ;;  %v1611_v11 = vshll.u32 %v3789_v9, 12 }
  0xf5   : > { %v1269_v12 = vpack.c.b16 %v1254_v59, %v1253_v54  ;;  %v1458_v0 = vunpack.c.l.b16 %v1402_v61  ;;  %v1417_v13 = vpack.c.bf16 %v1385_v62, %v1385_v62  ;;  %v1628_v15 = vshra.s32 %v1596_v55, 28  ;;  %v3801_v62 = vld [vmem:[%s3537_s26 + $0x60] sm:$0xff] }
  0xf6   : > { %v1418_v26 = vpack.c.bf16 %v1386_v4, %v1386_v4  ;;  %v1659_v16 = vcvt.s32.f32 %v1627_v7  ;;  %v1612_v31 = vshll.u32 %v3793_v22, 12  ;;  %v1643_v1 = vshra.s32 %v1611_v11, 28 }
  0xf7   : > { %1292 = vmatpush.bf16.msrb.mxu1 %v1269_v12  ;;  %v1473_v27 = vpack.c.b16 %v1458_v0, %v1457_v3  ;;  %v1529_v35 = vunpack.c.l.b16 %v1417_v13  ;;  %v1660_v28 = vcvt.s32.f32 %v1628_v15  ;;  %v1871_v56 = vshll.u32 %v3781_v52, 8  ;;  %v3805_v3 = vld [vmem:[%s3537_s26 + $0x68] sm:$0xff]  ;;  %v3809_v12 = vld [vmem:[%s3537_s26 + $0xe0] sm:$0xff] }
  0xf8   : > { %v1530_v36 = vunpack.c.l.b16 %v1418_v26  ;;  %v1691_v2 = vpack.c.bf16 %v1659_v16, %v1659_v16  ;;  %v1644_v37 = vshra.s32 %v1612_v31, 28  ;;  %v1675_v20 = vcvt.s32.f32 %v1643_v1  ;;  %v3813_v13 = vld [vmem:[%s3537_s26 + $0xe8] sm:$0xff] }
  0xf9   : > { %1496 = vmatpush.bf16.msrb.mxu2 %v1473_v27  ;;  %v1692_v60 = vpack.c.bf16 %v1660_v28, %v1660_v28  ;;  %v1872_v6 = vshll.u32 %v3785_v63, 8  ;;  %v1903_v8 = vshra.s32 %v1871_v56, 28  ;;  %v1887_v38 = vshll.u32 %v3789_v9, 8 }
  0xfa   : > { %v1545_v29 = vpack.c.b16 %v1530_v36, %v1529_v35  ;;  %v1747_v41 = vunpack.c.l.b16 %v1691_v2  ;;  %v1676_v19 = vcvt.s32.f32 %v1644_v37  ;;  %v1707_v10 = vpack.c.bf16 %v1675_v20, %v1675_v20 }
  0xfb   : > { %v1748_v21 = vunpack.c.l.b16 %v1692_v60  ;;  %v1904_v45 = vshra.s32 %v1872_v6, 28  ;;  %v1935_v5 = vcvt.s32.f32 %v1903_v8  ;;  %v1888_v46 = vshll.u32 %v3793_v22, 8 }
  0xfc   : > { %1568 = vmatpush.bf16.msrb.mxu3 %v1545_v29  ;;  %v1708_v30 = vpack.c.bf16 %v1676_v19, %v1676_v19  ;;  %v1819_v47 = vunpack.c.l.b16 %v1707_v10  ;;  %v1919_v33 = vshra.s32 %v1887_v38, 28  ;;  %v2907_v18 = vor.u32 %v2961_v40, %v2906_v42 }
  0xfd   : > { %v1756_v49 = vpack.c.b16 %v1748_v21, %v1747_v41  ;;  %v1936_v25 = vcvt.s32.f32 %v1904_v45  ;;  %v1967_v24 = vpack.c.bf16 %v1935_v5, %v1935_v5  ;;  %v1920_v43 = vshra.s32 %v1888_v46, 28 }
  0xfe   : > { %v1820_v34 = vunpack.c.l.b16 %v1708_v30  ;;  %v1951_v39 = vcvt.s32.f32 %v1919_v33  ;;  %1221 = vmatmul.bf16.vlgmr.msrb.gmra.mxu0 %v2907_v18  ;;  %v2915_v51 = vor.u32 %v2963_v17, %v2914_v44  ;;  %v2911_v53 = vor.u32 %v2960_v32, %v2908_v23 }
  0xff   : > { %1765 = vmatpush.bf16.msra.mxu0 %v1756_v49  ;;  %v1968_v50 = vpack.c.bf16 %v1936_v25, %v1936_v25  ;;  %v2023_v54 = vunpack.c.l.b16 %v1967_v24  ;;  %v1952_v57 = vcvt.s32.f32 %v1920_v43  ;;  %v2919_v58 = vor.u32 %v2962_v48, %v2916_v14  ;;  %v3821_v14 = vld [vmem:[%s3537_s26 + $0x50] sm:$0xff] }
 0x100   : > { %v1828_v59 = vpack.c.b16 %v1820_v34, %v1819_v47  ;;  %v1983_v61 = vpack.c.bf16 %v1951_v39, %v1951_v39  ;;  %1497 = vmatmul.bf16.vlgmr.msrb.gmra.mxu2 %v2915_v51  ;;  %1293 = vmatmul.bf16.vlgmr.msrb.gmra.mxu1 %v2911_v53  ;;  %v1593_v55 = vshll.u32 %v3801_v62, 12  ;;  %v1594_v4 = vshll.u32 %v3805_v3, 12  ;;  %v3825_v34 = vld [vmem:[%s3537_s26 + $0x58] sm:$0xff] }
 0x101   : > { %v2024_v7 = vunpack.c.l.b16 %v1968_v50  ;;  %v1984_v11 = vpack.c.bf16 %v1952_v57, %v1952_v57  ;;  %1569 = vmatmul.bf16.vlgmr.msrb.gmra.mxu3 %v2919_v58  ;;  %v1609_v0 = vshll.u32 %v3809_v12, 12  ;;  %v1610_v15 = vshll.u32 %v3813_v13, 12  ;;  %v3829_v50 = vld [vmem:[%s3537_s26 + $0xd0] sm:$0xff]  ;;  %v3833_v57 = vld [vmem:[%s3537_s26 + $0xd8] sm:$0xff] }
 0x102   : > { %1837 = vmatpush.bf16.msra.mxu1 %v1828_v59  ;;  %v2095_v26 = vunpack.c.l.b16 %v1983_v61  ;;  %v1625_v16 = vshra.s32 %v1593_v55, 28  ;;  %v1626_v31 = vshra.s32 %v1594_v4, 28  ;;  %v1869_v1 = vshll.u32 %v3801_v62, 8 }
 0x103   : > { %v2032_v27 = vpack.c.b16 %v2024_v7, %v2023_v54  ;;  %v2096_v35 = vunpack.c.l.b16 %v1984_v11  ;;  %v1641_v28 = vshra.s32 %v1609_v0, 28  ;;  %v1642_v56 = vshra.s32 %v1610_v15, 28 }
 0x104   : > { %v1657_v36 = vcvt.s32.f32 %v1625_v16  ;;  %v1658_v2 = vcvt.s32.f32 %v1626_v31  ;;  %v1870_v37 = vshll.u32 %v3805_v3, 8  ;;  %v1901_v20 = vshra.s32 %v1869_v1, 28 }
 0x105   : > { %2041 = vmatpush.bf16.msra.mxu2 %v2032_v27  ;;  %v2104_v42 = vpack.c.b16 %v2096_v35, %v2095_v26  ;;  %v1673_v60 = vcvt.s32.f32 %v1641_v28  ;;  %v1674_v6 = vcvt.s32.f32 %v1642_v56  ;;  %v1885_v8 = vshll.u32 %v3809_v12, 8 }
 0x106   : > { %v1689_v38 = vpack.c.bf16 %v1657_v36, %v1657_v36  ;;  %v1690_v40 = vpack.c.bf16 %v1658_v2, %v1658_v2  ;;  %v1902_v29 = vshra.s32 %v1870_v37, 28  ;;  %v1933_v41 = vcvt.s32.f32 %v1901_v20 }
 0x107   : > { %2113 = vmatpush.bf16.msra.mxu3 %v2104_v42  ;;  %v1705_v19 = vpack.c.bf16 %v1673_v60, %v1673_v60  ;;  %v1706_v10 = vpack.c.bf16 %v1674_v6, %v1674_v6  ;;  %v1886_v44 = vshll.u32 %v3813_v13, 8  ;;  %v1917_v17 = vshra.s32 %v1885_v8, 28 }
 0x108   : > { %v1745_v21 = vunpack.c.l.b16 %v1689_v38  ;;  %v1746_v45 = vunpack.c.l.b16 %v1690_v40  ;;  %v1934_v5 = vcvt.s32.f32 %v1902_v29  ;;  %v1965_v46 = vpack.c.bf16 %v1933_v41, %v1933_v41 }
 0x109   : > { %v1817_v32 = vunpack.c.l.b16 %v1705_v19  ;;  %v1818_v23 = vunpack.c.l.b16 %v1706_v10  ;;  %v1918_v30 = vshra.s32 %v1886_v44, 28  ;;  %v1949_v47 = vcvt.s32.f32 %v1917_v17  ;;  %v3841_v17 = vld [vmem:[%s3537_s26 + $0x40] sm:$0xff] }
 0x10a   : > { %v1755_v33 = vpack.c.b16 %v1746_v45, %v1745_v21  ;;  %v1966_v18 = vpack.c.bf16 %v1934_v5, %v1934_v5  ;;  %v2021_v48 = vunpack.c.l.b16 %v1965_v46  ;;  %v1591_v49 = vshll.u32 %v3821_v14, 12 }
 0x10b   : > { %v1827_v25 = vpack.c.b16 %v1818_v23, %v1817_v32  ;;  %v1950_v24 = vcvt.s32.f32 %v1918_v30  ;;  %v1981_v43 = vpack.c.bf16 %v1949_v47, %v1949_v47  ;;  %v1592_v39 = vshll.u32 %v3825_v34, 12  ;;  %v3845_v47 = vld [vmem:[%s3537_s26 + $0x48] sm:$0xff] }
 0x10c   : > { %1766 = vmatpush.bf16.msra.mxu0 %v1755_v33  ;;  %v2022_v51 = vunpack.c.l.b16 %v1966_v18  ;;  %v1623_v53 = vshra.s32 %v1591_v49, 28  ;;  %v1607_v54 = vshll.u32 %v3829_v50, 12  ;;  %v1608_v58 = vshll.u32 %v3833_v57, 12 }
 0x10d   : > { %1838 = vmatpush.bf16.msra.mxu1 %v1827_v25  ;;  %v1982_v59 = vpack.c.bf16 %v1950_v24, %v1950_v24  ;;  %v2093_v61 = vunpack.c.l.b16 %v1981_v43  ;;  %v1624_v55 = vshra.s32 %v1592_v39, 28  ;;  %v1867_v4 = vshll.u32 %v3821_v14, 8  ;;  %v3849_v25 = vld [vmem:[%s3537_s26 + $0xc0] sm:$0xff]  ;;  %v3853_v43 = vld [vmem:[%s3537_s26 + $0xc8] sm:$0xff] }
 0x10e   : > { %v2031_v7 = vpack.c.b16 %v2022_v51, %v2021_v48  ;;  %v1655_v11 = vcvt.s32.f32 %v1623_v53  ;;  %v1639_v0 = vshra.s32 %v1607_v54, 28  ;;  %v1640_v15 = vshra.s32 %v1608_v58, 28 }
 0x10f   : > { %v2094_v26 = vunpack.c.l.b16 %v1982_v59  ;;  %v1656_v16 = vcvt.s32.f32 %v1624_v55  ;;  %v1868_v31 = vshll.u32 %v3825_v34, 8  ;;  %v1899_v1 = vshra.s32 %v1867_v4, 28 }
 0x110   : > { %2042 = vmatpush.bf16.msra.mxu2 %v2031_v7  ;;  %v1687_v27 = vpack.c.bf16 %v1655_v11, %v1655_v11  ;;  %v1671_v35 = vcvt.s32.f32 %v1639_v0  ;;  %v1672_v28 = vcvt.s32.f32 %v1640_v15  ;;  %v1883_v56 = vshll.u32 %v3829_v50, 8 }
 0x111   : > { %v2103_v36 = vpack.c.b16 %v2094_v26, %v2093_v61  ;;  %v1688_v2 = vpack.c.bf16 %v1656_v16, %v1656_v16  ;;  %v1900_v37 = vshra.s32 %v1868_v31, 28  ;;  %v1931_v20 = vcvt.s32.f32 %v1899_v1 }
 0x112   : > { %v1743_v42 = vunpack.c.l.b16 %v1687_v27  ;;  %v1703_v60 = vpack.c.bf16 %v1671_v35, %v1671_v35  ;;  %v1704_v6 = vpack.c.bf16 %v1672_v28, %v1672_v28  ;;  %v1884_v8 = vshll.u32 %v3833_v57, 8 }
 0x113   : > { %2114 = vmatpush.bf16.msra.mxu3 %v2103_v36  ;;  %v1744_v38 = vunpack.c.l.b16 %v1688_v2  ;;  %v1932_v40 = vcvt.s32.f32 %v1900_v37  ;;  %v1963_v29 = vpack.c.bf16 %v1931_v20, %v1931_v20  ;;  %v1915_v41 = vshra.s32 %v1883_v56, 28 }
 0x114   : > { %v1815_v19 = vunpack.c.l.b16 %v1703_v60  ;;  %v1816_v10 = vunpack.c.l.b16 %v1704_v6  ;;  %v1916_v44 = vshra.s32 %v1884_v8, 28  ;;  %v1589_v21 = vshll.u32 %v3841_v17, 12  ;;  %v3861_v8 = vld [vmem:[%s3537_s26 + $0x30] sm:$0xff] }
 0x115   : > { %v1754_v45 = vpack.c.b16 %v1744_v38, %v1743_v42  ;;  %v1964_v5 = vpack.c.bf16 %v1932_v40, %v1932_v40  ;;  %v2019_v46 = vunpack.c.l.b16 %v1963_v29  ;;  %v1947_v32 = vcvt.s32.f32 %v1915_v41 }
 0x116   : > { %v1826_v23 = vpack.c.b16 %v1816_v10, %v1815_v19  ;;  %v1948_v30 = vcvt.s32.f32 %v1916_v44  ;;  %v1590_v33 = vshll.u32 %v3845_v47, 12  ;;  %v1621_v18 = vshra.s32 %v1589_v21, 28 }
 0x117   : > { %1767 = vmatpush.bf16.msra.mxu0 %v1754_v45  ;;  %v2020_v48 = vunpack.c.l.b16 %v1964_v5  ;;  %v1979_v49 = vpack.c.bf16 %v1947_v32, %v1947_v32  ;;  %v1605_v24 = vshll.u32 %v3849_v25, 12  ;;  %v1606_v39 = vshll.u32 %v3853_v43, 12  ;;  %v3865_v45 = vld [vmem:[%s3537_s26 + $0x38] sm:$0xff] }
 0x118   : > { %1839 = vmatpush.bf16.msra.mxu1 %v1826_v23  ;;  %v1980_v51 = vpack.c.bf16 %v1948_v30, %v1948_v30  ;;  %v1622_v53 = vshra.s32 %v1590_v33, 28  ;;  %v1653_v54 = vcvt.s32.f32 %v1621_v18  ;;  %v1865_v58 = vshll.u32 %v3841_v17, 8 }
 0x119   : > { %v2030_v59 = vpack.c.b16 %v2020_v48, %v2019_v46  ;;  %v2091_v61 = vunpack.c.l.b16 %v1979_v49  ;;  %v1637_v55 = vshra.s32 %v1605_v24, 28  ;;  %v1638_v4 = vshra.s32 %v1606_v39, 28  ;;  %v3869_v49 = vld [vmem:[%s3537_s26 + $0xb0] sm:$0xff] }
 0x11a   : > { %v2092_v7 = vunpack.c.l.b16 %v1980_v51  ;;  %v1654_v11 = vcvt.s32.f32 %v1622_v53  ;;  %v1685_v0 = vpack.c.bf16 %v1653_v54, %v1653_v54  ;;  %v1866_v15 = vshll.u32 %v3845_v47, 8  ;;  %v3873_v53 = vld [vmem:[%s3537_s26 + $0xb8] sm:$0xff] }
 0x11b   : > { %2043 = vmatpush.bf16.msra.mxu2 %v2030_v59  ;;  %v1669_v26 = vcvt.s32.f32 %v1637_v55  ;;  %v1670_v16 = vcvt.s32.f32 %v1638_v4  ;;  %v1897_v31 = vshra.s32 %v1865_v58, 28  ;;  %v1881_v1 = vshll.u32 %v3849_v25, 8 }
 0x11c   : > { %v2102_v27 = vpack.c.b16 %v2092_v7, %v2091_v61  ;;  %v1686_v35 = vpack.c.bf16 %v1654_v11, %v1654_v11  ;;  %v1741_v28 = vunpack.c.l.b16 %v1685_v0  ;;  %v1898_v56 = vshra.s32 %v1866_v15, 28 }
 0x11d   : > { %v1701_v36 = vpack.c.bf16 %v1669_v26, %v1669_v26  ;;  %v1702_v2 = vpack.c.bf16 %v1670_v16, %v1670_v16  ;;  %v1929_v37 = vcvt.s32.f32 %v1897_v31  ;;  %v1882_v20 = vshll.u32 %v3853_v43, 8 }
 0x11e   : > { %2115 = vmatpush.bf16.msra.mxu3 %v2102_v27  ;;  %v1742_v42 = vunpack.c.l.b16 %v1686_v35  ;;  %v1930_v60 = vcvt.s32.f32 %v1898_v56  ;;  %v1913_v6 = vshra.s32 %v1881_v1, 28  ;;  %v1587_v38 = vshll.u32 %v3861_v8, 12 }
 0x11f   : > { %v1813_v40 = vunpack.c.l.b16 %v1701_v36  ;;  %v1814_v29 = vunpack.c.l.b16 %v1702_v2  ;;  %v1961_v41 = vpack.c.bf16 %v1929_v37, %v1929_v37  ;;  %v1914_v19 = vshra.s32 %v1882_v20, 28 }
 0x120   : > { %v1753_v10 = vpack.c.b16 %v1742_v42, %v1741_v28  ;;  %v1962_v44 = vpack.c.bf16 %v1930_v60, %v1930_v60  ;;  %v1945_v21 = vcvt.s32.f32 %v1913_v6  ;;  %v1588_v5 = vshll.u32 %v3865_v45, 12 }
 0x121   : > { %v1825_v46 = vpack.c.b16 %v1814_v29, %v1813_v40  ;;  %v2017_v32 = vunpack.c.l.b16 %v1961_v41  ;;  %v1946_v23 = vcvt.s32.f32 %v1914_v19  ;;  %v1619_v30 = vshra.s32 %v1587_v38, 28  ;;  %v3881_v38 = vld [vmem:[%s3537_s26 + $0x20] sm:$0xff] }
 0x122   : > { %1768 = vmatpush.bf16.msra.mxu0 %v1753_v10  ;;  %v2018_v33 = vunpack.c.l.b16 %v1962_v44  ;;  %v1977_v18 = vpack.c.bf16 %v1945_v21, %v1945_v21  ;;  %v1620_v48 = vshra.s32 %v1588_v5, 28  ;;  %v1603_v24 = vshll.u32 %v3869_v49, 12 }
 0x123   : > { %1840 = vmatpush.bf16.msra.mxu1 %v1825_v46  ;;  %v1978_v39 = vpack.c.bf16 %v1946_v23, %v1946_v23  ;;  %v1651_v51 = vcvt.s32.f32 %v1619_v30  ;;  %v1604_v54 = vshll.u32 %v3873_v53, 12  ;;  %v1863_v58 = vshll.u32 %v3861_v8, 8  ;;  %v3885_v46 = vld [vmem:[%s3537_s26 + $0x28] sm:$0xff] }
 0x124   : > { %v2029_v59 = vpack.c.b16 %v2018_v33, %v2017_v32  ;;  %v2089_v61 = vunpack.c.l.b16 %v1977_v18  ;;  %v1652_v55 = vcvt.s32.f32 %v1620_v48  ;;  %v1635_v4 = vshra.s32 %v1603_v24, 28  ;;  %v3889_v18 = vld [vmem:[%s3537_s26 + $0xa0] sm:$0xff] }
 0x125   : > { %v2090_v7 = vunpack.c.l.b16 %v1978_v39  ;;  %v1683_v11 = vpack.c.bf16 %v1651_v51, %v1651_v51  ;;  %v1636_v0 = vshra.s32 %v1604_v54, 28  ;;  %v1864_v15 = vshll.u32 %v3865_v45, 8 }
 0x126   : > { %2044 = vmatpush.bf16.msra.mxu2 %v2029_v59  ;;  %v1684_v26 = vpack.c.bf16 %v1652_v55, %v1652_v55  ;;  %v1667_v16 = vcvt.s32.f32 %v1635_v4  ;;  %v1895_v31 = vshra.s32 %v1863_v58, 28  ;;  %v1879_v1 = vshll.u32 %v3869_v49, 8 }
 0x127   : > { %v2101_v27 = vpack.c.b16 %v2090_v7, %v2089_v61  ;;  %v1739_v35 = vunpack.c.l.b16 %v1683_v11  ;;  %v1668_v28 = vcvt.s32.f32 %v1636_v0  ;;  %v1896_v56 = vshra.s32 %v1864_v15, 28  ;;  %v3893_v61 = vld [vmem:[%s3537_s26 + $0xa8] sm:$0xff] }
 0x128   : > { %v1740_v36 = vunpack.c.l.b16 %v1684_v26  ;;  %v1699_v2 = vpack.c.bf16 %v1667_v16, %v1667_v16  ;;  %v1927_v37 = vcvt.s32.f32 %v1895_v31  ;;  %v1880_v20 = vshll.u32 %v3873_v53, 8 }
 0x129   : > { %2116 = vmatpush.bf16.msra.mxu3 %v2101_v27  ;;  %v1700_v42 = vpack.c.bf16 %v1668_v28, %v1668_v28  ;;  %v1928_v60 = vcvt.s32.f32 %v1896_v56  ;;  %v1911_v6 = vshra.s32 %v1879_v1, 28  ;;  %v1585_v40 = vshll.u32 %v3881_v38, 12 }
 0x12a   : > { %v1752_v29 = vpack.c.b16 %v1740_v36, %v1739_v35  ;;  %v1811_v41 = vunpack.c.l.b16 %v1699_v2  ;;  %v1959_v19 = vpack.c.bf16 %v1927_v37, %v1927_v37  ;;  %v1912_v10 = vshra.s32 %v1880_v20, 28 }
 0x12b   : > { %v1812_v44 = vunpack.c.l.b16 %v1700_v42  ;;  %v1960_v21 = vpack.c.bf16 %v1928_v60, %v1928_v60  ;;  %v1943_v5 = vcvt.s32.f32 %v1911_v6  ;;  %v1586_v32 = vshll.u32 %v3885_v46, 12 }
 0x12c   : > { %1769 = vmatpush.bf16.msra.mxu0 %v1752_v29  ;;  %v2015_v23 = vunpack.c.l.b16 %v1959_v19  ;;  %v1944_v30 = vcvt.s32.f32 %v1912_v10  ;;  %v1617_v33 = vshra.s32 %v1585_v40, 28  ;;  %v1601_v48 = vshll.u32 %v3889_v18, 12  ;;  %v3901_v10 = vld [vmem:[%s3537_s26 + $0x10] sm:$0xff] }
 0x12d   : > { %v1824_v24 = vpack.c.b16 %v1812_v44, %v1811_v41  ;;  %v2016_v39 = vunpack.c.l.b16 %v1960_v21  ;;  %v1975_v51 = vpack.c.bf16 %v1943_v5, %v1943_v5  ;;  %v1618_v54 = vshra.s32 %v1586_v32, 28 }
 0x12e   : > { %v1976_v58 = vpack.c.bf16 %v1944_v30, %v1944_v30  ;;  %v1649_v59 = vcvt.s32.f32 %v1617_v33  ;;  %v1602_v55 = vshll.u32 %v3893_v61, 12  ;;  %v1633_v4 = vshra.s32 %v1601_v48, 28  ;;  %v3905_v48 = vld [vmem:[%s3537_s26 + $0x18] sm:$0xff] }
 0x12f   : > { %1841 = vmatpush.bf16.msra.mxu1 %v1824_v24  ;;  %v2028_v7 = vpack.c.b16 %v2016_v39, %v2015_v23  ;;  %v2087_v11 = vunpack.c.l.b16 %v1975_v51  ;;  %v1650_v0 = vcvt.s32.f32 %v1618_v54  ;;  %v1861_v15 = vshll.u32 %v3881_v38, 8 }
 0x130   : > { %v2088_v26 = vunpack.c.l.b16 %v1976_v58  ;;  %v1681_v16 = vpack.c.bf16 %v1649_v59, %v1649_v59  ;;  %v1634_v31 = vshra.s32 %v1602_v55, 28  ;;  %v1665_v1 = vcvt.s32.f32 %v1633_v4  ;;  %v3909_v59 = vld [vmem:[%s3537_s26 + $0x90] sm:$0xff] }
 0x131   : > { %2045 = vmatpush.bf16.msra.mxu2 %v2028_v7  ;;  %v1682_v27 = vpack.c.bf16 %v1650_v0, %v1650_v0  ;;  %v1862_v35 = vshll.u32 %v3885_v46, 8  ;;  %v1893_v28 = vshra.s32 %v1861_v15, 28  ;;  %v1877_v56 = vshll.u32 %v3889_v18, 8 }
 0x132   : > { %v2100_v36 = vpack.c.b16 %v2088_v26, %v2087_v11  ;;  %v1737_v2 = vunpack.c.l.b16 %v1681_v16  ;;  %v1666_v37 = vcvt.s32.f32 %v1634_v31  ;;  %v1697_v20 = vpack.c.bf16 %v1665_v1, %v1665_v1  ;;  %v3913_v16 = vld [vmem:[%s3537_s26 + $0x98] sm:$0xff] }
 0x133   : > { %v1738_v42 = vunpack.c.l.b16 %v1682_v27  ;;  %v1894_v60 = vshra.s32 %v1862_v35, 28  ;;  %v1925_v6 = vcvt.s32.f32 %v1893_v28  ;;  %v1878_v40 = vshll.u32 %v3893_v61, 8 }
 0x134   : > { %2117 = vmatpush.bf16.msra.mxu3 %v2100_v36  ;;  %v1698_v29 = vpack.c.bf16 %v1666_v37, %v1666_v37  ;;  %v1809_v41 = vunpack.c.l.b16 %v1697_v20  ;;  %v1909_v19 = vshra.s32 %v1877_v56, 28  ;;  %v1583_v44 = vshll.u32 %v3901_v10, 12 }
 0x135   : > { %v1751_v21 = vpack.c.b16 %v1738_v42, %v1737_v2  ;;  %v1926_v5 = vcvt.s32.f32 %v1894_v60  ;;  %v1957_v32 = vpack.c.bf16 %v1925_v6, %v1925_v6  ;;  %v1910_v23 = vshra.s32 %v1878_v40, 28 }
 0x136   : > { %v1810_v30 = vunpack.c.l.b16 %v1698_v29  ;;  %v1941_v33 = vcvt.s32.f32 %v1909_v19  ;;  %v1584_v24 = vshll.u32 %v3905_v48, 12  ;;  %v1615_v39 = vshra.s32 %v1583_v44, 28 }
 0x137   : > { %1770 = vmatpush.bf16.msra.mxu0 %v1751_v21  ;;  %v1958_v51 = vpack.c.bf16 %v1926_v5, %v1926_v5  ;;  %v2013_v54 = vunpack.c.l.b16 %v1957_v32  ;;  %v1942_v58 = vcvt.s32.f32 %v1910_v23  ;;  %v1599_v55 = vshll.u32 %v3909_v59, 12 }
 0x138   : > { %v1823_v4 = vpack.c.b16 %v1810_v30, %v1809_v41  ;;  %v1973_v7 = vpack.c.bf16 %v1941_v33, %v1941_v33  ;;  %v1616_v11 = vshra.s32 %v1584_v24, 28  ;;  %v1647_v0 = vcvt.s32.f32 %v1615_v39  ;;  %v3921_v39 = vld [vmem:[%s3537_s26] sm:$0xff] }
 0x139   : > { %v2014_v15 = vunpack.c.l.b16 %v1958_v51  ;;  %v1974_v26 = vpack.c.bf16 %v1942_v58, %v1942_v58  ;;  %v1600_v31 = vshll.u32 %v3913_v16, 12  ;;  %v1631_v1 = vshra.s32 %v1599_v55, 28 }
 0x13a   : > { %1842 = vmatpush.bf16.msra.mxu1 %v1823_v4  ;;  %v2085_v27 = vunpack.c.l.b16 %v1973_v7  ;;  %v1648_v35 = vcvt.s32.f32 %v1616_v11  ;;  %v1679_v28 = vpack.c.bf16 %v1647_v0, %v1647_v0  ;;  %v1859_v56 = vshll.u32 %v3901_v10, 8  ;;  %v3925_v0 = vld [vmem:[%s3537_s26 + $0x8] sm:$0xff] }
 0x13b   : > { %v2027_v36 = vpack.c.b16 %v2014_v15, %v2013_v54  ;;  %v2086_v2 = vunpack.c.l.b16 %v1974_v26  ;;  %v1632_v37 = vshra.s32 %v1600_v31, 28  ;;  %v1663_v20 = vcvt.s32.f32 %v1631_v1 }
 0x13c   : > { %v1680_v42 = vpack.c.bf16 %v1648_v35, %v1648_v35  ;;  %v1735_v60 = vunpack.c.l.b16 %v1679_v28  ;;  %v1860_v6 = vshll.u32 %v3905_v48, 8  ;;  %v1891_v40 = vshra.s32 %v1859_v56, 28  ;;  %v3929_v35 = vld [vmem:[%s3537_s26 + $0x80] sm:$0xff] }
 0x13d   : > { %2046 = vmatpush.bf16.msra.mxu2 %v2027_v36  ;;  %v2099_v29 = vpack.c.b16 %v2086_v2, %v2085_v27  ;;  %v1664_v41 = vcvt.s32.f32 %v1632_v37  ;;  %v1695_v19 = vpack.c.bf16 %v1663_v20, %v1663_v20  ;;  %v1875_v44 = vshll.u32 %v3909_v59, 8 }
 0x13e   : > { %v1736_v21 = vunpack.c.l.b16 %v1680_v42  ;;  %v1892_v5 = vshra.s32 %v1860_v6, 28  ;;  %v1923_v32 = vcvt.s32.f32 %v1891_v40  ;;  %v1876_v23 = vshll.u32 %v3913_v16, 8 }
 0x13f   : > { %2118 = vmatpush.bf16.msra.mxu3 %v2099_v29  ;;  %v1696_v30 = vpack.c.bf16 %v1664_v41, %v1664_v41  ;;  %v1807_v33 = vunpack.c.l.b16 %v1695_v19  ;;  %v1907_v24 = vshra.s32 %v1875_v44, 28  ;;  %v1581_v51 = vshll.u32 %v3921_v39, 12 }
 0x140   : > { %v1750_v54 = vpack.c.b16 %v1736_v21, %v1735_v60  ;;  %v1924_v58 = vcvt.s32.f32 %v1892_v5  ;;  %v1955_v55 = vpack.c.bf16 %v1923_v32, %v1923_v32  ;;  %v1908_v4 = vshra.s32 %v1876_v23, 28  ;;  %v3933_v60 = vld [vmem:[%s3537_s26 + $0x88] sm:$0xff] }
 0x141   : > { %v1808_v7 = vunpack.c.l.b16 %v1696_v30  ;;  %v1939_v11 = vcvt.s32.f32 %v1907_v24  ;;  %v1582_v15 = vshll.u32 %v3925_v0, 12  ;;  %v1613_v26 = vshra.s32 %v1581_v51, 28 }
 0x142   : > { %1771 = vmatpush.bf16.msra.mxu0 %v1750_v54  ;;  %v1956_v31 = vpack.c.bf16 %v1924_v58, %v1924_v58  ;;  %v2011_v1 = vunpack.c.l.b16 %v1955_v55  ;;  %v1940_v27 = vcvt.s32.f32 %v1908_v4  ;;  %v1597_v28 = vshll.u32 %v3929_v35, 12 }
 0x143   : > { %v1822_v56 = vpack.c.b16 %v1808_v7, %v1807_v33  ;;  %v1971_v36 = vpack.c.bf16 %v1939_v11, %v1939_v11  ;;  %v1614_v2 = vshra.s32 %v1582_v15, 28  ;;  %v1645_v37 = vcvt.s32.f32 %v1613_v26 }
 0x144   : > { %v2012_v20 = vunpack.c.l.b16 %v1956_v31  ;;  %v1972_v42 = vpack.c.bf16 %v1940_v27, %v1940_v27  ;;  %v1598_v6 = vshll.u32 %v3933_v60, 12  ;;  %v1629_v40 = vshra.s32 %v1597_v28, 28 }
 0x145   : > { %1843 = vmatpush.bf16.msra.mxu1 %v1822_v56  ;;  %v2083_v29 = vunpack.c.l.b16 %v1971_v36  ;;  %v1646_v41 = vcvt.s32.f32 %v1614_v2  ;;  %v1677_v19 = vpack.c.bf16 %v1645_v37, %v1645_v37  ;;  %v1857_v44 = vshll.u32 %v3921_v39, 8 }
 0x146   : > { %v2026_v21 = vpack.c.b16 %v2012_v20, %v2011_v1  ;;  %v2084_v5 = vunpack.c.l.b16 %v1972_v42  ;;  %v1630_v32 = vshra.s32 %v1598_v6, 28  ;;  %v1661_v23 = vcvt.s32.f32 %v1629_v40 }
 0x147   : > { %v1678_v30 = vpack.c.bf16 %v1646_v41, %v1646_v41  ;;  %v1733_v33 = vunpack.c.l.b16 %v1677_v19  ;;  %v1858_v24 = vshll.u32 %v3925_v0, 8  ;;  %v1889_v51 = vshra.s32 %v1857_v44, 28 }
 0x148   : > { %2047 = vmatpush.bf16.msra.mxu2 %v2026_v21  ;;  %v2098_v54 = vpack.c.b16 %v2084_v5, %v2083_v29  ;;  %v1662_v58 = vcvt.s32.f32 %v1630_v32  ;;  %v1693_v55 = vpack.c.bf16 %v1661_v23, %v1661_v23  ;;  %v1873_v4 = vshll.u32 %v3929_v35, 8 }
 0x149   : > { %v1734_v7 = vunpack.c.l.b16 %v1678_v30  ;;  %v1890_v11 = vshra.s32 %v1858_v24, 28  ;;  %v1921_v15 = vcvt.s32.f32 %v1889_v51  ;;  %v1874_v26 = vshll.u32 %v3933_v60, 8 }
 0x14a   : > { %2119 = vmatpush.bf16.msra.mxu3 %v2098_v54  ;;  %v1694_v31 = vpack.c.bf16 %v1662_v58, %v1662_v58  ;;  %v1805_v1 = vunpack.c.l.b16 %v1693_v55  ;;  %v1905_v27 = vshra.s32 %v1873_v4, 28  ;;  %v2147_v28 = vshll.u32 %v3781_v52, 4 }
 0x14b   : > { %v1749_v56 = vpack.c.b16 %v1734_v7, %v1733_v33  ;;  %v1922_v36 = vcvt.s32.f32 %v1890_v11  ;;  %v1953_v2 = vpack.c.bf16 %v1921_v15, %v1921_v15  ;;  %v1906_v37 = vshra.s32 %v1874_v26, 28 }
 0x14c   : > { %v1806_v20 = vunpack.c.l.b16 %v1694_v31  ;;  %v1937_v42 = vcvt.s32.f32 %v1905_v27  ;;  %v2148_v6 = vshll.u32 %v3785_v63, 4  ;;  %v2179_v40 = vshra.s32 %v2147_v28, 28 }
 0x14d   : > { %1772 = vmatpush.bf16.msra.mxu0 %v1749_v56  ;;  %v1954_v29 = vpack.c.bf16 %v1922_v36, %v1922_v36  ;;  %v2009_v41 = vunpack.c.l.b16 %v1953_v2  ;;  %v1938_v19 = vcvt.s32.f32 %v1906_v37  ;;  %v2163_v44 = vshll.u32 %v3789_v9, 4  ;;  %v2922_v56 = vld [vmem:[#allocation3 + $0x20] sm:$0xf] }
 0x14e   : > { %v1821_v21 = vpack.c.b16 %v1806_v20, %v1805_v1  ;;  %v1969_v5 = vpack.c.bf16 %v1937_v42, %v1937_v42  ;;  %v2180_v32 = vshra.s32 %v2148_v6, 28  ;;  %v2211_v23 = vcvt.s32.f32 %v2179_v40  ;;  %v2965_v36 = vld [vmem:[#allocation3 + $0x5c] sm:$0xf0]  ;;  %v2930_v6 = vld [vmem:[#allocation3 + $0x28] sm:$0xf] }
 0x14f   : > { %v2010_v30 = vunpack.c.l.b16 %v1954_v29  ;;  %v1970_v33 = vpack.c.bf16 %v1938_v19, %v1938_v19  ;;  %v2164_v24 = vshll.u32 %v3793_v22, 4  ;;  %v2195_v51 = vshra.s32 %v2163_v44, 28  ;;  %v2967_v40 = vld [vmem:[#allocation3 + $0x64] sm:$0xf0]  ;;  %v2964_v44 = vld [vmem:[#allocation3 + $0x24] sm:$0xf] }
 0x150   : > { %1844 = vmatpush.bf16.msra.mxu1 %v1821_v21  ;;  %v2081_v54 = vunpack.c.l.b16 %v1969_v5  ;;  %v2212_v58 = vcvt.s32.f32 %v2180_v32  ;;  %v2243_v55 = vpack.c.bf16 %v2211_v23, %v2211_v23  ;;  %v2423_v4 = vshra.s32 %v3781_v52, 28  ;;  %v2924_v21 = vld [vmem:[#allocation3 + $0x60] sm:$0xf0] }
 0x151   : > { %v2025_v7 = vpack.c.b16 %v2010_v30, %v2009_v41  ;;  %v2082_v11 = vunpack.c.l.b16 %v1970_v33  ;;  %v2196_v15 = vshra.s32 %v2164_v24, 28  ;;  %v2227_v26 = vcvt.s32.f32 %v2195_v51  ;;  %v2966_v30 = vld [vmem:[#allocation3 + $0x2c] sm:$0xf] }
 0x152   : > { %v2244_v31 = vpack.c.bf16 %v2212_v58, %v2212_v58  ;;  %v2299_v1 = vunpack.c.l.b16 %v2243_v55  ;;  %v2424_v27 = vshra.s32 %v3785_v63, 28  ;;  %v2455_v28 = vcvt.s32.f32 %v2423_v4  ;;  %v2932_v33 = vld [vmem:[#allocation3 + $0x68] sm:$0xf0] }
 0x153   : > { %2048 = vmatpush.bf16.msra.mxu2 %v2025_v7  ;;  %v2097_v2 = vpack.c.b16 %v2082_v11, %v2081_v54  ;;  %v2228_v37 = vcvt.s32.f32 %v2196_v15  ;;  %v2259_v20 = vpack.c.bf16 %v2227_v26, %v2227_v26  ;;  %v2439_v42 = vshra.s32 %v3789_v9, 28 }
 0x154   : > { %v2300_v52 = vunpack.c.l.b16 %v2244_v31  ;;  %v2456_v29 = vcvt.s32.f32 %v2424_v27  ;;  %v2487_v41 = vpack.c.bf16 %v2455_v28, %v2455_v28  ;;  %v2440_v19 = vshra.s32 %v3793_v22, 28 }
 0x155   : > { %2120 = vmatpush.bf16.msra.mxu3 %v2097_v2  ;;  %v2260_v63 = vpack.c.bf16 %v2228_v37, %v2228_v37  ;;  %v2371_v5 = vunpack.c.l.b16 %v2259_v20  ;;  %v2471_v32 = vcvt.s32.f32 %v2439_v42  ;;  %v2923_v23 = vor.u32 %v2965_v36, %v2922_v56 }
 0x156   : > { %v2308_v24 = vpack.c.b16 %v2300_v52, %v2299_v1  ;;  %v2488_v51 = vpack.c.bf16 %v2456_v29, %v2456_v29  ;;  %v2543_v54 = vunpack.c.l.b16 %v2487_v41  ;;  %v2472_v9 = vcvt.s32.f32 %v2440_v19 }
 0x157   : > { %v2372_v58 = vunpack.c.l.b16 %v2260_v63  ;;  %v2503_v55 = vpack.c.bf16 %v2471_v32, %v2471_v32  ;;  %1773 = vmatmul.bf16.vlgmr.msra.gmra.mxu0 %v2923_v23  ;;  %v2931_v4 = vor.u32 %v2967_v40, %v2930_v6  ;;  %v2927_v7 = vor.u32 %v2964_v44, %v2924_v21 }
 0x158   : > { %2317 = vmatpush.bf16.msrb.mxu0 %v2308_v24  ;;  %v2544_v22 = vunpack.c.l.b16 %v2488_v51  ;;  %v2504_v11 = vpack.c.bf16 %v2472_v9, %v2472_v9  ;;  %v2935_v15 = vor.u32 %v2966_v30, %v2932_v33  ;;  %v2145_v26 = vshll.u32 %v3801_v62, 4 }
 0x159   : > { %v2380_v31 = vpack.c.b16 %v2372_v58, %v2371_v5  ;;  %v2615_v27 = vunpack.c.l.b16 %v2503_v55  ;;  %2049 = vmatmul.bf16.vlgmr.msra.gmra.mxu2 %v2931_v4  ;;  %1845 = vmatmul.bf16.vlgmr.msra.gmra.mxu1 %v2927_v7  ;;  %v2146_v1 = vshll.u32 %v3805_v3, 4  ;;  %v2161_v28 = vshll.u32 %v3809_v12, 4 }
 0x15a   : > { %v2552_v56 = vpack.c.b16 %v2544_v22, %v2543_v54  ;;  %v2616_v36 = vunpack.c.l.b16 %v2504_v11  ;;  %2121 = vmatmul.bf16.vlgmr.msra.gmra.mxu3 %v2935_v15  ;;  %v2177_v2 = vshra.s32 %v2145_v26, 28  ;;  %v2162_v37 = vshll.u32 %v3813_v13, 4 }
 0x15b   : > { %2389 = vmatpush.bf16.msrb.mxu1 %v2380_v31  ;;  %v2178_v20 = vshra.s32 %v2146_v1, 28  ;;  %v2193_v42 = vshra.s32 %v2161_v28, 28  ;;  %v2421_v6 = vshra.s32 %v3801_v62, 28  ;;  %v2422_v40 = vshra.s32 %v3805_v3, 28 }
 0x15c   : > { %2561 = vmatpush.bf16.msrb.mxu2 %v2552_v56  ;;  %v2624_v52 = vpack.c.b16 %v2616_v36, %v2615_v27  ;;  %v2209_v29 = vcvt.s32.f32 %v2177_v2  ;;  %v2194_v41 = vshra.s32 %v2162_v37, 28  ;;  %v2437_v19 = vshra.s32 %v3809_v12, 28 }
 0x15d   : > { %v2210_v44 = vcvt.s32.f32 %v2178_v20  ;;  %v2225_v21 = vcvt.s32.f32 %v2193_v42  ;;  %v2453_v63 = vcvt.s32.f32 %v2421_v6  ;;  %v2454_v5 = vcvt.s32.f32 %v2422_v40 }
 0x15e   : > { %2633 = vmatpush.bf16.msrb.mxu3 %v2624_v52  ;;  %v2241_v32 = vpack.c.bf16 %v2209_v29, %v2209_v29  ;;  %v2226_v23 = vcvt.s32.f32 %v2194_v41  ;;  %v2438_v30 = vshra.s32 %v3813_v13, 28  ;;  %v2469_v33 = vcvt.s32.f32 %v2437_v19 }
 0x15f   : > { %v2242_v24 = vpack.c.bf16 %v2210_v44, %v2210_v44  ;;  %v2257_v62 = vpack.c.bf16 %v2225_v21, %v2225_v21  ;;  %v2485_v51 = vpack.c.bf16 %v2453_v63, %v2453_v63  ;;  %v2486_v3 = vpack.c.bf16 %v2454_v5, %v2454_v5 }
 0x160   : > { %v2297_v54 = vunpack.c.l.b16 %v2241_v32  ;;  %v2258_v9 = vpack.c.bf16 %v2226_v23, %v2226_v23  ;;  %v2470_v58 = vcvt.s32.f32 %v2438_v30  ;;  %v2501_v55 = vpack.c.bf16 %v2469_v33, %v2469_v33 }
 0x161   : > { %v2298_v4 = vunpack.c.l.b16 %v2242_v24  ;;  %v2369_v12 = vunpack.c.l.b16 %v2257_v62  ;;  %v2541_v7 = vunpack.c.l.b16 %v2485_v51  ;;  %v2542_v22 = vunpack.c.l.b16 %v2486_v3 }
 0x162   : > { %v2370_v11 = vunpack.c.l.b16 %v2258_v9  ;;  %v2502_v15 = vpack.c.bf16 %v2470_v58, %v2470_v58  ;;  %v2613_v26 = vunpack.c.l.b16 %v2501_v55  ;;  %v2143_v31 = vshll.u32 %v3821_v14, 4 }
 0x163   : > { %v2307_v27 = vpack.c.b16 %v2298_v4, %v2297_v54  ;;  %v2551_v13 = vpack.c.b16 %v2542_v22, %v2541_v7  ;;  %v2144_v1 = vshll.u32 %v3825_v34, 4  ;;  %v2159_v28 = vshll.u32 %v3829_v50, 4 }
 0x164   : > { %v2379_v56 = vpack.c.b16 %v2370_v11, %v2369_v12  ;;  %v2614_v36 = vunpack.c.l.b16 %v2502_v15  ;;  %v2175_v2 = vshra.s32 %v2143_v31, 28  ;;  %v2160_v37 = vshll.u32 %v3833_v57, 4 }
 0x165   : > { %2318 = vmatpush.bf16.msrb.mxu0 %v2307_v27  ;;  %2562 = vmatpush.bf16.msrb.mxu2 %v2551_v13  ;;  %v2176_v20 = vshra.s32 %v2144_v1, 28  ;;  %v2191_v42 = vshra.s32 %v2159_v28, 28  ;;  %v2419_v6 = vshra.s32 %v3821_v14, 28  ;;  %v2420_v40 = vshra.s32 %v3825_v34, 28 }
 0x166   : > { %2390 = vmatpush.bf16.msrb.mxu1 %v2379_v56  ;;  %v2623_v52 = vpack.c.b16 %v2614_v36, %v2613_v26  ;;  %v2207_v29 = vcvt.s32.f32 %v2175_v2  ;;  %v2192_v41 = vshra.s32 %v2160_v37, 28  ;;  %v2435_v19 = vshra.s32 %v3829_v50, 28 }
 0x167   : > { %v2208_v44 = vcvt.s32.f32 %v2176_v20  ;;  %v2223_v21 = vcvt.s32.f32 %v2191_v42  ;;  %v2451_v63 = vcvt.s32.f32 %v2419_v6  ;;  %v2452_v5 = vcvt.s32.f32 %v2420_v40 }
 0x168   : > { %2634 = vmatpush.bf16.msrb.mxu3 %v2623_v52  ;;  %v2239_v32 = vpack.c.bf16 %v2207_v29, %v2207_v29  ;;  %v2224_v23 = vcvt.s32.f32 %v2192_v41  ;;  %v2436_v30 = vshra.s32 %v3833_v57, 28  ;;  %v2467_v33 = vcvt.s32.f32 %v2435_v19 }
 0x169   : > { %v2240_v24 = vpack.c.bf16 %v2208_v44, %v2208_v44  ;;  %v2255_v14 = vpack.c.bf16 %v2223_v21, %v2223_v21  ;;  %v2483_v62 = vpack.c.bf16 %v2451_v63, %v2451_v63  ;;  %v2484_v34 = vpack.c.bf16 %v2452_v5, %v2452_v5 }
 0x16a   : > { %v2295_v51 = vunpack.c.l.b16 %v2239_v32  ;;  %v2256_v3 = vpack.c.bf16 %v2224_v23, %v2224_v23  ;;  %v2468_v54 = vcvt.s32.f32 %v2436_v30  ;;  %v2499_v9 = vpack.c.bf16 %v2467_v33, %v2467_v33 }
 0x16b   : > { %v2296_v58 = vunpack.c.l.b16 %v2240_v24  ;;  %v2367_v50 = vunpack.c.l.b16 %v2255_v14  ;;  %v2539_v55 = vunpack.c.l.b16 %v2483_v62  ;;  %v2540_v4 = vunpack.c.l.b16 %v2484_v34 }
 0x16c   : > { %v2368_v12 = vunpack.c.l.b16 %v2256_v3  ;;  %v2500_v7 = vpack.c.bf16 %v2468_v54, %v2468_v54  ;;  %v2611_v22 = vunpack.c.l.b16 %v2499_v9  ;;  %v2141_v11 = vshll.u32 %v3841_v17, 4 }
 0x16d   : > { %v2306_v15 = vpack.c.b16 %v2296_v58, %v2295_v51  ;;  %v2550_v57 = vpack.c.b16 %v2540_v4, %v2539_v55  ;;  %v2142_v26 = vshll.u32 %v3845_v47, 4  ;;  %v2157_v31 = vshll.u32 %v3849_v25, 4 }
 0x16e   : > { %v2378_v27 = vpack.c.b16 %v2368_v12, %v2367_v50  ;;  %v2612_v13 = vunpack.c.l.b16 %v2500_v7  ;;  %v2173_v1 = vshra.s32 %v2141_v11, 28  ;;  %v2158_v28 = vshll.u32 %v3853_v43, 4 }
 0x16f   : > { %2319 = vmatpush.bf16.msrb.mxu0 %v2306_v15  ;;  %2563 = vmatpush.bf16.msrb.mxu2 %v2550_v57  ;;  %v2174_v56 = vshra.s32 %v2142_v26, 28  ;;  %v2189_v36 = vshra.s32 %v2157_v31, 28  ;;  %v2417_v2 = vshra.s32 %v3841_v17, 28  ;;  %v2418_v37 = vshra.s32 %v3845_v47, 28 }
 0x170   : > { %2391 = vmatpush.bf16.msrb.mxu1 %v2378_v27  ;;  %v2622_v20 = vpack.c.b16 %v2612_v13, %v2611_v22  ;;  %v2205_v42 = vcvt.s32.f32 %v2173_v1  ;;  %v2190_v6 = vshra.s32 %v2158_v28, 28  ;;  %v2433_v40 = vshra.s32 %v3849_v25, 28 }
 0x171   : > { %v2206_v52 = vcvt.s32.f32 %v2174_v56  ;;  %v2221_v29 = vcvt.s32.f32 %v2189_v36  ;;  %v2449_v41 = vcvt.s32.f32 %v2417_v2  ;;  %v2450_v19 = vcvt.s32.f32 %v2418_v37 }
 0x172   : > { %2635 = vmatpush.bf16.msrb.mxu3 %v2622_v20  ;;  %v2237_v44 = vpack.c.bf16 %v2205_v42, %v2205_v42  ;;  %v2222_v21 = vcvt.s32.f32 %v2190_v6  ;;  %v2434_v63 = vshra.s32 %v3853_v43, 28  ;;  %v2465_v5 = vcvt.s32.f32 %v2433_v40 }
 0x173   : > { %v2238_v32 = vpack.c.bf16 %v2206_v52, %v2206_v52  ;;  %v2253_v17 = vpack.c.bf16 %v2221_v29, %v2221_v29  ;;  %v2481_v23 = vpack.c.bf16 %v2449_v41, %v2449_v41  ;;  %v2482_v47 = vpack.c.bf16 %v2450_v19, %v2450_v19 }
 0x174   : > { %v2293_v30 = vunpack.c.l.b16 %v2237_v44  ;;  %v2254_v33 = vpack.c.bf16 %v2222_v21, %v2222_v21  ;;  %v2466_v24 = vcvt.s32.f32 %v2434_v63  ;;  %v2497_v14 = vpack.c.bf16 %v2465_v5, %v2465_v5 }
 0x175   : > { %v2294_v62 = vunpack.c.l.b16 %v2238_v32  ;;  %v2365_v25 = vunpack.c.l.b16 %v2253_v17  ;;  %v2537_v34 = vunpack.c.l.b16 %v2481_v23  ;;  %v2538_v51 = vunpack.c.l.b16 %v2482_v47 }
 0x176   : > { %v2366_v3 = vunpack.c.l.b16 %v2254_v33  ;;  %v2498_v54 = vpack.c.bf16 %v2466_v24, %v2466_v24  ;;  %v2609_v9 = vunpack.c.l.b16 %v2497_v14  ;;  %v2139_v58 = vshll.u32 %v3861_v8, 4 }
 0x177   : > { %v2305_v50 = vpack.c.b16 %v2294_v62, %v2293_v30  ;;  %v2549_v43 = vpack.c.b16 %v2538_v51, %v2537_v34  ;;  %v2140_v55 = vshll.u32 %v3865_v45, 4  ;;  %v2155_v4 = vshll.u32 %v3869_v49, 4 }
 0x178   : > { %v2377_v12 = vpack.c.b16 %v2366_v3, %v2365_v25  ;;  %v2610_v7 = vunpack.c.l.b16 %v2498_v54  ;;  %v2171_v22 = vshra.s32 %v2139_v58, 28  ;;  %v2156_v11 = vshll.u32 %v3873_v53, 4 }
 0x179   : > { %2320 = vmatpush.bf16.msrb.mxu0 %v2305_v50  ;;  %2564 = vmatpush.bf16.msrb.mxu2 %v2549_v43  ;;  %v2172_v15 = vshra.s32 %v2140_v55, 28  ;;  %v2187_v57 = vshra.s32 %v2155_v4, 28  ;;  %v2415_v26 = vshra.s32 %v3861_v8, 28  ;;  %v2416_v31 = vshra.s32 %v3865_v45, 28 }
 0x17a   : > { %2392 = vmatpush.bf16.msrb.mxu1 %v2377_v12  ;;  %v2621_v27 = vpack.c.b16 %v2610_v7, %v2609_v9  ;;  %v2203_v13 = vcvt.s32.f32 %v2171_v22  ;;  %v2188_v1 = vshra.s32 %v2156_v11, 28  ;;  %v2431_v28 = vshra.s32 %v3869_v49, 28 }
 0x17b   : > { %v2204_v56 = vcvt.s32.f32 %v2172_v15  ;;  %v2219_v36 = vcvt.s32.f32 %v2187_v57  ;;  %v2447_v2 = vcvt.s32.f32 %v2415_v26  ;;  %v2448_v37 = vcvt.s32.f32 %v2416_v31 }
 0x17c   : > { %2636 = vmatpush.bf16.msrb.mxu3 %v2621_v27  ;;  %v2235_v20 = vpack.c.bf16 %v2203_v13, %v2203_v13  ;;  %v2220_v42 = vcvt.s32.f32 %v2188_v1  ;;  %v2432_v6 = vshra.s32 %v3873_v53, 28  ;;  %v2463_v40 = vcvt.s32.f32 %v2431_v28 }
 0x17d   : > { %v2236_v52 = vpack.c.bf16 %v2204_v56, %v2204_v56  ;;  %v2251_v8 = vpack.c.bf16 %v2219_v36, %v2219_v36  ;;  %v2479_v29 = vpack.c.bf16 %v2447_v2, %v2447_v2  ;;  %v2480_v45 = vpack.c.bf16 %v2448_v37, %v2448_v37 }
 0x17e   : > { %v2291_v41 = vunpack.c.l.b16 %v2235_v20  ;;  %v2252_v19 = vpack.c.bf16 %v2220_v42, %v2220_v42  ;;  %v2464_v44 = vcvt.s32.f32 %v2432_v6  ;;  %v2495_v21 = vpack.c.bf16 %v2463_v40, %v2463_v40 }
 0x17f   : > { %v2292_v63 = vunpack.c.l.b16 %v2236_v52  ;;  %v2363_v49 = vunpack.c.l.b16 %v2251_v8  ;;  %v2535_v5 = vunpack.c.l.b16 %v2479_v29  ;;  %v2536_v32 = vunpack.c.l.b16 %v2480_v45 }
 0x180   : > { %v2364_v17 = vunpack.c.l.b16 %v2252_v19  ;;  %v2496_v23 = vpack.c.bf16 %v2464_v44, %v2464_v44  ;;  %v2607_v47 = vunpack.c.l.b16 %v2495_v21  ;;  %v2137_v30 = vshll.u32 %v3881_v38, 4 }
 0x181   : > { %v2304_v33 = vpack.c.b16 %v2292_v63, %v2291_v41  ;;  %v2548_v53 = vpack.c.b16 %v2536_v32, %v2535_v5  ;;  %v2138_v24 = vshll.u32 %v3885_v46, 4  ;;  %v2153_v14 = vshll.u32 %v3889_v18, 4 }
 0x182   : > { %v2376_v62 = vpack.c.b16 %v2364_v17, %v2363_v49  ;;  %v2608_v25 = vunpack.c.l.b16 %v2496_v23  ;;  %v2169_v34 = vshra.s32 %v2137_v30, 28  ;;  %v2154_v51 = vshll.u32 %v3893_v61, 4 }
 0x183   : > { %2321 = vmatpush.bf16.msrb.mxu0 %v2304_v33  ;;  %2565 = vmatpush.bf16.msrb.mxu2 %v2548_v53  ;;  %v2170_v3 = vshra.s32 %v2138_v24, 28  ;;  %v2185_v54 = vshra.s32 %v2153_v14, 28  ;;  %v2413_v9 = vshra.s32 %v3881_v38, 28  ;;  %v2414_v58 = vshra.s32 %v3885_v46, 28 }
 0x184   : > { %2393 = vmatpush.bf16.msrb.mxu1 %v2376_v62  ;;  %v2620_v50 = vpack.c.b16 %v2608_v25, %v2607_v47  ;;  %v2201_v43 = vcvt.s32.f32 %v2169_v34  ;;  %v2186_v55 = vshra.s32 %v2154_v51, 28  ;;  %v2429_v4 = vshra.s32 %v3889_v18, 28 }
 0x185   : > { %v2202_v12 = vcvt.s32.f32 %v2170_v3  ;;  %v2217_v7 = vcvt.s32.f32 %v2185_v54  ;;  %v2445_v22 = vcvt.s32.f32 %v2413_v9  ;;  %v2446_v11 = vcvt.s32.f32 %v2414_v58 }
 0x186   : > { %2637 = vmatpush.bf16.msrb.mxu3 %v2620_v50  ;;  %v2233_v15 = vpack.c.bf16 %v2201_v43, %v2201_v43  ;;  %v2218_v57 = vcvt.s32.f32 %v2186_v55  ;;  %v2430_v26 = vshra.s32 %v3893_v61, 28  ;;  %v2461_v31 = vcvt.s32.f32 %v2429_v4 }
 0x187   : > { %v2234_v27 = vpack.c.bf16 %v2202_v12, %v2202_v12  ;;  %v2249_v38 = vpack.c.bf16 %v2217_v7, %v2217_v7  ;;  %v2477_v13 = vpack.c.bf16 %v2445_v22, %v2445_v22  ;;  %v2478_v46 = vpack.c.bf16 %v2446_v11, %v2446_v11 }
 0x188   : > { %v2289_v1 = vunpack.c.l.b16 %v2233_v15  ;;  %v2250_v28 = vpack.c.bf16 %v2218_v57, %v2218_v57  ;;  %v2462_v56 = vcvt.s32.f32 %v2430_v26  ;;  %v2493_v36 = vpack.c.bf16 %v2461_v31, %v2461_v31 }
 0x189   : > { %v2290_v2 = vunpack.c.l.b16 %v2234_v27  ;;  %v2361_v18 = vunpack.c.l.b16 %v2249_v38  ;;  %v2533_v37 = vunpack.c.l.b16 %v2477_v13  ;;  %v2534_v20 = vunpack.c.l.b16 %v2478_v46 }
 0x18a   : > { %v2362_v42 = vunpack.c.l.b16 %v2250_v28  ;;  %v2494_v6 = vpack.c.bf16 %v2462_v56, %v2462_v56  ;;  %v2605_v40 = vunpack.c.l.b16 %v2493_v36  ;;  %v2135_v52 = vshll.u32 %v3901_v10, 4 }
 0x18b   : > { %v2303_v8 = vpack.c.b16 %v2290_v2, %v2289_v1  ;;  %v2547_v61 = vpack.c.b16 %v2534_v20, %v2533_v37  ;;  %v2136_v29 = vshll.u32 %v3905_v48, 4  ;;  %v2151_v45 = vshll.u32 %v3909_v59, 4 }
 0x18c   : > { %v2375_v41 = vpack.c.b16 %v2362_v42, %v2361_v18  ;;  %v2606_v19 = vunpack.c.l.b16 %v2494_v6  ;;  %v2167_v44 = vshra.s32 %v2135_v52, 28  ;;  %v2152_v21 = vshll.u32 %v3913_v16, 4 }
 0x18d   : > { %2322 = vmatpush.bf16.msrb.mxu0 %v2303_v8  ;;  %2566 = vmatpush.bf16.msrb.mxu2 %v2547_v61  ;;  %v2168_v63 = vshra.s32 %v2136_v29, 28  ;;  %v2183_v49 = vshra.s32 %v2151_v45, 28  ;;  %v2411_v5 = vshra.s32 %v3901_v10, 28  ;;  %v2412_v32 = vshra.s32 %v3905_v48, 28 }
 0x18e   : > { %2394 = vmatpush.bf16.msrb.mxu1 %v2375_v41  ;;  %v2619_v17 = vpack.c.b16 %v2606_v19, %v2605_v40  ;;  %v2199_v23 = vcvt.s32.f32 %v2167_v44  ;;  %v2184_v47 = vshra.s32 %v2152_v21, 28  ;;  %v2427_v30 = vshra.s32 %v3909_v59, 28 }
 0x18f   : > { %v2200_v33 = vcvt.s32.f32 %v2168_v63  ;;  %v2215_v53 = vcvt.s32.f32 %v2183_v49  ;;  %v2443_v24 = vcvt.s32.f32 %v2411_v5  ;;  %v2444_v14 = vcvt.s32.f32 %v2412_v32  ;;  %v2938_v5 = vld [vmem:[#allocation3 + $0x30] sm:$0xf] }
 0x190   : > { %2638 = vmatpush.bf16.msrb.mxu3 %v2619_v17  ;;  %v2231_v62 = vpack.c.bf16 %v2199_v23, %v2199_v23  ;;  %v2216_v25 = vcvt.s32.f32 %v2184_v47  ;;  %v2428_v34 = vshra.s32 %v3913_v16, 28  ;;  %v2459_v51 = vcvt.s32.f32 %v2427_v30  ;;  %v2969_v47 = vld [vmem:[#allocation3 + $0x6c] sm:$0xf0]  ;;  %v2968_v30 = vld [vmem:[#allocation3 + $0x34] sm:$0xf] }
 0x191   : > { %v2232_v3 = vpack.c.bf16 %v2200_v33, %v2200_v33  ;;  %v2247_v10 = vpack.c.bf16 %v2215_v53, %v2215_v53  ;;  %v2475_v54 = vpack.c.bf16 %v2443_v24, %v2443_v24  ;;  %v2476_v48 = vpack.c.bf16 %v2444_v14, %v2444_v14  ;;  %v2940_v33 = vld [vmem:[#allocation3 + $0x70] sm:$0xf0]  ;;  %v2946_v14 = vld [vmem:[#allocation3 + $0x38] sm:$0xf] }
 0x192   : > { %v2287_v9 = vunpack.c.l.b16 %v2231_v62  ;;  %v2248_v58 = vpack.c.bf16 %v2216_v25, %v2216_v25  ;;  %v2460_v50 = vcvt.s32.f32 %v2428_v34  ;;  %v2491_v43 = vpack.c.bf16 %v2459_v51, %v2459_v51  ;;  %v2971_v62 = vld [vmem:[#allocation3 + $0x74] sm:$0xf0]  ;;  %v2973_v25 = vld [vmem:[%s4070_s1] sm:$0xff]  }
 0x193   : > { %v2288_v55 = vunpack.c.l.b16 %v2232_v3  ;;  %v2359_v59 = vunpack.c.l.b16 %v2247_v10  ;;  %v2531_v4 = vunpack.c.l.b16 %v2475_v54  ;;  %v2532_v12 = vunpack.c.l.b16 %v2476_v48  ;;  %v2970_v48 = vld [vmem:[#allocation3 + $0x3c] sm:$0xf] }
 0x194   : > { %v2360_v7 = vunpack.c.l.b16 %v2248_v58  ;;  %v2492_v22 = vpack.c.bf16 %v2460_v50, %v2460_v50  ;;  %v2603_v11 = vunpack.c.l.b16 %v2491_v43  ;;  %v2133_v15 = vshll.u32 %v3921_v39, 4 }
 0x195   : > { %v2302_v57 = vpack.c.b16 %v2288_v55, %v2287_v9  ;;  %v2546_v16 = vpack.c.b16 %v2532_v12, %v2531_v4  ;;  %v2134_v26 = vshll.u32 %v3925_v0, 4  ;;  %v2149_v31 = vshll.u32 %v3929_v35, 4  ;;  %v2948_v9 = vld [vmem:[#allocation3 + $0x78] sm:$0xf0] }
 0x196   : > { %v2374_v27 = vpack.c.b16 %v2360_v7, %v2359_v59  ;;  %v2604_v38 = vunpack.c.l.b16 %v2492_v22  ;;  %v2165_v13 = vshra.s32 %v2133_v15, 28  ;;  %v2150_v46 = vshll.u32 %v3933_v60, 4  ;;  %v672_v22 = vpop.f32.mrf.mxu0  ;;  %v946_v15 = vpop.f32.mrf.mxu2 }
 0x197   : > { %2323 = vmatpush.bf16.msrb.mxu0 %v2302_v57  ;;  %2567 = vmatpush.bf16.msrb.mxu2 %v2546_v16  ;;  %v2166_v1 = vshra.s32 %v2134_v26, 28  ;;  %v2181_v28 = vshra.s32 %v2149_v31, 28  ;;  %v2409_v56 = vshra.s32 %v3921_v39, 28  ;;  %v2410_v36 = vshra.s32 %v3925_v0, 28  ;;  %v1018_v57 = vpop.f32.mrf.mxu3  ;;  %v3084_v31 = vld [vmem:[%s3545_s27] ss:$0 sm:$0xff] }
 0x198   : > { %2395 = vmatpush.bf16.msrb.mxu1 %v2374_v27  ;;  %v2618_v2 = vpack.c.b16 %v2604_v38, %v2603_v11  ;;  %v2197_v18 = vcvt.s32.f32 %v2165_v13  ;;  %v2182_v37 = vshra.s32 %v2150_v46, 28  ;;  %v2425_v20 = vshra.s32 %v3929_v35, 28  ;;  %v742_v11 = vpop.f32.mrf.mxu1  ;;  %v3085_v27 = vld [vmem:[%s3545_s27 + $0x1] ss:$0 sm:$0xff] }
 0x199   : > { %v2198_v42 = vcvt.s32.f32 %v2166_v1  ;;  %v2213_v6 = vcvt.s32.f32 %v2181_v28  ;;  %v2441_v40 = vcvt.s32.f32 %v2409_v56  ;;  %v2442_v52 = vcvt.s32.f32 %v2410_v36  ;;  %v3086_v1 = vld [vmem:[%s3545_s27 + $0x2] ss:$0 sm:$0xff] }
 0x19a   : > { %2639 = vmatpush.bf16.msrb.mxu3 %v2618_v2  ;;  %v2229_v8 = vpack.c.bf16 %v2197_v18, %v2197_v18  ;;  %v2214_v61 = vcvt.s32.f32 %v2182_v37  ;;  %v2426_v29 = vshra.s32 %v3933_v60, 28  ;;  %v2457_v45 = vcvt.s32.f32 %v2425_v20  ;;  %v3087_v37 = vld [vmem:[%s3545_s27 + $0x3] ss:$0 sm:$0xff] }
 0x19b   : > { %v2230_v41 = vpack.c.bf16 %v2198_v42, %v2198_v42  ;;  %v2245_v39 = vpack.c.bf16 %v2213_v6, %v2213_v6  ;;  %v2473_v19 = vpack.c.bf16 %v2441_v40, %v2441_v40  ;;  %v2474_v0 = vpack.c.bf16 %v2442_v52, %v2442_v52  ;;  %v3088_v6 = vld [vmem:[%s3545_s27 + $0x4] ss:$0 sm:$0xff] }
 0x19c   : > { %v2285_v44 = vunpack.c.l.b16 %v2229_v8  ;;  %v2246_v21 = vpack.c.bf16 %v2214_v61, %v2214_v61  ;;  %v2458_v63 = vcvt.s32.f32 %v2426_v29  ;;  %v2489_v49 = vpack.c.bf16 %v2457_v45, %v2457_v45 }
 0x19d   : > { %v2286_v35 = vunpack.c.l.b16 %v2230_v41  ;;  %v2357_v32 = vunpack.c.l.b16 %v2245_v39  ;;  %v2529_v17 = vunpack.c.l.b16 %v2473_v19  ;;  %v2530_v23 = vunpack.c.l.b16 %v2474_v0  ;;  %v3089_v41 = vld [vmem:[%s3545_s27 + $0x5] ss:$0 sm:$0xff] }
 0x19e   : > { %v2358_v53 = vunpack.c.l.b16 %v2246_v21  ;;  %v2490_v24 = vpack.c.bf16 %v2458_v63, %v2458_v63  ;;  %v2601_v60 = vunpack.c.l.b16 %v2489_v49  ;;  %v2939_v54 = vor.u32 %v2969_v47, %v2938_v5  ;;  %v674_v16 = vpop.f32.mrf.mxu0  ;;  %v948_v38 = vpop.f32.mrf.mxu2  ;;  %v3090_v49 = vld [vmem:[%s3545_s27 + $0x6] ss:$0 sm:$0xff]  ;;  %v3091_v47 = vld [vmem:[%s3545_s27 + $0x7] ss:$0 sm:$0xff] }
 0x19f   : > { %v2301_v34 = vpack.c.b16 %v2286_v35, %v2285_v44  ;;  %v2545_v51 = vpack.c.b16 %v2530_v23, %v2529_v17  ;;  %v2943_v58 = vor.u32 %v2968_v30, %v2940_v33  ;;  %v2947_v50 = vor.u32 %v2971_v62, %v2946_v14  ;;  %v1020_v28 = vpop.f32.mrf.mxu3 }
 0x1a0   : > { %v2373_v3 = vpack.c.b16 %v2358_v53, %v2357_v32  ;;  %v2602_v10 = vunpack.c.l.b16 %v2490_v24  ;;  %v2974_v43 = vunpack.c.l.bf16 %v2973_v25  ;;  %v2975_v55 = vunpack.c.h.bf16 %v2973_v25  ;;  %v744_v26 = vpop.f32.mrf.mxu1 }
 0x1a1   : > { %2324 = vmatpush.bf16.msrb.mxu0 %v2301_v34  ;;  %2568 = vmatpush.bf16.msrb.mxu2 %v2545_v51  ;;  %v3351_v4 = vmov 0   ;;  %v2951_v12 = vor.u32 %v2970_v48, %v2948_v9  ;;  %v679_v13 = vmul.f32 %v3084_v31, %v672_v22  ;;  %v749_v46 = vmul.f32 %v3085_v27, %v742_v11 }
 0x1a2   : > { %2396 = vmatpush.bf16.msrb.mxu1 %v2373_v3  ;;  %v2617_v59 = vpack.c.b16 %v2602_v10, %v2601_v60  ;;  %3078 = vset.pattern.permute.xlu0 %v3351_v4  ;;  %v3079_v7 = vpack.i.bf16 %v2975_v55, %v2974_v43  ;;  %v953_v18 = vmul.f32 %v3086_v1, %v946_v15  ;;  %v3092_v60 = vld [vmem:[%s3545_s27 + $0x8] ss:$0 sm:$0xff]  ;;  %v3093_v10 = vld [vmem:[%s3545_s27 + $0x9] ss:$0 sm:$0xff]  ;;  %v3095_v15 = vld [vmem:[%s3545_s27 + $0xb] ss:$0 sm:$0xff] }
 0x1a3   : > { %v751_v2 = vadd.f32 %v749_v46, %v679_v13  ;;  %v1025_v42 = vmul.f32 %v3087_v37, %v1018_v57  ;;  %v680_v8 = vmul.f32 %v3084_v31, %v674_v16  ;;  %v750_v29 = vmul.f32 %v3085_v27, %v744_v26  ;;  %v3096_v26 = vld [vmem:[%s3545_s27 + $0xc] ss:$0 sm:$0xff] }
 0x1a4   : > { %2640 = vmatpush.bf16.msrb.mxu3 %v2617_v59  ;;  %2325 = vmatmul.bf16.vlgmr.msrb.gmra.mxu0 %v2939_v54  ;;  %v954_v44 = vmul.f32 %v3086_v1, %v948_v38  ;;  %v1026_v32 = vmul.f32 %v3087_v37, %v1020_v28 }
 0x1a5   : > { %2397 = vmatmul.bf16.vlgmr.msrb.gmra.mxu1 %v2943_v58  ;;  %2569 = vmatmul.bf16.vlgmr.msrb.gmra.mxu2 %v2947_v50  ;;  %v955_v20 = vadd.f32 %v953_v18, %v751_v2  ;;  %v752_v0 = vadd.f32 %v750_v29, %v680_v8  ;;  %v3094_v58 = vld [vmem:[%s3545_s27 + $0xa] ss:$0 sm:$0xff]  ;;  %v3099_v29 = vld [vmem:[%s3545_s27 + $0xf] ss:$0 sm:$0xff] }
 0x1a6   : > { %3080 = vperm.xlu0 %3078, %v3079_v7   ;;  %v1222_v56 = vpop.f32.mrf.mxu0  ;;  %v1498_v40 = vpop.f32.mrf.mxu2 }
 0x1a7   : > { %2641 = vmatmul.bf16.vlgmr.msrb.gmra.mxu3 %v2951_v12  ;;  %v1570_v52 = vpop.f32.mrf.mxu3  ;;  %v1027_v61 = vadd.f32 %v1025_v42, %v955_v20  ;;  %v1229_v45 = vmul.f32 %v3088_v6, %v1222_v56  ;;  %v956_v35 = vadd.f32 %v954_v44, %v752_v0  ;;  %v1505_v23 = vmul.f32 %v3090_v49, %v1498_v40  ;;  %v3097_v56 = vld [vmem:[%s3545_s27 + $0xd] ss:$0 sm:$0xff] }
 0x1a8   : > { %v1294_v36 = vpop.f32.mrf.mxu1  ;;  %v1577_v25 = vmul.f32 %v3091_v47, %v1570_v52  ;;  %v3098_v52 = vld [vmem:[%s3545_s27 + $0xe] ss:$0 sm:$0xff] }
 0x1a9   : > { %v1231_v21 = vadd.f32 %v1229_v45, %v1027_v61  ;;  %v1301_v63 = vmul.f32 %v3089_v41, %v1294_v36  ;;  %v1028_v14 = vadd.f32 %v1026_v32, %v956_v35 }
 0x1ab   : > { %v1303_v17 = vadd.f32 %v1301_v63, %v1231_v21 }
 0x1ad   : > { %v1507_v62 = vadd.f32 %v1505_v23, %v1303_v17 }
 0x1ae   : > { %v1224_v39 = vpop.f32.mrf.mxu0  ;;  %v1500_v5 = vpop.f32.mrf.mxu2 }
 0x1af   : > { %v1572_v33 = vpop.f32.mrf.mxu3  ;;  %v1230_v24 = vmul.f32 %v3088_v6, %v1224_v39  ;;  %v1579_v48 = vadd.f32 %v1577_v25, %v1507_v62  ;;  %v1506_v9 = vmul.f32 %v3090_v49, %v1500_v5 }
 0x1b0   : > { %v1296_v19 = vpop.f32.mrf.mxu1  ;;  %v1578_v22 = vmul.f32 %v3091_v47, %v1572_v33  ;;  %v2977_v47 = vld [vmem:[%s3550_s10] sm:$0xff]  }
 0x1b1   : > { %v1232_v34 = vadd.f32 %v1230_v24, %v1028_v14  ;;  %v1302_v51 = vmul.f32 %v3089_v41, %v1296_v19  ;;  %v2978_v14 = vunpack.c.l.bf16 %v2977_v47 }
 0x1b3   : > { %v1304_v43 = vadd.f32 %v1302_v51, %v1232_v34 }
 0x1b5   : > { %v1508_v7 = vadd.f32 %v1506_v9, %v1304_v43 }
 0x1b7   : > { %v1580_v31 = vadd.f32 %v1578_v22, %v1508_v7 }
 0x1d4   : > { %v1774_v30 = vpop.f32.mrf.mxu0 }
 0x1d5   : > { %v1781_v3 = vmul.f32 %v3092_v60, %v1774_v30  ;;  %v2675_v30 = vld [vmem:[%s445_s13] sm:$0x1] }
 0x1d6   : > { %v1846_v53 = vpop.f32.mrf.mxu1  ;;  %v2676_v62 = vunpack.c.l.bf16 %v2675_v30 }
 0x1d7   : > { %v1783_v55 = vadd.f32 %v1781_v3, %v1579_v48  ;;  %v1853_v59 = vmul.f32 %v3093_v10, %v1846_v53  ;;  %v2979_v48 = vunpack.c.h.bf16 %v2977_v47 }
 0x1d8   : > { %v2677_v9 = vperm.slane %v2676_v62, 0 }
 0x1d9   : > { %v1855_v57 = vadd.f32 %v1853_v59, %v1783_v55 }
 0x1dc   : > { %v2050_v54 = vpop.f32.mrf.mxu2  ;;  %v1776_v4 = vpop.f32.mrf.mxu0 }
 0x1dd   : > { %v2122_v50 = vpop.f32.mrf.mxu3  ;;  %v2057_v11 = vmul.f32 %v3094_v58, %v2050_v54  ;;  %v1782_v16 = vmul.f32 %v3092_v60, %v1776_v4 }
 0x1de   : > { %v1848_v12 = vpop.f32.mrf.mxu1  ;;  %v2129_v38 = vmul.f32 %v3095_v15, %v2122_v50 }
 0x1df   : > { %v2059_v27 = vadd.f32 %v2057_v11, %v1855_v57  ;;  %v1784_v46 = vadd.f32 %v1782_v16, %v1580_v31  ;;  %v1854_v1 = vmul.f32 %v3093_v10, %v1848_v12 }
 0x1e1   : > { %v2131_v37 = vadd.f32 %v2129_v38, %v2059_v27  ;;  %v1856_v42 = vadd.f32 %v1854_v1, %v1784_v46 }
 0x1e4   : > { %v2052_v13 = vpop.f32.mrf.mxu2 }
 0x1e5   : > { %v2124_v36 = vpop.f32.mrf.mxu3  ;;  %v2058_v20 = vmul.f32 %v3094_v58, %v2052_v13 }
 0x1e6   : > { %v2130_v61 = vmul.f32 %v3095_v15, %v2124_v36 }
 0x1e7   : > { %v2060_v8 = vadd.f32 %v2058_v20, %v1856_v42 }
 0x1e9   : > { %v2132_v21 = vadd.f32 %v2130_v61, %v2060_v8 }
 0x218   : > { %v3081_v35 = vpop.permute.xlu0 %3080 }
 0x219   : > { %v3082_v33 = vunpack.i.l.bf16 %v3081_v35  ;;  %v3083_v34 = vunpack.i.h.bf16 %v3081_v35 }
 0x221   : > { %v2326_v28 = vpop.f32.mrf.mxu0 }
 0x222   : > { %v2333_v2 = vmul.f32 %v3096_v26, %v2326_v28  ;;  %v2398_v18 = vpop.f32.mrf.mxu1 }
 0x223   : > { %v2405_v40 = vmul.f32 %v3097_v56, %v2398_v18 }
 0x224   : > { %v2335_v6 = vadd.f32 %v2333_v2, %v2131_v37 }
 0x226   : > { %v2407_v41 = vadd.f32 %v2405_v40, %v2335_v6 }
 0x228   : > { %v2570_v45 = vpop.f32.mrf.mxu2 }
 0x229   : > { %v2577_v39 = vmul.f32 %v3098_v52, %v2570_v45  ;;  %v2328_v19 = vpop.f32.mrf.mxu0 }
 0x22a   : > { %v2642_v0 = vpop.f32.mrf.mxu3  ;;  %v2334_v44 = vmul.f32 %v3096_v26, %v2328_v19  ;;  %v2400_v5 = vpop.f32.mrf.mxu1 }
 0x22b   : > { %v2579_v63 = vadd.f32 %v2577_v39, %v2407_v41  ;;  %v2649_v49 = vmul.f32 %v3099_v29, %v2642_v0  ;;  %v2406_v23 = vmul.f32 %v3097_v56, %v2400_v5 }
 0x22c   : > { %v2336_v32 = vadd.f32 %v2334_v44, %v2132_v21 }
 0x22d   : > { %v2651_v17 = vadd.f32 %v2649_v49, %v2579_v63 }
 0x22e   : > { %v2408_v24 = vadd.f32 %v2406_v23, %v2336_v32 }
 0x22f   : > { %v2667_v51 = vmul.f32 %v3082_v33, %v2651_v17 }
 0x230   : > { %v2572_v53 = vpop.f32.mrf.mxu2 }
 0x231   : > { %v2578_v60 = vmul.f32 %v3098_v52, %v2572_v53  ;;  %v2673_v58 = vadd.f32 %v2978_v14, %v2667_v51 }
 0x232   : > { %v2644_v25 = vpop.f32.mrf.mxu3 }
 0x233   : > { %v2580_v3 = vadd.f32 %v2578_v60, %v2408_v24  ;;  %v2650_v10 = vmul.f32 %v3099_v29, %v2644_v25  ;;  %v2678_v55 = vadd.f32 %v2677_v9, %v2673_v58 }
 0x235   : > { %v2652_v54 = vadd.f32 %v2650_v10, %v2580_v3 }
 0x237   : > { %v2668_v50 = vmul.f32 %v3083_v34, %v2652_v54 }
 0x239   : > { %v2674_v43 = vadd.f32 %v2979_v48, %v2668_v50 }
 0x23b   : > { %v2679_v59 = vadd.f32 %v2677_v9, %v2674_v43 }
 0x23d   : > { %v2983_v4 = vpack.c.bf16 %v2679_v59, %v2678_v55 }
 0x23f   : > { %2984 = vst [vmem:[%s433_s14] sm:$0xff] %v2983_v4  }
 0x240   : > { %3279 = shalt.err (!%p3276_p4)
}
 0x241   : > { %s3352_s3 = smov 64   ;;  %s3353_s8 = smov 128  }
 0x242   : > { %s3354_s10 = smov 4  }
 0x243   : > { %2995 = dma.vmem_to_hbm [thread:$0]  (%p3489_p0), %s2700_s17, 128, %s2702_s29, %s2685_s24, %s3352_s3, %s3353_s8, %s3354_s10  }
 0x244 PF: > { %s4114_s18 = sld [smem:[#allocation16_spill]]  ;;  %p3012_p5 = pnand %p2875_p3, %p3493_p2 }
 0x245   : > { %s4116_s20 = sld [smem:[#allocation18_spill]] }
 0x246   : > { %p3013_p1 = pneg %p3012_p5 }
 0x24a   : > { %s2716_s28 = sand.u32 1, %s4114_s18  }
 0x24b   : > { %s2717_s30 = scalar_lea.sflag [#allocation5], %s2716_s28 }
 0x24c   : > { %3317 = dma.done.wait (%p3013_p1), %s2717_s30, 128  }
 0x24d   : > { %3319 = vsyncadd (%p3013_p1), %s2717_s30, 4294967168  ;;  %s26_s26 = sadd.s32 1, %s4116_s20   ;;  %s4117_s13 = sld [smem:[#allocation17_spill]] }
 0x24e   : > { %p23_p6 = scmp.ge.s32.totalorder %s26_s26, 4   ;;  %s4118_s23 = sld [smem:[#allocation20_spill]] }
 0x24f   : > { %s4119_s7 = sld [smem:[#allocation19_spill]]  ;;  %s4120_s21 = smov %s3326_s22 }
 0x250   : > { %s4122_s24 = smov %s3338_s25 }
 0x251   :  { %25 = sbr.rel (!%p23_p6) target bundleno = 14 (0xe), region = 125 }
 0x253   : > { %s4121_s22 = smov %s4117_s13 }
 0x255   : > { %s4123_s25 = smov %s4119_s7 }
 0x256   :  { %2723 = vsyncpa [#allocation4], 1 }
 0x257   :  { %2725 = vsyncpa [#allocation4 + $0x1], 1 }
 0x258   :  { %2726 = vsyncpa [#allocation7], 1 }
 0x259   :  { %2728 = vsyncpa [#allocation7 + $0x1], 1 }
 0x25a   :  { %2729 = vsyncpa [#allocation10], 1 }
 0x25b   :  { %2731 = vsyncpa [#allocation10 + $0x1], 1 }
 0x25c   :  { %2732 = vsyncpa [#allocation5], 1 }
 0x25d   :  { %2734 = vsyncpa [#allocation5 + $0x1], 1 }

</bundles_post_ra>
